<compile_context>
chip_gen: v6e
topology: v6e:2x2x1
jax: 0.10.0
libtpu: 0.0.40
codegen_flags: <defaults>
</compile_context>

<pallas_src>
import jax
import jax.numpy as jnp
from jax.experimental import pallas as pl
from jax.experimental.pallas import tpu as pltpu

EPS = 1e-5  # nn.BatchNorm2d default eps


def _vmem_limit_bytes():
    # Above the 16/32 MiB scoped defaults, below physical capacity (64 MiB v7x).
    try:
        return int(pltpu.get_tpu_info().vmem_capacity_bytes * 3 // 4)
    except Exception:  # conservative fallback, safe on all generations
        return 48 * 1024 * 1024


_VMEM_LIMIT = _vmem_limit_bytes()


# --------------------------------------------------------------------------
# Pallas kernels
# --------------------------------------------------------------------------
def conv_bn_relu_pool_kernel(p_ref, w_ref, gamma_ref, beta_ref, o_ref):
    """Fused conv (im2col matmul, no bias) + BatchNorm(train) + ReLU + 2x2 pool.

    p_ref:     (4, Pq, K)  patches grouped by position in the 2x2 pool window,
                           Pq = B*Ho*Wo, K = Cin*KH*KW
    w_ref:     (K, Cout)
    gamma_ref: (1, Cout)   BN weight
    beta_ref:  (1, Cout)   BN bias
    o_ref:     (Pq, Cout)  pooled output
    """
    w = w_ref[...]
    y0 = jnp.dot(p_ref[0], w, preferred_element_type=jnp.float32)
    y1 = jnp.dot(p_ref[1], w, preferred_element_type=jnp.float32)
    y2 = jnp.dot(p_ref[2], w, preferred_element_type=jnp.float32)
    y3 = jnp.dot(p_ref[3], w, preferred_element_type=jnp.float32)

    # Single-pass biased batch statistics over all 4*Pq pre-pool rows/channel.
    n = 4.0 * y0.shape[0]
    ysum = (y0 + y1) + (y2 + y3)
    ysq = (y0 * y0 + y1 * y1) + (y2 * y2 + y3 * y3)
    mean = jnp.sum(ysum, axis=0, keepdims=True) / n
    var = jnp.sum(ysq, axis=0, keepdims=True) / n - mean * mean

    # Folded affine: relu(max over the 2x2 window of y*scale + shift).
    scale = gamma_ref[...] * jax.lax.rsqrt(var + EPS)
    shift = beta_ref[...] - mean * scale
    z = jnp.maximum(jnp.maximum(y0 * scale + shift, y1 * scale + shift),
                    jnp.maximum(y2 * scale + shift, y3 * scale + shift))
    o_ref[...] = jnp.maximum(z, 0.0)


def head_kernel(x_ref, w3_ref, g3_ref, b3_ref,
                w_fc1_ref, b_fc1_ref, w_fc2_ref, b_fc2_ref, o_ref):
    """conv3(+BN3+ReLU) + fc1(+ReLU) + fc2 as three chained matmuls.

    conv3 has a 4x4 kernel on a 4x4 input -> 1x1 output, i.e. a plain matmul
    on the flattened activations.  F.avg_pool2d(x, 1) is an identity.
    x_ref: (B, 256), w3_ref: (256, 120), w_fc1_ref: (120, 84),
    w_fc2_ref: (84, 10), o_ref: (B, 10).
    """
    y = jnp.dot(x_ref[...], w3_ref[...], preferred_element_type=jnp.float32)
    n = float(y.shape[0])
    mean = jnp.sum(y, axis=0, keepdims=True) / n
    var = jnp.sum(y * y, axis=0, keepdims=True) / n - mean * mean
    scale = g3_ref[...] * jax.lax.rsqrt(var + EPS)
    shift = b3_ref[...] - mean * scale
    h = jnp.maximum(y * scale + shift, 0.0)

    h = jnp.dot(h, w_fc1_ref[...], preferred_element_type=jnp.float32)
    h = jnp.maximum(h + b_fc1_ref[...], 0.0)

    o_ref[...] = (jnp.dot(h, w_fc2_ref[...], preferred_element_type=jnp.float32)
                  + b_fc2_ref[...])


def _pcall(kernel, out_shape, *args):
    """Whole-array-in-VMEM pallas_call (operands are small at these shapes)."""
    return pl.pallas_call(
        kernel,
        out_shape=jax.ShapeDtypeStruct(out_shape, jnp.float32),
        in_specs=[pl.BlockSpec(memory_space=pltpu.MemorySpace.VMEM)] * len(args),
        out_specs=pl.BlockSpec(memory_space=pltpu.MemorySpace.VMEM),
        compiler_params=pltpu.CompilerParams(vmem_limit_bytes=_VMEM_LIMIT),
    )(*args)


# --------------------------------------------------------------------------
# Plain-JAX glue (slices / reshapes only; activations stay NHWC)
# --------------------------------------------------------------------------
def _im2col_pooled(x, k):
    """x NHWC (B,H,W,C) -> (4, B*Ho*Wo, C*k*k).

    Axis 0 indexes the position (dh*2+dw) inside each 2x2 max-pool window; K
    is ordered (c, kh, kw) to match PyTorch's weight.reshape(Cout, Cin*k*k).
    """
    B, H, W, C = x.shape
    OH, OW = H - k + 1, W - k + 1
    Ho, Wo = OH // 2, OW // 2
    cols = []
    for kh in range(k):
        for kw in range(k):
            cols.append(x[:, kh:kh + OH, kw:kw + OW, :])      # (B, OH, OW, C)
    p = jnp.stack(cols, axis=3)                               # (B, OH, OW, k*k, C)
    p = p.transpose(0, 1, 2, 4, 3)                            # (B, OH, OW, C, k*k)
    p = p.reshape(B, Ho, 2, Wo, 2, C * k * k)
    p = p.transpose(2, 4, 0, 1, 3, 5)                         # (2, 2, B, Ho, Wo, K)
    return p.reshape(4, B * Ho * Wo, C * k * k), (B, Ho, Wo)


def conv_bn_relu_pool(x, w, gamma, beta):
    """x NHWC, w (Cout, Cin, k, k) PyTorch layout.  Returns NHWC (pooled)."""
    cout, cin, k, _ = w.shape
    p, (B, Ho, Wo) = _im2col_pooled(x, k)
    w2 = w.reshape(cout, cin * k * k).T                       # (K, Cout)
    out = _pcall(conv_bn_relu_pool_kernel, (B * Ho * Wo, cout),
                 p, w2, gamma.reshape(1, cout), beta.reshape(1, cout))
    return out.reshape(B, Ho, Wo, cout)                       # NHWC, no transpose


def head(x, w3, g3, b3, fc1_w, fc1_b, fc2_w, fc2_b):
    """x: (B, 4, 4, 16) NHWC -> logits (B, 10)."""
    B = x.shape[0]
    xf = x.reshape(B, -1)                                     # (B, 256), (h, w, c) order
    # (Cout, Cin, 4, 4) -> (KH, KW, Cin, Cout) -> (256, 120) to match xf order.
    w3_2d = w3.transpose(2, 3, 1, 0).reshape(-1, w3.shape[0])
    return _pcall(head_kernel, (B, fc2_w.shape[0]),
                  xf, w3_2d, g3.reshape(1, -1), b3.reshape(1, -1),
                  fc1_w.T, fc1_b.reshape(1, -1),
                  fc2_w.T, fc2_b.reshape(1, -1))


# --------------------------------------------------------------------------
# Model
# --------------------------------------------------------------------------
def init_params(key):
    ks = jax.random.split(key, 10)

    def u(k, shape, fan_in):
        bound = 1.0 / jnp.sqrt(fan_in)
        return jax.random.uniform(k, shape, jnp.float32, -bound, bound)

    # Conv biases are kept for parameter parity with PyTorch but are unused in
    # the kernels: train-mode BatchNorm's mean subtraction cancels them exactly.
    return {
        "conv1_w": u(ks[0], (6, 1, 5, 5), 1 * 5 * 5),
        "conv1_b": u(ks[1], (6,), 1 * 5 * 5),
        "bn1_g": jnp.ones((6,), jnp.float32),
        "bn1_b": jnp.zeros((6,), jnp.float32),
        "conv2_w": u(ks[2], (16, 6, 5, 5), 6 * 5 * 5),
        "conv2_b": u(ks[3], (16,), 6 * 5 * 5),
        "bn2_g": jnp.ones((16,), jnp.float32),
        "bn2_b": jnp.zeros((16,), jnp.float32),
        "conv3_w": u(ks[4], (120, 16, 4, 4), 16 * 4 * 4),
        "conv3_b": u(ks[5], (120,), 16 * 4 * 4),
        "bn3_g": jnp.ones((120,), jnp.float32),
        "bn3_b": jnp.zeros((120,), jnp.float32),
        "fc1_w": u(ks[6], (84, 120), 120),
        "fc1_b": u(ks[7], (84,), 120),
        "fc2_w": u(ks[8], (10, 84), 84),
        "fc2_b": u(ks[9], (10,), 84),
    }


@jax.jit
def lenet5_bn_forward(params, x):
    # x: (B, 1, 28, 28) NCHW (PyTorch layout); convert once to NHWC.
    x = x.transpose(0, 2, 3, 1)                               # (B, 28, 28, 1)
    x = conv_bn_relu_pool(x, params["conv1_w"],
                          params["bn1_g"], params["bn1_b"])   # (B, 12, 12, 6)
    x = conv_bn_relu_pool(x, params["conv2_w"],
                          params["bn2_g"], params["bn2_b"])   # (B, 4, 4, 16)
    return head(x, params["conv3_w"], params["bn3_g"], params["bn3_b"],
                params["fc1_w"], params["fc1_b"],
                params["fc2_w"], params["fc2_b"])             # (B, 10)


if __name__ == "__main__":
    key = jax.random.PRNGKey(0)
    kp, kx = jax.random.split(key)
    params = init_params(kp)
    # Architecture requires 28x28 input (conv3's 4x4 kernel reduces 4x4 -> 1x1).
    x = jax.random.normal(kx, (2, 1, 28, 28), jnp.float32)
    out = lenet5_bn_forward(params, x)
    out = jax.block_until_ready(out)
    assert out.shape == (2, 10), out.shape
    print("KERNEL_OK")
</pallas_src>

<mosaic_0001>
module attributes {stable_mosaic.version = 11 : i64} {
  func.func @conv_bn_relu_pool_kernel(%arg0: memref<4x288x25xf32, #tpu.memory_space<vmem>>, %arg1: memref<25x6xf32, #tpu.memory_space<vmem>>, %arg2: memref<1x6xf32, #tpu.memory_space<vmem>>, %arg3: memref<1x6xf32, #tpu.memory_space<vmem>>, %arg4: memref<288x6xf32, #tpu.memory_space<vmem>>) attributes {dimension_semantics = [], scalar_prefetch = 0 : i64, scratch_operands = 0 : i64, tpu.core_type = #tpu.core_type<tc>} {
    %c0 = arith.constant 0 : index
    %c0_0 = arith.constant 0 : index
    %0 = vector.load %arg1[%c0, %c0_0] : memref<25x6xf32, #tpu.memory_space<vmem>>, vector<25x6xf32>
    %c0_1 = arith.constant 0 : index
    %c0_2 = arith.constant 0 : index
    %c0_3 = arith.constant 0 : index
    %1 = vector.load %arg0[%c0_1, %c0_2, %c0_3] : memref<4x288x25xf32, #tpu.memory_space<vmem>>, vector<1x288x25xf32>
    %2 = vector.shape_cast %1 : vector<1x288x25xf32> to vector<288x25xf32>
    %cst = arith.constant dense<0.000000e+00> : vector<288x6xf32>
    %3 = tpu.matmul %2, %0, %cst {dimension_numbers = #tpu.dot_dimension_numbers<[1], [0], [0], [1], [0, 0, 1, 1], [], []>} : vector<288x25xf32>, vector<25x6xf32>, vector<288x6xf32> -> vector<288x6xf32>
    %c1 = arith.constant 1 : index
    %c0_4 = arith.constant 0 : index
    %c0_5 = arith.constant 0 : index
    %4 = vector.load %arg0[%c1, %c0_4, %c0_5] : memref<4x288x25xf32, #tpu.memory_space<vmem>>, vector<1x288x25xf32>
    %5 = vector.shape_cast %4 : vector<1x288x25xf32> to vector<288x25xf32>
    %cst_6 = arith.constant dense<0.000000e+00> : vector<288x6xf32>
    %6 = tpu.matmul %5, %0, %cst_6 {dimension_numbers = #tpu.dot_dimension_numbers<[1], [0], [0], [1], [0, 0, 1, 1], [], []>} : vector<288x25xf32>, vector<25x6xf32>, vector<288x6xf32> -> vector<288x6xf32>
    %c2 = arith.constant 2 : index
    %c0_7 = arith.constant 0 : index
    %c0_8 = arith.constant 0 : index
    %7 = vector.load %arg0[%c2, %c0_7, %c0_8] : memref<4x288x25xf32, #tpu.memory_space<vmem>>, vector<1x288x25xf32>
    %8 = vector.shape_cast %7 : vector<1x288x25xf32> to vector<288x25xf32>
    %cst_9 = arith.constant dense<0.000000e+00> : vector<288x6xf32>
    %9 = tpu.matmul %8, %0, %cst_9 {dimension_numbers = #tpu.dot_dimension_numbers<[1], [0], [0], [1], [0, 0, 1, 1], [], []>} : vector<288x25xf32>, vector<25x6xf32>, vector<288x6xf32> -> vector<288x6xf32>
    %c3 = arith.constant 3 : index
    %c0_10 = arith.constant 0 : index
    %c0_11 = arith.constant 0 : index
    %10 = vector.load %arg0[%c3, %c0_10, %c0_11] : memref<4x288x25xf32, #tpu.memory_space<vmem>>, vector<1x288x25xf32>
    %11 = vector.shape_cast %10 : vector<1x288x25xf32> to vector<288x25xf32>
    %cst_12 = arith.constant dense<0.000000e+00> : vector<288x6xf32>
    %12 = tpu.matmul %11, %0, %cst_12 {dimension_numbers = #tpu.dot_dimension_numbers<[1], [0], [0], [1], [0, 0, 1, 1], [], []>} : vector<288x25xf32>, vector<25x6xf32>, vector<288x6xf32> -> vector<288x6xf32>
    %13 = arith.addf %3, %6 : vector<288x6xf32>
    %14 = arith.addf %9, %12 : vector<288x6xf32>
    %15 = arith.addf %13, %14 : vector<288x6xf32>
    %16 = arith.mulf %3, %3 : vector<288x6xf32>
    %17 = arith.mulf %6, %6 : vector<288x6xf32>
    %18 = arith.addf %16, %17 : vector<288x6xf32>
    %19 = arith.mulf %9, %9 : vector<288x6xf32>
    %20 = arith.mulf %12, %12 : vector<288x6xf32>
    %21 = arith.addf %19, %20 : vector<288x6xf32>
    %22 = arith.addf %18, %21 : vector<288x6xf32>
    %cst_13 = arith.constant dense<0.000000e+00> : vector<6xf32>
    %23 = vector.multi_reduction <add>, %15, %cst_13 [0] : vector<288x6xf32> to vector<6xf32>
    %24 = vector.shape_cast %23 : vector<6xf32> to vector<1x6xf32>
    %cst_14 = arith.constant 1.152000e+03 : f32
    %25 = vector.broadcast %cst_14 : f32 to vector<1x6xf32>
    %26 = arith.divf %24, %25 : vector<1x6xf32>
    %cst_15 = arith.constant dense<0.000000e+00> : vector<6xf32>
    %27 = vector.multi_reduction <add>, %22, %cst_15 [0] : vector<288x6xf32> to vector<6xf32>
    %28 = vector.shape_cast %27 : vector<6xf32> to vector<1x6xf32>
    %cst_16 = arith.constant 1.152000e+03 : f32
    %29 = vector.broadcast %cst_16 : f32 to vector<1x6xf32>
    %30 = arith.divf %28, %29 : vector<1x6xf32>
    %31 = arith.mulf %26, %26 : vector<1x6xf32>
    %32 = arith.subf %30, %31 : vector<1x6xf32>
    %c0_17 = arith.constant 0 : index
    %c0_18 = arith.constant 0 : index
    %33 = vector.load %arg2[%c0_17, %c0_18] : memref<1x6xf32, #tpu.memory_space<vmem>>, vector<1x6xf32>
    %cst_19 = arith.constant 9.99999974E-6 : f32
    %34 = vector.broadcast %cst_19 : f32 to vector<1x6xf32>
    %35 = arith.addf %32, %34 : vector<1x6xf32>
    %36 = math.rsqrt %35 : vector<1x6xf32>
    %37 = arith.mulf %33, %36 : vector<1x6xf32>
    %c0_20 = arith.constant 0 : index
    %c0_21 = arith.constant 0 : index
    %38 = vector.load %arg3[%c0_20, %c0_21] : memref<1x6xf32, #tpu.memory_space<vmem>>, vector<1x6xf32>
    %39 = arith.mulf %26, %37 : vector<1x6xf32>
    %40 = arith.subf %38, %39 : vector<1x6xf32>
    %41 = vector.broadcast %37 : vector<1x6xf32> to vector<288x6xf32>
    %42 = arith.mulf %3, %41 : vector<288x6xf32>
    %43 = vector.broadcast %40 : vector<1x6xf32> to vector<288x6xf32>
    %44 = arith.addf %42, %43 : vector<288x6xf32>
    %45 = vector.broadcast %37 : vector<1x6xf32> to vector<288x6xf32>
    %46 = arith.mulf %6, %45 : vector<288x6xf32>
    %47 = vector.broadcast %40 : vector<1x6xf32> to vector<288x6xf32>
    %48 = arith.addf %46, %47 : vector<288x6xf32>
    %49 = arith.maximumf %44, %48 : vector<288x6xf32>
    %50 = vector.broadcast %37 : vector<1x6xf32> to vector<288x6xf32>
    %51 = arith.mulf %9, %50 : vector<288x6xf32>
    %52 = vector.broadcast %40 : vector<1x6xf32> to vector<288x6xf32>
    %53 = arith.addf %51, %52 : vector<288x6xf32>
    %54 = vector.broadcast %37 : vector<1x6xf32> to vector<288x6xf32>
    %55 = arith.mulf %12, %54 : vector<288x6xf32>
    %56 = vector.broadcast %40 : vector<1x6xf32> to vector<288x6xf32>
    %57 = arith.addf %55, %56 : vector<288x6xf32>
    %58 = arith.maximumf %53, %57 : vector<288x6xf32>
    %59 = arith.maximumf %49, %58 : vector<288x6xf32>
    %cst_22 = arith.constant 0.000000e+00 : f32
    %60 = vector.broadcast %cst_22 : f32 to vector<288x6xf32>
    %61 = arith.maximumf %59, %60 : vector<288x6xf32>
    %c0_23 = arith.constant 0 : index
    %c0_24 = arith.constant 0 : index
    %62 = vector.load %arg4[%c0_23, %c0_24] : memref<288x6xf32, #tpu.memory_space<vmem>>, vector<288x6xf32>
    tpu.vector_store %arg4[%c0_23, %c0_24], %61 {strides = array<i32>} : memref<288x6xf32, #tpu.memory_space<vmem>>, vector<288x6xf32>,
    return
  }
}

module attributes {stable_mosaic.version = 11 : i64} {
  func.func @conv_bn_relu_pool_kernel(%arg0: memref<4x32x150xf32, #tpu.memory_space<vmem>>, %arg1: memref<150x16xf32, #tpu.memory_space<vmem>>, %arg2: memref<1x16xf32, #tpu.memory_space<vmem>>, %arg3: memref<1x16xf32, #tpu.memory_space<vmem>>, %arg4: memref<32x16xf32, #tpu.memory_space<vmem>>) attributes {dimension_semantics = [], scalar_prefetch = 0 : i64, scratch_operands = 0 : i64, tpu.core_type = #tpu.core_type<tc>} {
    %c0 = arith.constant 0 : index
    %c0_0 = arith.constant 0 : index
    %0 = vector.load %arg1[%c0, %c0_0] : memref<150x16xf32, #tpu.memory_space<vmem>>, vector<150x16xf32>
    %c0_1 = arith.constant 0 : index
    %c0_2 = arith.constant 0 : index
    %c0_3 = arith.constant 0 : index
    %1 = vector.load %arg0[%c0_1, %c0_2, %c0_3] : memref<4x32x150xf32, #tpu.memory_space<vmem>>, vector<1x32x150xf32>
    %2 = vector.shape_cast %1 : vector<1x32x150xf32> to vector<32x150xf32>
    %cst = arith.constant dense<0.000000e+00> : vector<32x16xf32>
    %3 = tpu.matmul %2, %0, %cst {dimension_numbers = #tpu.dot_dimension_numbers<[1], [0], [0], [1], [0, 0, 1, 1], [], []>} : vector<32x150xf32>, vector<150x16xf32>, vector<32x16xf32> -> vector<32x16xf32>
    %c1 = arith.constant 1 : index
    %c0_4 = arith.constant 0 : index
    %c0_5 = arith.constant 0 : index
    %4 = vector.load %arg0[%c1, %c0_4, %c0_5] : memref<4x32x150xf32, #tpu.memory_space<vmem>>, vector<1x32x150xf32>
    %5 = vector.shape_cast %4 : vector<1x32x150xf32> to vector<32x150xf32>
    %cst_6 = arith.constant dense<0.000000e+00> : vector<32x16xf32>
    %6 = tpu.matmul %5, %0, %cst_6 {dimension_numbers = #tpu.dot_dimension_numbers<[1], [0], [0], [1], [0, 0, 1, 1], [], []>} : vector<32x150xf32>, vector<150x16xf32>, vector<32x16xf32> -> vector<32x16xf32>
    %c2 = arith.constant 2 : index
    %c0_7 = arith.constant 0 : index
    %c0_8 = arith.constant 0 : index
    %7 = vector.load %arg0[%c2, %c0_7, %c0_8] : memref<4x32x150xf32, #tpu.memory_space<vmem>>, vector<1x32x150xf32>
    %8 = vector.shape_cast %7 : vector<1x32x150xf32> to vector<32x150xf32>
    %cst_9 = arith.constant dense<0.000000e+00> : vector<32x16xf32>
    %9 = tpu.matmul %8, %0, %cst_9 {dimension_numbers = #tpu.dot_dimension_numbers<[1], [0], [0], [1], [0, 0, 1, 1], [], []>} : vector<32x150xf32>, vector<150x16xf32>, vector<32x16xf32> -> vector<32x16xf32>
    %c3 = arith.constant 3 : index
    %c0_10 = arith.constant 0 : index
    %c0_11 = arith.constant 0 : index
    %10 = vector.load %arg0[%c3, %c0_10, %c0_11] : memref<4x32x150xf32, #tpu.memory_space<vmem>>, vector<1x32x150xf32>
    %11 = vector.shape_cast %10 : vector<1x32x150xf32> to vector<32x150xf32>
    %cst_12 = arith.constant dense<0.000000e+00> : vector<32x16xf32>
    %12 = tpu.matmul %11, %0, %cst_12 {dimension_numbers = #tpu.dot_dimension_numbers<[1], [0], [0], [1], [0, 0, 1, 1], [], []>} : vector<32x150xf32>, vector<150x16xf32>, vector<32x16xf32> -> vector<32x16xf32>
    %13 = arith.addf %3, %6 : vector<32x16xf32>
    %14 = arith.addf %9, %12 : vector<32x16xf32>
    %15 = arith.addf %13, %14 : vector<32x16xf32>
    %16 = arith.mulf %3, %3 : vector<32x16xf32>
    %17 = arith.mulf %6, %6 : vector<32x16xf32>
    %18 = arith.addf %16, %17 : vector<32x16xf32>
    %19 = arith.mulf %9, %9 : vector<32x16xf32>
    %20 = arith.mulf %12, %12 : vector<32x16xf32>
    %21 = arith.addf %19, %20 : vector<32x16xf32>
    %22 = arith.addf %18, %21 : vector<32x16xf32>
    %cst_13 = arith.constant dense<0.000000e+00> : vector<16xf32>
    %23 = vector.multi_reduction <add>, %15, %cst_13 [0] : vector<32x16xf32> to vector<16xf32>
    %24 = vector.shape_cast %23 : vector<16xf32> to vector<1x16xf32>
    %cst_14 = arith.constant 1.280000e+02 : f32
    %25 = vector.broadcast %cst_14 : f32 to vector<1x16xf32>
    %26 = arith.divf %24, %25 : vector<1x16xf32>
    %cst_15 = arith.constant dense<0.000000e+00> : vector<16xf32>
    %27 = vector.multi_reduction <add>, %22, %cst_15 [0] : vector<32x16xf32> to vector<16xf32>
    %28 = vector.shape_cast %27 : vector<16xf32> to vector<1x16xf32>
    %cst_16 = arith.constant 1.280000e+02 : f32
    %29 = vector.broadcast %cst_16 : f32 to vector<1x16xf32>
    %30 = arith.divf %28, %29 : vector<1x16xf32>
    %31 = arith.mulf %26, %26 : vector<1x16xf32>
    %32 = arith.subf %30, %31 : vector<1x16xf32>
    %c0_17 = arith.constant 0 : index
    %c0_18 = arith.constant 0 : index
    %33 = vector.load %arg2[%c0_17, %c0_18] : memref<1x16xf32, #tpu.memory_space<vmem>>, vector<1x16xf32>
    %cst_19 = arith.constant 9.99999974E-6 : f32
    %34 = vector.broadcast %cst_19 : f32 to vector<1x16xf32>
    %35 = arith.addf %32, %34 : vector<1x16xf32>
    %36 = math.rsqrt %35 : vector<1x16xf32>
    %37 = arith.mulf %33, %36 : vector<1x16xf32>
    %c0_20 = arith.constant 0 : index
    %c0_21 = arith.constant 0 : index
    %38 = vector.load %arg3[%c0_20, %c0_21] : memref<1x16xf32, #tpu.memory_space<vmem>>, vector<1x16xf32>
    %39 = arith.mulf %26, %37 : vector<1x16xf32>
    %40 = arith.subf %38, %39 : vector<1x16xf32>
    %41 = vector.broadcast %37 : vector<1x16xf32> to vector<32x16xf32>
    %42 = arith.mulf %3, %41 : vector<32x16xf32>
    %43 = vector.broadcast %40 : vector<1x16xf32> to vector<32x16xf32>
    %44 = arith.addf %42, %43 : vector<32x16xf32>
    %45 = vector.broadcast %37 : vector<1x16xf32> to vector<32x16xf32>
    %46 = arith.mulf %6, %45 : vector<32x16xf32>
    %47 = vector.broadcast %40 : vector<1x16xf32> to vector<32x16xf32>
    %48 = arith.addf %46, %47 : vector<32x16xf32>
    %49 = arith.maximumf %44, %48 : vector<32x16xf32>
    %50 = vector.broadcast %37 : vector<1x16xf32> to vector<32x16xf32>
    %51 = arith.mulf %9, %50 : vector<32x16xf32>
    %52 = vector.broadcast %40 : vector<1x16xf32> to vector<32x16xf32>
    %53 = arith.addf %51, %52 : vector<32x16xf32>
    %54 = vector.broadcast %37 : vector<1x16xf32> to vector<32x16xf32>
    %55 = arith.mulf %12, %54 : vector<32x16xf32>
    %56 = vector.broadcast %40 : vector<1x16xf32> to vector<32x16xf32>
    %57 = arith.addf %55, %56 : vector<32x16xf32>
    %58 = arith.maximumf %53, %57 : vector<32x16xf32>
    %59 = arith.maximumf %49, %58 : vector<32x16xf32>
    %cst_22 = arith.constant 0.000000e+00 : f32
    %60 = vector.broadcast %cst_22 : f32 to vector<32x16xf32>
    %61 = arith.maximumf %59, %60 : vector<32x16xf32>
    %c0_23 = arith.constant 0 : index
    %c0_24 = arith.constant 0 : index
    %62 = vector.load %arg4[%c0_23, %c0_24] : memref<32x16xf32, #tpu.memory_space<vmem>>, vector<32x16xf32>
    tpu.vector_store %arg4[%c0_23, %c0_24], %61 {strides = array<i32>} : memref<32x16xf32, #tpu.memory_space<vmem>>, vector<32x16xf32>,
    return
  }
}

module attributes {stable_mosaic.version = 11 : i64} {
  func.func @head_kernel(%arg0: memref<2x256xf32, #tpu.memory_space<vmem>>, %arg1: memref<256x120xf32, #tpu.memory_space<vmem>>, %arg2: memref<1x120xf32, #tpu.memory_space<vmem>>, %arg3: memref<1x120xf32, #tpu.memory_space<vmem>>, %arg4: memref<120x84xf32, #tpu.memory_space<vmem>>, %arg5: memref<1x84xf32, #tpu.memory_space<vmem>>, %arg6: memref<84x10xf32, #tpu.memory_space<vmem>>, %arg7: memref<1x10xf32, #tpu.memory_space<vmem>>, %arg8: memref<2x10xf32, #tpu.memory_space<vmem>>) attributes {dimension_semantics = [], scalar_prefetch = 0 : i64, scratch_operands = 0 : i64, tpu.core_type = #tpu.core_type<tc>} {
    %c0 = arith.constant 0 : index
    %c0_0 = arith.constant 0 : index
    %0 = vector.load %arg0[%c0, %c0_0] : memref<2x256xf32, #tpu.memory_space<vmem>>, vector<2x256xf32>
    %c0_1 = arith.constant 0 : index
    %c0_2 = arith.constant 0 : index
    %1 = vector.load %arg1[%c0_1, %c0_2] : memref<256x120xf32, #tpu.memory_space<vmem>>, vector<256x120xf32>
    %cst = arith.constant dense<0.000000e+00> : vector<2x120xf32>
    %2 = tpu.matmul %0, %1, %cst {dimension_numbers = #tpu.dot_dimension_numbers<[1], [0], [0], [1], [0, 0, 1, 1], [], []>} : vector<2x256xf32>, vector<256x120xf32>, vector<2x120xf32> -> vector<2x120xf32>
    %cst_3 = arith.constant dense<0.000000e+00> : vector<120xf32>
    %3 = vector.multi_reduction <add>, %2, %cst_3 [0] : vector<2x120xf32> to vector<120xf32>
    %4 = vector.shape_cast %3 : vector<120xf32> to vector<1x120xf32>
    %cst_4 = arith.constant 2.000000e+00 : f32
    %5 = vector.broadcast %cst_4 : f32 to vector<1x120xf32>
    %6 = arith.divf %4, %5 : vector<1x120xf32>
    %7 = arith.mulf %2, %2 : vector<2x120xf32>
    %cst_5 = arith.constant dense<0.000000e+00> : vector<120xf32>
    %8 = vector.multi_reduction <add>, %7, %cst_5 [0] : vector<2x120xf32> to vector<120xf32>
    %9 = vector.shape_cast %8 : vector<120xf32> to vector<1x120xf32>
    %cst_6 = arith.constant 2.000000e+00 : f32
    %10 = vector.broadcast %cst_6 : f32 to vector<1x120xf32>
    %11 = arith.divf %9, %10 : vector<1x120xf32>
    %12 = arith.mulf %6, %6 : vector<1x120xf32>
    %13 = arith.subf %11, %12 : vector<1x120xf32>
    %c0_7 = arith.constant 0 : index
    %c0_8 = arith.constant 0 : index
    %14 = vector.load %arg2[%c0_7, %c0_8] : memref<1x120xf32, #tpu.memory_space<vmem>>, vector<1x120xf32>
    %cst_9 = arith.constant 9.99999974E-6 : f32
    %15 = vector.broadcast %cst_9 : f32 to vector<1x120xf32>
    %16 = arith.addf %13, %15 : vector<1x120xf32>
    %17 = math.rsqrt %16 : vector<1x120xf32>
    %18 = arith.mulf %14, %17 : vector<1x120xf32>
    %c0_10 = arith.constant 0 : index
    %c0_11 = arith.constant 0 : index
    %19 = vector.load %arg3[%c0_10, %c0_11] : memref<1x120xf32, #tpu.memory_space<vmem>>, vector<1x120xf32>
    %20 = arith.mulf %6, %18 : vector<1x120xf32>
    %21 = arith.subf %19, %20 : vector<1x120xf32>
    %22 = vector.broadcast %18 : vector<1x120xf32> to vector<2x120xf32>
    %23 = arith.mulf %2, %22 : vector<2x120xf32>
    %24 = vector.broadcast %21 : vector<1x120xf32> to vector<2x120xf32>
    %25 = arith.addf %23, %24 : vector<2x120xf32>
    %cst_12 = arith.constant 0.000000e+00 : f32
    %26 = vector.broadcast %cst_12 : f32 to vector<2x120xf32>
    %27 = arith.maximumf %25, %26 : vector<2x120xf32>
    %c0_13 = arith.constant 0 : index
    %c0_14 = arith.constant 0 : index
    %28 = vector.load %arg4[%c0_13, %c0_14] : memref<120x84xf32, #tpu.memory_space<vmem>>, vector<120x84xf32>
    %cst_15 = arith.constant dense<0.000000e+00> : vector<2x84xf32>
    %29 = tpu.matmul %27, %28, %cst_15 {dimension_numbers = #tpu.dot_dimension_numbers<[1], [0], [0], [1], [0, 0, 1, 1], [], []>} : vector<2x120xf32>, vector<120x84xf32>, vector<2x84xf32> -> vector<2x84xf32>
    %c0_16 = arith.constant 0 : index
    %c0_17 = arith.constant 0 : index
    %30 = vector.load %arg5[%c0_16, %c0_17] : memref<1x84xf32, #tpu.memory_space<vmem>>, vector<1x84xf32>
    %31 = vector.broadcast %30 : vector<1x84xf32> to vector<2x84xf32>
    %32 = arith.addf %29, %31 : vector<2x84xf32>
    %cst_18 = arith.constant 0.000000e+00 : f32
    %33 = vector.broadcast %cst_18 : f32 to vector<2x84xf32>
    %34 = arith.maximumf %32, %33 : vector<2x84xf32>
    %c0_19 = arith.constant 0 : index
    %c0_20 = arith.constant 0 : index
    %35 = vector.load %arg6[%c0_19, %c0_20] : memref<84x10xf32, #tpu.memory_space<vmem>>, vector<84x10xf32>
    %cst_21 = arith.constant dense<0.000000e+00> : vector<2x10xf32>
    %36 = tpu.matmul %34, %35, %cst_21 {dimension_numbers = #tpu.dot_dimension_numbers<[1], [0], [0], [1], [0, 0, 1, 1], [], []>} : vector<2x84xf32>, vector<84x10xf32>, vector<2x10xf32> -> vector<2x10xf32>
    %c0_22 = arith.constant 0 : index
    %c0_23 = arith.constant 0 : index
    %37 = vector.load %arg7[%c0_22, %c0_23] : memref<1x10xf32, #tpu.memory_space<vmem>>, vector<1x10xf32>
    %38 = vector.broadcast %37 : vector<1x10xf32> to vector<2x10xf32>
    %39 = arith.addf %36, %38 : vector<2x10xf32>
    %c0_24 = arith.constant 0 : index
    %c0_25 = arith.constant 0 : index
    %40 = vector.load %arg8[%c0_24, %c0_25] : memref<2x10xf32, #tpu.memory_space<vmem>>, vector<2x10xf32>
    tpu.vector_store %arg8[%c0_24, %c0_25], %39 {strides = array<i32>} : memref<2x10xf32, #tpu.memory_space<vmem>>, vector<2x10xf32>,
    return
  }
}

</mosaic_0001>

<bundles_post_ra>
// kernel: lenet5_bn_forward.3
= control target key start
LH: loop header
LB: loop body
LE: loop exit
PB: predicated region body
PF: predicated region fallthrough
CT: control target
= control target key end

     0   :  { %vm166_vm0 = vcmask 1040384   ;;  %vm57_vm1 = vcmask 203776   ;;  %vm1945_vm2 = vcmask 48128   ;;  %s6114_s1 = inlined_call_operand.vmem [shape: f32[25,6], index: 1, kind: input, shape index: {}]   ;;  %s6115_s0 = inlined_call_operand.vmem [shape: f32[4,288,25], index: 0, kind: input, shape index: {}]   ;;  %s6116_s2 = inlined_call_operand.vmem [shape: f32[1,6], index: 2, kind: input, shape index: {}]   ;;  %s6117_s3 = inlined_call_operand.vmem [shape: f32[1,6], index: 3, kind: input, shape index: {}]   ;;  %s6118_s4 = inlined_call_operand.vmem [shape: f32[288,6], index: 4, kind: output, shape index: {}]  }
   0x1   :  { %v20_v0 = vld [vmem:[%s6114_s1 + $0x18] sm:$0x1]  ;;  %v19_v1 = vld [vmem:[%s6114_s1 + $0x10] sm:$0xff]  ;;  %v18_v2 = vld [vmem:[%s6114_s1 + $0x8] sm:$0xff] }
   0x2   :  { %3012 = vmatprep.subr.msk.mxu0 %vm166_vm0, %v20_v0  ;;  %3074 = vmatprep.subr.msk.mxu1 %vm166_vm0, %v20_v0  ;;  %v3303_v3 = vld [vmem:[%s6114_s1] sm:$0xff]  ;;  %v22_v6 = vld [vmem:[%s6115_s0 + $0x8] sm:$0xff]  ;;  %v23_v8 = vld [vmem:[%s6115_s0 + $0x10] sm:$0xff] }
   0x3   :  { %3013 = vmatpush3.msk.msra.mxu0 %vm166_vm0, %v20_v0  ;;  %3075 = vmatpush3.msk.msra.mxu1 %vm166_vm0, %v20_v0  ;;  %v21_v4 = vld [vmem:[%s6115_s0] sm:$0xff]  ;;  %v2634_v7 = vld [vmem:[%s6115_s0 + $0x128] sm:$0xff]  ;;  %v2635_v9 = vld [vmem:[%s6115_s0 + $0x130] sm:$0xff] }
   0x4   :  { %3014 = vmatprep.subr.mxu0 %v19_v1  ;;  %3076 = vmatprep.subr.mxu1 %v19_v1  ;;  %v2633_v5 = vld [vmem:[%s6115_s0 + $0x120] sm:$0xff]  ;;  %v24_v10 = vld [vmem:[%s6115_s0 + $0x18] sm:$0xff]  ;;  %v26_v14 = vld [vmem:[%s6115_s0 + $0x28] sm:$0xff] }
   0x5   :  { %3015 = vmatpush3.msra.mxu0 %v19_v1  ;;  %3077 = vmatpush3.msra.mxu1 %v19_v1  ;;  %v2636_v11 = vld [vmem:[%s6115_s0 + $0x138] sm:$0xff]  ;;  %v25_v12 = vld [vmem:[%s6115_s0 + $0x20] sm:$0xff]  ;;  %v2638_v15 = vld [vmem:[%s6115_s0 + $0x148] sm:$0xff] }
   0x6   :  { %3016 = vmatprep.subr.mxu0 %v18_v2  ;;  %3078 = vmatprep.subr.mxu1 %v18_v2  ;;  %v2637_v13 = vld [vmem:[%s6115_s0 + $0x140] sm:$0xff]  ;;  %v27_v16 = vld [vmem:[%s6115_s0 + $0x30] sm:$0xff]  ;;  %v28_v18 = vld [vmem:[%s6115_s0 + $0x38] sm:$0xff] }
   0x7   :  { %3017 = vmatpush3.msra.mxu0 %v18_v2  ;;  %3079 = vmatpush3.msra.mxu1 %v18_v2  ;;  %v2639_v17 = vld [vmem:[%s6115_s0 + $0x150] sm:$0xff]  ;;  %v2640_v19 = vld [vmem:[%s6115_s0 + $0x158] sm:$0xff]  ;;  %v29_v20 = vld [vmem:[%s6115_s0 + $0x40] sm:$0xff] }
   0x8   :  { %3018 = vmatprep.subr.mxu0 %v3303_v3  ;;  %3080 = vmatprep.subr.mxu1 %v3303_v3  ;;  %v2641_v21 = vld [vmem:[%s6115_s0 + $0x160] sm:$0xff]  ;;  %v30_v22 = vld [vmem:[%s6115_s0 + $0x48] sm:$0xff]  ;;  %v31_v24 = vld [vmem:[%s6115_s0 + $0x50] sm:$0xff] }
   0x9   :  { %3019 = vmatpush3.msra.mxu0 %v3303_v3  ;;  %3020 = vmatprep.mubr.msk.f32.mxu0 %vm57_vm1, %v21_v4  ;;  %v2642_v23 = vld [vmem:[%s6115_s0 + $0x168] sm:$0xff]  ;;  %v2643_v25 = vld [vmem:[%s6115_s0 + $0x170] sm:$0xff]  ;;  %v32_v26 = vld [vmem:[%s6115_s0 + $0x58] sm:$0xff] }
   0xa   :  { %3081 = vmatpush3.msra.mxu1 %v3303_v3  ;;  %3082 = vmatprep.mubr.msk.f32.mxu1 %vm57_vm1, %v2633_v5  ;;  %v2644_v27 = vld [vmem:[%s6115_s0 + $0x178] sm:$0xff]  ;;  %v33_v28 = vld [vmem:[%s6115_s0 + $0x60] sm:$0xff]  ;;  %v34_v30 = vld [vmem:[%s6115_s0 + $0x68] sm:$0xff] }
   0xb   :  { %3021 = vmatmul.mubr.msk.f32.vlgmr.msra.gmra.mxu0 %vm57_vm1, %v22_v6  ;;  %3083 = vmatmul.mubr.msk.f32.vlgmr.msra.gmra.mxu1 %vm57_vm1, %v2634_v7  ;;  %v2645_v29 = vld [vmem:[%s6115_s0 + $0x180] sm:$0xff]  ;;  %v2646_v31 = vld [vmem:[%s6115_s0 + $0x188] sm:$0xff]  ;;  %v35_v32 = vld [vmem:[%s6115_s0 + $0x70] sm:$0xff] }
   0xc   :  { %3136 = vmatprep.subr.msk.mxu0 %vm166_vm0, %v20_v0  ;;  %3198 = vmatprep.subr.msk.mxu1 %vm166_vm0, %v20_v0  ;;  %v2647_v33 = vld [vmem:[%s6115_s0 + $0x190] sm:$0xff]  ;;  %v36_v34 = vld [vmem:[%s6115_s0 + $0x78] sm:$0xff]  ;;  %v37_v36 = vld [vmem:[%s6115_s0 + $0x80] sm:$0xff] }
   0xd   :  { %3137 = vmatpush3.msk.msra.mxu0 %vm166_vm0, %v20_v0  ;;  %3199 = vmatpush3.msk.msra.mxu1 %vm166_vm0, %v20_v0  ;;  %v2648_v35 = vld [vmem:[%s6115_s0 + $0x198] sm:$0xff]  ;;  %v2649_v37 = vld [vmem:[%s6115_s0 + $0x1a0] sm:$0xff]  ;;  %v38_v38 = vld [vmem:[%s6115_s0 + $0x88] sm:$0xff] }
   0xe   :  { %3023 = vmatprep.mubr.msk.f32.mxu0 %vm57_vm1, %v23_v8  ;;  %3085 = vmatprep.mubr.msk.f32.mxu1 %vm57_vm1, %v2635_v9  ;;  %v2650_v39 = vld [vmem:[%s6115_s0 + $0x1a8] sm:$0xff]  ;;  %v39_v40 = vld [vmem:[%s6115_s0 + $0x90] sm:$0xff]  ;;  %v40_v42 = vld [vmem:[%s6115_s0 + $0x98] sm:$0xff] }
   0xf   :  { %3024 = vmatmul.mubr.msk.f32.gmra.mxu0 %vm57_vm1, %v24_v10  ;;  %3086 = vmatmul.mubr.msk.f32.gmra.mxu1 %vm57_vm1, %v2636_v11  ;;  %v2651_v41 = vld [vmem:[%s6115_s0 + $0x1b0] sm:$0xff]  ;;  %v2652_v43 = vld [vmem:[%s6115_s0 + $0x1b8] sm:$0xff]  ;;  %v41_v44 = vld [vmem:[%s6115_s0 + $0xa0] sm:$0xff] }
  0x10   :  { %3026 = vmatprep.mubr.msk.f32.mxu0 %vm57_vm1, %v25_v12  ;;  %3088 = vmatprep.mubr.msk.f32.mxu1 %vm57_vm1, %v2637_v13  ;;  %v2653_v45 = vld [vmem:[%s6115_s0 + $0x1c0] sm:$0xff]  ;;  %v42_v46 = vld [vmem:[%s6115_s0 + $0xa8] sm:$0xff]  ;;  %v43_v48 = vld [vmem:[%s6115_s0 + $0xb0] sm:$0xff] }
  0x11   :  { %3138 = vmatprep.subr.mxu0 %v19_v1  ;;  %3200 = vmatprep.subr.mxu1 %v19_v1  ;;  %v2654_v47 = vld [vmem:[%s6115_s0 + $0x1c8] sm:$0xff]  ;;  %v2655_v49 = vld [vmem:[%s6115_s0 + $0x1d0] sm:$0xff]  ;;  %v44_v50 = vld [vmem:[%s6115_s0 + $0xb8] sm:$0xff] }
  0x12   :  { %3139 = vmatpush3.msra.mxu0 %v19_v1  ;;  %3201 = vmatpush3.msra.mxu1 %v19_v1  ;;  %v2656_v51 = vld [vmem:[%s6115_s0 + $0x1d8] sm:$0xff]  ;;  %v45_v52 = vld [vmem:[%s6115_s0 + $0xc0] sm:$0xff]  ;;  %v46_v54 = vld [vmem:[%s6115_s0 + $0xc8] sm:$0xff] }
  0x13   :  { %3027 = vmatmul.mubr.msk.f32.gmra.mxu0 %vm57_vm1, %v26_v14  ;;  %3089 = vmatmul.mubr.msk.f32.gmra.mxu1 %vm57_vm1, %v2638_v15  ;;  %v2657_v53 = vld [vmem:[%s6115_s0 + $0x1e0] sm:$0xff]  ;;  %v2658_v55 = vld [vmem:[%s6115_s0 + $0x1e8] sm:$0xff]  ;;  %v47_v56 = vld [vmem:[%s6115_s0 + $0xd0] sm:$0xff] }
  0x14   :  { %3029 = vmatprep.mubr.msk.f32.mxu0 %vm57_vm1, %v27_v16  ;;  %3091 = vmatprep.mubr.msk.f32.mxu1 %vm57_vm1, %v2639_v17  ;;  %v2659_v57 = vld [vmem:[%s6115_s0 + $0x1f0] sm:$0xff]  ;;  %v48_v58 = vld [vmem:[%s6115_s0 + $0xd8] sm:$0xff]  ;;  %v49_v60 = vld [vmem:[%s6115_s0 + $0xe0] sm:$0xff] }
  0x15   :  { %3140 = vmatprep.subr.mxu0 %v18_v2  ;;  %3202 = vmatprep.subr.mxu1 %v18_v2  ;;  %v2660_v59 = vld [vmem:[%s6115_s0 + $0x1f8] sm:$0xff]  ;;  %v2661_v61 = vld [vmem:[%s6115_s0 + $0x200] sm:$0xff]  ;;  %v50_v62 = vld [vmem:[%s6115_s0 + $0xe8] sm:$0xff] }
  0x16   :  { %3141 = vmatpush3.msra.mxu0 %v18_v2  ;;  %3203 = vmatpush3.msra.mxu1 %v18_v2  ;;  %v2662_v63 = vld [vmem:[%s6115_s0 + $0x208] sm:$0xff]  ;;  %v51_v0 = vld [vmem:[%s6115_s0 + $0xf0] sm:$0xff]  ;;  %v52_v2 = vld [vmem:[%s6115_s0 + $0xf8] sm:$0xff] }
  0x17   :  { %3030 = vmatmul.mubr.msk.f32.gmra.mxu0 %vm57_vm1, %v28_v18  ;;  %3092 = vmatmul.mubr.msk.f32.gmra.mxu1 %vm57_vm1, %v2640_v19  ;;  %v2663_v1 = vld [vmem:[%s6115_s0 + $0x210] sm:$0xff]  ;;  %v53_v4 = vld [vmem:[%s6115_s0 + $0x100] sm:$0xff]  ;;  %v54_v6 = vld [vmem:[%s6115_s0 + $0x108] sm:$0xff] }
  0x18   :  { %3032 = vmatprep.mubr.msk.f32.mxu0 %vm57_vm1, %v29_v20  ;;  %3094 = vmatprep.mubr.msk.f32.mxu1 %vm57_vm1, %v2641_v21  ;;  %v2665_v5 = vld [vmem:[%s6115_s0 + $0x220] sm:$0xff]  ;;  %v2666_v7 = vld [vmem:[%s6115_s0 + $0x228] sm:$0xff]  ;;  %v55_v8 = vld [vmem:[%s6115_s0 + $0x110] sm:$0xff] }
  0x19   :  { %3142 = vmatprep.subr.mxu0 %v3303_v3  ;;  %3204 = vmatprep.subr.mxu1 %v3303_v3  ;;  %v2667_v9 = vld [vmem:[%s6115_s0 + $0x230] sm:$0xff]  ;;  %v56_v10 = vld [vmem:[%s6115_s0 + $0x118] sm:$0xff]  ;;  %v2706_v12 = vld [vmem:[%s6115_s0 + $0x240] sm:$0xff] }
  0x1a   :  { %3143 = vmatpush3.msra.mxu0 %v3303_v3  ;;  %3205 = vmatpush3.msra.mxu1 %v3303_v3  ;;  %v2664_v3 = vld [vmem:[%s6115_s0 + $0x218] sm:$0xff]  ;;  %v2779_v13 = vld [vmem:[%s6115_s0 + $0x360] sm:$0xff]  ;;  %v2707_v14 = vld [vmem:[%s6115_s0 + $0x248] sm:$0xff] }
  0x1b   :  { %3033 = vmatmul.mubr.msk.f32.gmra.mxu0 %vm57_vm1, %v30_v22  ;;  %3095 = vmatmul.mubr.msk.f32.gmra.mxu1 %vm57_vm1, %v2642_v23  ;;  %v2668_v11 = vld [vmem:[%s6115_s0 + $0x238] sm:$0xff]  ;;  %v2780_v15 = vld [vmem:[%s6115_s0 + $0x368] sm:$0xff]  ;;  %v2708_v16 = vld [vmem:[%s6115_s0 + $0x250] sm:$0xff] }
  0x1c   :  { %3035 = vmatprep.mubr.msk.f32.mxu0 %vm57_vm1, %v31_v24  ;;  %3097 = vmatprep.mubr.msk.f32.mxu1 %vm57_vm1, %v2643_v25  ;;  %v2781_v17 = vld [vmem:[%s6115_s0 + $0x370] sm:$0xff]  ;;  %v2709_v18 = vld [vmem:[%s6115_s0 + $0x258] sm:$0xff]  ;;  %v2710_v20 = vld [vmem:[%s6115_s0 + $0x260] sm:$0xff] }
  0x1d   :  { %v2782_v19 = vld [vmem:[%s6115_s0 + $0x378] sm:$0xff]  ;;  %v2783_v21 = vld [vmem:[%s6115_s0 + $0x380] sm:$0xff]  ;;  %v2711_v22 = vld [vmem:[%s6115_s0 + $0x268] sm:$0xff] }
  0x1e   :  { %v2784_v23 = vld [vmem:[%s6115_s0 + $0x388] sm:$0xff]  ;;  %v2712_v24 = vld [vmem:[%s6115_s0 + $0x270] sm:$0xff] }
  0x1f   :  { %3036 = vmatmul.mubr.msk.f32.gmra.mxu0 %vm57_vm1, %v32_v26  ;;  %3098 = vmatmul.mubr.msk.f32.gmra.mxu1 %vm57_vm1, %v2644_v27  ;;  %v2785_v25 = vld [vmem:[%s6115_s0 + $0x390] sm:$0xff]  ;;  %v2713_v26 = vld [vmem:[%s6115_s0 + $0x278] sm:$0xff] }
  0x20   :  { %3038 = vmatprep.mubr.msk.f32.mxu0 %vm57_vm1, %v33_v28  ;;  %3100 = vmatprep.mubr.msk.f32.mxu1 %vm57_vm1, %v2645_v29  ;;  %v2786_v27 = vld [vmem:[%s6115_s0 + $0x398] sm:$0xff]  ;;  %v2714_v28 = vld [vmem:[%s6115_s0 + $0x280] sm:$0xff] }
  0x21   :  { %v2787_v29 = vld [vmem:[%s6115_s0 + $0x3a0] sm:$0xff] }
  0x23   :  { %3039 = vmatmul.mubr.msk.f32.gmra.mxu0 %vm57_vm1, %v34_v30  ;;  %3101 = vmatmul.mubr.msk.f32.gmra.mxu1 %vm57_vm1, %v2646_v31  ;;  %v2715_v30 = vld [vmem:[%s6115_s0 + $0x288] sm:$0xff] }
  0x24   :  { %3041 = vmatprep.mubr.msk.f32.mxu0 %vm57_vm1, %v35_v32  ;;  %3103 = vmatprep.mubr.msk.f32.mxu1 %vm57_vm1, %v2647_v33  ;;  %v2788_v31 = vld [vmem:[%s6115_s0 + $0x3a8] sm:$0xff]  ;;  %v2716_v32 = vld [vmem:[%s6115_s0 + $0x290] sm:$0xff] }
  0x25   :  { %v2789_v33 = vld [vmem:[%s6115_s0 + $0x3b0] sm:$0xff] }
  0x27   :  { %3042 = vmatmul.mubr.msk.f32.gmra.mxu0 %vm57_vm1, %v36_v34  ;;  %3104 = vmatmul.mubr.msk.f32.gmra.mxu1 %vm57_vm1, %v2648_v35  ;;  %v2717_v34 = vld [vmem:[%s6115_s0 + $0x298] sm:$0xff] }
  0x28   :  { %3044 = vmatprep.mubr.msk.f32.mxu0 %vm57_vm1, %v37_v36  ;;  %3106 = vmatprep.mubr.msk.f32.mxu1 %vm57_vm1, %v2649_v37  ;;  %v2790_v35 = vld [vmem:[%s6115_s0 + $0x3b8] sm:$0xff]  ;;  %v2718_v36 = vld [vmem:[%s6115_s0 + $0x2a0] sm:$0xff] }
  0x29   :  { %v2791_v37 = vld [vmem:[%s6115_s0 + $0x3c0] sm:$0xff] }
  0x2b   :  { %3045 = vmatmul.mubr.msk.f32.gmra.mxu0 %vm57_vm1, %v38_v38  ;;  %3107 = vmatmul.mubr.msk.f32.gmra.mxu1 %vm57_vm1, %v2650_v39  ;;  %v2719_v38 = vld [vmem:[%s6115_s0 + $0x2a8] sm:$0xff] }
  0x2c   :  { %3047 = vmatprep.mubr.msk.f32.mxu0 %vm57_vm1, %v39_v40  ;;  %3109 = vmatprep.mubr.msk.f32.mxu1 %vm57_vm1, %v2651_v41  ;;  %v2792_v39 = vld [vmem:[%s6115_s0 + $0x3c8] sm:$0xff]  ;;  %v2720_v40 = vld [vmem:[%s6115_s0 + $0x2b0] sm:$0xff] }
  0x2d   :  { %v2793_v41 = vld [vmem:[%s6115_s0 + $0x3d0] sm:$0xff] }
  0x2f   :  { %3048 = vmatmul.mubr.msk.f32.gmra.mxu0 %vm57_vm1, %v40_v42  ;;  %3110 = vmatmul.mubr.msk.f32.gmra.mxu1 %vm57_vm1, %v2652_v43  ;;  %v2721_v42 = vld [vmem:[%s6115_s0 + $0x2b8] sm:$0xff] }
  0x30   :  { %3050 = vmatprep.mubr.msk.f32.mxu0 %vm57_vm1, %v41_v44  ;;  %3112 = vmatprep.mubr.msk.f32.mxu1 %vm57_vm1, %v2653_v45  ;;  %v2794_v43 = vld [vmem:[%s6115_s0 + $0x3d8] sm:$0xff]  ;;  %v2722_v44 = vld [vmem:[%s6115_s0 + $0x2c0] sm:$0xff] }
  0x31   :  { %v2795_v45 = vld [vmem:[%s6115_s0 + $0x3e0] sm:$0xff] }
  0x33   :  { %3051 = vmatmul.mubr.msk.f32.gmra.mxu0 %vm57_vm1, %v42_v46  ;;  %3113 = vmatmul.mubr.msk.f32.gmra.mxu1 %vm57_vm1, %v2654_v47  ;;  %v2723_v46 = vld [vmem:[%s6115_s0 + $0x2c8] sm:$0xff] }
  0x34   :  { %3053 = vmatprep.mubr.msk.f32.mxu0 %vm57_vm1, %v43_v48  ;;  %3115 = vmatprep.mubr.msk.f32.mxu1 %vm57_vm1, %v2655_v49  ;;  %v2796_v47 = vld [vmem:[%s6115_s0 + $0x3e8] sm:$0xff]  ;;  %v2724_v48 = vld [vmem:[%s6115_s0 + $0x2d0] sm:$0xff] }
  0x35   :  { %v2797_v49 = vld [vmem:[%s6115_s0 + $0x3f0] sm:$0xff] }
  0x37   :  { %3054 = vmatmul.mubr.msk.f32.gmra.mxu0 %vm57_vm1, %v44_v50  ;;  %3116 = vmatmul.mubr.msk.f32.gmra.mxu1 %vm57_vm1, %v2656_v51  ;;  %v2725_v50 = vld [vmem:[%s6115_s0 + $0x2d8] sm:$0xff] }
  0x38   :  { %3056 = vmatprep.mubr.msk.f32.mxu0 %vm57_vm1, %v45_v52  ;;  %3118 = vmatprep.mubr.msk.f32.mxu1 %vm57_vm1, %v2657_v53  ;;  %v2798_v51 = vld [vmem:[%s6115_s0 + $0x3f8] sm:$0xff]  ;;  %v2726_v52 = vld [vmem:[%s6115_s0 + $0x2e0] sm:$0xff] }
  0x39   :  { %v2799_v53 = vld [vmem:[%s6115_s0 + $0x400] sm:$0xff] }
  0x3b   :  { %3057 = vmatmul.mubr.msk.f32.gmra.mxu0 %vm57_vm1, %v46_v54  ;;  %3119 = vmatmul.mubr.msk.f32.gmra.mxu1 %vm57_vm1, %v2658_v55  ;;  %v2727_v54 = vld [vmem:[%s6115_s0 + $0x2e8] sm:$0xff] }
  0x3c   :  { %3059 = vmatprep.mubr.msk.f32.mxu0 %vm57_vm1, %v47_v56  ;;  %3121 = vmatprep.mubr.msk.f32.mxu1 %vm57_vm1, %v2659_v57  ;;  %v2800_v55 = vld [vmem:[%s6115_s0 + $0x408] sm:$0xff]  ;;  %v2728_v56 = vld [vmem:[%s6115_s0 + $0x2f0] sm:$0xff] }
  0x3d   :  { %v2801_v57 = vld [vmem:[%s6115_s0 + $0x410] sm:$0xff] }
  0x3f   :  { %3060 = vmatmul.mubr.msk.f32.gmra.mxu0 %vm57_vm1, %v48_v58  ;;  %3122 = vmatmul.mubr.msk.f32.gmra.mxu1 %vm57_vm1, %v2660_v59  ;;  %v2729_v58 = vld [vmem:[%s6115_s0 + $0x2f8] sm:$0xff] }
  0x40   :  { %3062 = vmatprep.mubr.msk.f32.mxu0 %vm57_vm1, %v49_v60  ;;  %3124 = vmatprep.mubr.msk.f32.mxu1 %vm57_vm1, %v2661_v61  ;;  %v2802_v59 = vld [vmem:[%s6115_s0 + $0x418] sm:$0xff]  ;;  %v2730_v60 = vld [vmem:[%s6115_s0 + $0x300] sm:$0xff] }
  0x41   :  { %v2803_v61 = vld [vmem:[%s6115_s0 + $0x420] sm:$0xff] }
  0x43   :  { %3063 = vmatmul.mubr.msk.f32.gmra.mxu0 %vm57_vm1, %v50_v62  ;;  %3125 = vmatmul.mubr.msk.f32.gmra.mxu1 %vm57_vm1, %v2662_v63  ;;  %v2731_v62 = vld [vmem:[%s6115_s0 + $0x308] sm:$0xff] }
  0x44   :  { %3065 = vmatprep.mubr.msk.f32.mxu0 %vm57_vm1, %v51_v0  ;;  %3127 = vmatprep.mubr.msk.f32.mxu1 %vm57_vm1, %v2663_v1  ;;  %v2804_v63 = vld [vmem:[%s6115_s0 + $0x428] sm:$0xff]  ;;  %v2732_v0 = vld [vmem:[%s6115_s0 + $0x310] sm:$0xff] }
  0x45   :  { %v2805_v1 = vld [vmem:[%s6115_s0 + $0x430] sm:$0xff] }
  0x47   :  { %3066 = vmatmul.mubr.msk.f32.gmra.mxu0 %vm57_vm1, %v52_v2  ;;  %3128 = vmatmul.mubr.msk.f32.gmra.mxu1 %vm57_vm1, %v2664_v3  ;;  %v2733_v2 = vld [vmem:[%s6115_s0 + $0x318] sm:$0xff] }
  0x48   :  { %3068 = vmatprep.mubr.msk.f32.mxu0 %vm57_vm1, %v53_v4  ;;  %3130 = vmatprep.mubr.msk.f32.mxu1 %vm57_vm1, %v2665_v5  ;;  %v2806_v3 = vld [vmem:[%s6115_s0 + $0x438] sm:$0xff]  ;;  %v2734_v4 = vld [vmem:[%s6115_s0 + $0x320] sm:$0xff] }
  0x49   :  { %v2807_v5 = vld [vmem:[%s6115_s0 + $0x440] sm:$0xff] }
  0x4b   :  { %3069 = vmatmul.mubr.msk.f32.gmra.mxu0 %vm57_vm1, %v54_v6  ;;  %3131 = vmatmul.mubr.msk.f32.gmra.mxu1 %vm57_vm1, %v2666_v7  ;;  %v2735_v6 = vld [vmem:[%s6115_s0 + $0x328] sm:$0xff] }
  0x4c   :  { %3071 = vmatprep.mubr.msk.f32.mxu0 %vm57_vm1, %v55_v8  ;;  %3133 = vmatprep.mubr.msk.f32.mxu1 %vm57_vm1, %v2667_v9  ;;  %v2808_v7 = vld [vmem:[%s6115_s0 + $0x448] sm:$0xff]  ;;  %v2736_v8 = vld [vmem:[%s6115_s0 + $0x330] sm:$0xff] }
  0x4d   :  { %v2809_v9 = vld [vmem:[%s6115_s0 + $0x450] sm:$0xff] }
  0x4f   :  { %3072 = vmatmul.mubr.msk.f32.gmra.mxu0 %vm57_vm1, %v56_v10  ;;  %3134 = vmatmul.mubr.msk.f32.gmra.mxu1 %vm57_vm1, %v2668_v11  ;;  %v2737_v10 = vld [vmem:[%s6115_s0 + $0x338] sm:$0xff] }
  0x50   :  { %3144 = vmatprep.mubr.msk.f32.mxu0 %vm57_vm1, %v2706_v12  ;;  %3206 = vmatprep.mubr.msk.f32.mxu1 %vm57_vm1, %v2779_v13  ;;  %v2810_v11 = vld [vmem:[%s6115_s0 + $0x458] sm:$0xff]  ;;  %v2738_v12 = vld [vmem:[%s6115_s0 + $0x340] sm:$0xff] }
  0x51   :  { %v2811_v13 = vld [vmem:[%s6115_s0 + $0x460] sm:$0xff] }
  0x53   :  { %3145 = vmatmul.mubr.msk.f32.vlgmr.msra.gmra.mxu0 %vm57_vm1, %v2707_v14  ;;  %3207 = vmatmul.mubr.msk.f32.vlgmr.msra.gmra.mxu1 %vm57_vm1, %v2780_v15  ;;  %v2739_v14 = vld [vmem:[%s6115_s0 + $0x348] sm:$0xff] }
  0x54   :  { %3147 = vmatprep.mubr.msk.f32.mxu0 %vm57_vm1, %v2708_v16  ;;  %3209 = vmatprep.mubr.msk.f32.mxu1 %vm57_vm1, %v2781_v17  ;;  %v2812_v15 = vld [vmem:[%s6115_s0 + $0x468] sm:$0xff]  ;;  %v2740_v16 = vld [vmem:[%s6115_s0 + $0x350] sm:$0xff] }
  0x55   :  { %v2813_v17 = vld [vmem:[%s6115_s0 + $0x470] sm:$0xff] }
  0x57   :  { %3148 = vmatmul.mubr.msk.f32.gmra.mxu0 %vm57_vm1, %v2709_v18  ;;  %3210 = vmatmul.mubr.msk.f32.gmra.mxu1 %vm57_vm1, %v2782_v19  ;;  %v2741_v18 = vld [vmem:[%s6115_s0 + $0x358] sm:$0xff] }
  0x58   :  { %3150 = vmatprep.mubr.msk.f32.mxu0 %vm57_vm1, %v2710_v20  ;;  %3212 = vmatprep.mubr.msk.f32.mxu1 %vm57_vm1, %v2783_v21  ;;  %v2814_v19 = vld [vmem:[%s6115_s0 + $0x478] sm:$0xff] }
  0x5b   :  { %3151 = vmatmul.mubr.msk.f32.gmra.mxu0 %vm57_vm1, %v2711_v22  ;;  %3213 = vmatmul.mubr.msk.f32.gmra.mxu1 %vm57_vm1, %v2784_v23 }
  0x5c   :  { %3153 = vmatprep.mubr.msk.f32.mxu0 %vm57_vm1, %v2712_v24  ;;  %3215 = vmatprep.mubr.msk.f32.mxu1 %vm57_vm1, %v2785_v25 }
  0x5f   :  { %3154 = vmatmul.mubr.msk.f32.gmra.mxu0 %vm57_vm1, %v2713_v26  ;;  %3216 = vmatmul.mubr.msk.f32.gmra.mxu1 %vm57_vm1, %v2786_v27 }
  0x60   :  { %3156 = vmatprep.mubr.msk.f32.mxu0 %vm57_vm1, %v2714_v28  ;;  %3218 = vmatprep.mubr.msk.f32.mxu1 %vm57_vm1, %v2787_v29 }
  0x63   :  { %3157 = vmatmul.mubr.msk.f32.gmra.mxu0 %vm57_vm1, %v2715_v30  ;;  %3219 = vmatmul.mubr.msk.f32.gmra.mxu1 %vm57_vm1, %v2788_v31 }
  0x64   :  { %3159 = vmatprep.mubr.msk.f32.mxu0 %vm57_vm1, %v2716_v32  ;;  %3221 = vmatprep.mubr.msk.f32.mxu1 %vm57_vm1, %v2789_v33 }
  0x67   :  { %3160 = vmatmul.mubr.msk.f32.gmra.mxu0 %vm57_vm1, %v2717_v34  ;;  %3222 = vmatmul.mubr.msk.f32.gmra.mxu1 %vm57_vm1, %v2790_v35 }
  0x68   :  { %3162 = vmatprep.mubr.msk.f32.mxu0 %vm57_vm1, %v2718_v36  ;;  %3224 = vmatprep.mubr.msk.f32.mxu1 %vm57_vm1, %v2791_v37 }
  0x6b   :  { %3163 = vmatmul.mubr.msk.f32.gmra.mxu0 %vm57_vm1, %v2719_v38  ;;  %3225 = vmatmul.mubr.msk.f32.gmra.mxu1 %vm57_vm1, %v2792_v39 }
  0x6c   :  { %3165 = vmatprep.mubr.msk.f32.mxu0 %vm57_vm1, %v2720_v40  ;;  %3227 = vmatprep.mubr.msk.f32.mxu1 %vm57_vm1, %v2793_v41 }
  0x6f   :  { %3166 = vmatmul.mubr.msk.f32.gmra.mxu0 %vm57_vm1, %v2721_v42  ;;  %3228 = vmatmul.mubr.msk.f32.gmra.mxu1 %vm57_vm1, %v2794_v43 }
  0x70   :  { %3168 = vmatprep.mubr.msk.f32.mxu0 %vm57_vm1, %v2722_v44  ;;  %3230 = vmatprep.mubr.msk.f32.mxu1 %vm57_vm1, %v2795_v45 }
  0x73   :  { %3169 = vmatmul.mubr.msk.f32.gmra.mxu0 %vm57_vm1, %v2723_v46  ;;  %3231 = vmatmul.mubr.msk.f32.gmra.mxu1 %vm57_vm1, %v2796_v47 }
  0x74   :  { %3171 = vmatprep.mubr.msk.f32.mxu0 %vm57_vm1, %v2724_v48  ;;  %3233 = vmatprep.mubr.msk.f32.mxu1 %vm57_vm1, %v2797_v49 }
  0x77   :  { %3172 = vmatmul.mubr.msk.f32.gmra.mxu0 %vm57_vm1, %v2725_v50  ;;  %3234 = vmatmul.mubr.msk.f32.gmra.mxu1 %vm57_vm1, %v2798_v51 }
  0x78   :  { %3174 = vmatprep.mubr.msk.f32.mxu0 %vm57_vm1, %v2726_v52  ;;  %3236 = vmatprep.mubr.msk.f32.mxu1 %vm57_vm1, %v2799_v53 }
  0x7b   :  { %3175 = vmatmul.mubr.msk.f32.gmra.mxu0 %vm57_vm1, %v2727_v54  ;;  %3237 = vmatmul.mubr.msk.f32.gmra.mxu1 %vm57_vm1, %v2800_v55 }
  0x7c   :  { %3177 = vmatprep.mubr.msk.f32.mxu0 %vm57_vm1, %v2728_v56  ;;  %3239 = vmatprep.mubr.msk.f32.mxu1 %vm57_vm1, %v2801_v57 }
  0x7f   :  { %3178 = vmatmul.mubr.msk.f32.gmra.mxu0 %vm57_vm1, %v2729_v58  ;;  %3240 = vmatmul.mubr.msk.f32.gmra.mxu1 %vm57_vm1, %v2802_v59 }
  0x80   :  { %3180 = vmatprep.mubr.msk.f32.mxu0 %vm57_vm1, %v2730_v60  ;;  %3242 = vmatprep.mubr.msk.f32.mxu1 %vm57_vm1, %v2803_v61 }
  0x83   :  { %3181 = vmatmul.mubr.msk.f32.gmra.mxu0 %vm57_vm1, %v2731_v62  ;;  %3243 = vmatmul.mubr.msk.f32.gmra.mxu1 %vm57_vm1, %v2804_v63 }
  0x84   :  { %3183 = vmatprep.mubr.msk.f32.mxu0 %vm57_vm1, %v2732_v0  ;;  %3245 = vmatprep.mubr.msk.f32.mxu1 %vm57_vm1, %v2805_v1 }
  0x87   :  { %3184 = vmatmul.mubr.msk.f32.gmra.mxu0 %vm57_vm1, %v2733_v2  ;;  %3246 = vmatmul.mubr.msk.f32.gmra.mxu1 %vm57_vm1, %v2806_v3 }
  0x88   :  { %3186 = vmatprep.mubr.msk.f32.mxu0 %vm57_vm1, %v2734_v4  ;;  %3248 = vmatprep.mubr.msk.f32.mxu1 %vm57_vm1, %v2807_v5 }
  0x8b   :  { %3187 = vmatmul.mubr.msk.f32.gmra.mxu0 %vm57_vm1, %v2735_v6  ;;  %3249 = vmatmul.mubr.msk.f32.gmra.mxu1 %vm57_vm1, %v2808_v7 }
  0x8c   :  { %3189 = vmatprep.mubr.msk.f32.mxu0 %vm57_vm1, %v2736_v8  ;;  %3251 = vmatprep.mubr.msk.f32.mxu1 %vm57_vm1, %v2809_v9 }
  0x8f   :  { %3190 = vmatmul.mubr.msk.f32.gmra.mxu0 %vm57_vm1, %v2737_v10  ;;  %3252 = vmatmul.mubr.msk.f32.gmra.mxu1 %vm57_vm1, %v2810_v11 }
  0x90   :  { %3192 = vmatprep.mubr.msk.f32.mxu0 %vm57_vm1, %v2738_v12  ;;  %3254 = vmatprep.mubr.msk.f32.mxu1 %vm57_vm1, %v2811_v13 }
  0x93   :  { %3193 = vmatmul.mubr.msk.f32.gmra.mxu0 %vm57_vm1, %v2739_v14  ;;  %3255 = vmatmul.mubr.msk.f32.gmra.mxu1 %vm57_vm1, %v2812_v15 }
  0x94   :  { %3195 = vmatprep.mubr.msk.f32.mxu0 %vm57_vm1, %v2740_v16  ;;  %3257 = vmatprep.mubr.msk.f32.mxu1 %vm57_vm1, %v2813_v17 }
  0x97   :  { %3196 = vmatmul.mubr.msk.f32.gmra.mxu0 %vm57_vm1, %v2741_v18  ;;  %3258 = vmatmul.mubr.msk.f32.gmra.mxu1 %vm57_vm1, %v2814_v19 }
  0xcb   :  { %v3893_v20 = vpop.f32.mrf.mxu0  ;;  %v3895_v21 = vpop.f32.mrf.mxu1 }
  0xcc   :  { %6334 = vst [vmem:[#allocation2_spill] sm:$0xff] %v3893_v20  ;;  %6335 = vst [vmem:[#allocation3_spill] sm:$0xff] %v3895_v21  ;;  %v1694_v58 = vmul.f32 %v3893_v20, %v3893_v20  ;;  %v1730_v59 = vmul.f32 %v3895_v21, %v3895_v21  ;;  %v3995_v6 = vadd.f32 %v3895_v21, %v3893_v20 }
  0xcd   :  { %v3897_v22 = vpop.f32.mrf.mxu0  ;;  %v3899_v23 = vpop.f32.mrf.mxu1 }
  0xce   :  { %6336 = vst [vmem:[#allocation4_spill] sm:$0xff] %v3897_v22  ;;  %6337 = vst [vmem:[#allocation5_spill] sm:$0xff] %v3899_v23  ;;  %v1693_v62 = vmul.f32 %v3897_v22, %v3897_v22  ;;  %v1729_v63 = vmul.f32 %v3899_v23, %v3899_v23  ;;  %v3997_v7 = vadd.f32 %v1730_v59, %v1694_v58 }
  0xcf   :  { %v3901_v24 = vpop.f32.mrf.mxu0  ;;  %v3903_v25 = vpop.f32.mrf.mxu1  ;;  %v4005_v10 = vadd.f32 %v3899_v23, %v3897_v22 }
  0xd0   :  { %6338 = vst [vmem:[#allocation6_spill] sm:$0xff] %v3901_v24  ;;  %6339 = vst [vmem:[#allocation7_spill] sm:$0xff] %v3903_v25  ;;  %v1696_v2 = vmul.f32 %v3901_v24, %v3901_v24  ;;  %v1732_v3 = vmul.f32 %v3903_v25, %v3903_v25  ;;  %v4007_v11 = vadd.f32 %v1729_v63, %v1693_v62 }
  0xd1   :  { %v3905_v26 = vpop.f32.mrf.mxu0  ;;  %v3907_v27 = vpop.f32.mrf.mxu1  ;;  %v4027_v58 = vadd.f32 %v3903_v25, %v3901_v24 }
  0xd2   :  { %6340 = vst [vmem:[#allocation8_spill] sm:$0xff] %v3905_v26  ;;  %6341 = vst [vmem:[#allocation9_spill] sm:$0xff] %v3907_v27  ;;  %v1695_v4 = vmul.f32 %v3905_v26, %v3905_v26  ;;  %v1731_v5 = vmul.f32 %v3907_v27, %v3907_v27  ;;  %v4029_v59 = vadd.f32 %v1732_v3, %v1696_v2 }
  0xd3   :  { %v3909_v28 = vpop.f32.mrf.mxu0  ;;  %v3911_v29 = vpop.f32.mrf.mxu1  ;;  %v4033_v62 = vadd.f32 %v3907_v27, %v3905_v26 }
  0xd4   :  { %6342 = vst [vmem:[#allocation10_spill] sm:$0xff] %v3909_v28  ;;  %6343 = vst [vmem:[#allocation11_spill] sm:$0xff] %v3911_v29  ;;  %v1698_v12 = vmul.f32 %v3909_v28, %v3909_v28  ;;  %v1734_v13 = vmul.f32 %v3911_v29, %v3911_v29  ;;  %v4035_v63 = vadd.f32 %v1731_v5, %v1695_v4 }
  0xd5   :  { %v3913_v30 = vpop.f32.mrf.mxu0  ;;  %v3915_v31 = vpop.f32.mrf.mxu1  ;;  %v4051_v4 = vadd.f32 %v3911_v29, %v3909_v28 }
  0xd6   :  { %6344 = vst [vmem:[#allocation12_spill] sm:$0xff] %v3913_v30  ;;  %6345 = vst [vmem:[#allocation13_spill] sm:$0xff] %v3915_v31  ;;  %v1697_v14 = vmul.f32 %v3913_v30, %v3913_v30  ;;  %v1733_v15 = vmul.f32 %v3915_v31, %v3915_v31  ;;  %v4053_v5 = vadd.f32 %v1734_v13, %v1698_v12 }
  0xd7   :  { %v3917_v32 = vpop.f32.mrf.mxu0  ;;  %v3919_v33 = vpop.f32.mrf.mxu1  ;;  %6380 = vst [vmem:[#allocation48_spill] sm:$0xff] %v4035_v63  ;;  %v4061_v26 = vadd.f32 %v3915_v31, %v3913_v30 }
  0xd8   :  { %6346 = vst [vmem:[#allocation14_spill] sm:$0xff] %v3917_v32  ;;  %6347 = vst [vmem:[#allocation15_spill] sm:$0xff] %v3919_v33  ;;  %v1700_v16 = vmul.f32 %v3917_v32, %v3917_v32  ;;  %v1736_v17 = vmul.f32 %v3919_v33, %v3919_v33  ;;  %v4063_v22 = vadd.f32 %v1733_v15, %v1697_v14 }
  0xd9   :  { %v3921_v34 = vpop.f32.mrf.mxu0  ;;  %v3923_v35 = vpop.f32.mrf.mxu1  ;;  %6383 = vst [vmem:[#allocation51_spill] sm:$0xff] %v4053_v5  ;;  %v4067_v63 = vadd.f32 %v3919_v33, %v3917_v32 }
  0xda   :  { %6348 = vst [vmem:[#allocation16_spill] sm:$0xff] %v3921_v34  ;;  %6349 = vst [vmem:[#allocation17_spill] sm:$0xff] %v3923_v35  ;;  %v1699_v21 = vmul.f32 %v3921_v34, %v3921_v34  ;;  %v1735_v23 = vmul.f32 %v3923_v35, %v3923_v35  ;;  %v4069_v29 = vadd.f32 %v1736_v17, %v1700_v16 }
  0xdb   :  { %v3925_v36 = vpop.f32.mrf.mxu0  ;;  %v3927_v37 = vpop.f32.mrf.mxu1  ;;  %6384 = vst [vmem:[#allocation52_spill] sm:$0xff] %v4067_v63  ;;  %v4085_v16 = vadd.f32 %v3923_v35, %v3921_v34 }
  0xdc   :  { %6350 = vst [vmem:[#allocation18_spill] sm:$0xff] %v3925_v36  ;;  %6351 = vst [vmem:[#allocation19_spill] sm:$0xff] %v3927_v37  ;;  %v1702_v20 = vmul.f32 %v3925_v36, %v3925_v36  ;;  %v1738_v25 = vmul.f32 %v3927_v37, %v3927_v37  ;;  %v4087_v17 = vadd.f32 %v1735_v23, %v1699_v21 }
  0xdd   :  { %v3929_v38 = vpop.f32.mrf.mxu0  ;;  %v3931_v39 = vpop.f32.mrf.mxu1  ;;  %6385 = vst [vmem:[#allocation53_spill] sm:$0xff] %v4069_v29  ;;  %v4091_v33 = vadd.f32 %v3927_v37, %v3925_v36 }
  0xde   :  { %6352 = vst [vmem:[#allocation20_spill] sm:$0xff] %v3929_v38  ;;  %6353 = vst [vmem:[#allocation21_spill] sm:$0xff] %v3931_v39  ;;  %v1701_v27 = vmul.f32 %v3929_v38, %v3929_v38  ;;  %v1737_v24 = vmul.f32 %v3931_v39, %v3931_v39  ;;  %v4093_v31 = vadd.f32 %v1738_v25, %v1702_v20 }
  0xdf   :  { %v3933_v40 = vpop.f32.mrf.mxu0  ;;  %v3935_v41 = vpop.f32.mrf.mxu1  ;;  %v4101_v29 = vadd.f32 %v3931_v39, %v3929_v38 }
  0xe0   :  { %6354 = vst [vmem:[#allocation22_spill] sm:$0xff] %v3933_v40  ;;  %6355 = vst [vmem:[#allocation23_spill] sm:$0xff] %v3935_v41  ;;  %v1704_v28 = vmul.f32 %v3933_v40, %v3933_v40  ;;  %v1740_v5 = vmul.f32 %v3935_v41, %v3935_v41  ;;  %v4103_v63 = vadd.f32 %v1737_v24, %v1701_v27 }
  0xe1   :  { %v3937_v42 = vpop.f32.mrf.mxu0  ;;  %v3939_v43 = vpop.f32.mrf.mxu1  ;;  %6388 = vst [vmem:[#allocation56_spill] sm:$0xff] %v4093_v31  ;;  %6391 = vst [vmem:[#allocation59_spill] sm:$0xff] %v4101_v29  ;;  %v4123_v35 = vadd.f32 %v3935_v41, %v3933_v40 }
  0xe2   :  { %6356 = vst [vmem:[#allocation24_spill] sm:$0xff] %v3937_v42  ;;  %6357 = vst [vmem:[#allocation25_spill] sm:$0xff] %v3939_v43  ;;  %v1703_v14 = vmul.f32 %v3937_v42, %v3937_v42  ;;  %v1739_v15 = vmul.f32 %v3939_v43, %v3939_v43  ;;  %v4125_v36 = vadd.f32 %v1740_v5, %v1704_v28 }
  0xe3   :  { %v3941_v44 = vpop.f32.mrf.mxu0  ;;  %v3943_v45 = vpop.f32.mrf.mxu1  ;;  %6392 = vst [vmem:[#allocation60_spill] sm:$0xff] %v4103_v63  ;;  %v4129_v38 = vadd.f32 %v3939_v43, %v3937_v42 }
  0xe4   :  { %6358 = vst [vmem:[#allocation26_spill] sm:$0xff] %v3941_v44  ;;  %6359 = vst [vmem:[#allocation27_spill] sm:$0xff] %v3943_v45  ;;  %v1706_v21 = vmul.f32 %v3941_v44, %v3941_v44  ;;  %v1742_v23 = vmul.f32 %v3943_v45, %v3943_v45  ;;  %v4131_v34 = vadd.f32 %v1739_v15, %v1703_v14 }
  0xe5   :  { %v3945_v46 = vpop.f32.mrf.mxu0  ;;  %v3947_v47 = vpop.f32.mrf.mxu1  ;;  %6395 = vst [vmem:[#allocation63_spill] sm:$0xff] %v4125_v36  ;;  %v4147_v14 = vadd.f32 %v3943_v45, %v3941_v44 }
  0xe6   :  { %6360 = vst [vmem:[#allocation28_spill] sm:$0xff] %v3945_v46  ;;  %6361 = vst [vmem:[#allocation29_spill] sm:$0xff] %v3947_v47  ;;  %v1705_v20 = vmul.f32 %v3945_v46, %v3945_v46  ;;  %v1741_v25 = vmul.f32 %v3947_v47, %v3947_v47  ;;  %v4149_v15 = vadd.f32 %v1742_v23, %v1706_v21 }
  0xe7   :  { %v3949_v48 = vpop.f32.mrf.mxu0  ;;  %v3951_v49 = vpop.f32.mrf.mxu1  ;;  %6396 = vst [vmem:[#allocation64_spill] sm:$0xff] %v4131_v34  ;;  %v4157_v42 = vadd.f32 %v3947_v47, %v3945_v46 }
  0xe8   :  { %6362 = vst [vmem:[#allocation30_spill] sm:$0xff] %v3949_v48  ;;  %6363 = vst [vmem:[#allocation31_spill] sm:$0xff] %v3951_v49  ;;  %v1708_v37 = vmul.f32 %v3949_v48, %v3949_v48  ;;  %v1744_v39 = vmul.f32 %v3951_v49, %v3951_v49  ;;  %v4159_v34 = vadd.f32 %v1741_v25, %v1705_v20 }
  0xe9   :  { %v3953_v50 = vpop.f32.mrf.mxu0  ;;  %v3955_v51 = vpop.f32.mrf.mxu1  ;;  %6399 = vst [vmem:[#allocation67_spill] sm:$0xff] %v4149_v15  ;;  %v4163_v36 = vadd.f32 %v3951_v49, %v3949_v48 }
  0xea   :  { %6364 = vst [vmem:[#allocation32_spill] sm:$0xff] %v3953_v50  ;;  %6365 = vst [vmem:[#allocation33_spill] sm:$0xff] %v3955_v51  ;;  %v1707_v63 = vmul.f32 %v3953_v50, %v3953_v50  ;;  %v1743_v31 = vmul.f32 %v3955_v51, %v3955_v51  ;;  %v4165_v45 = vadd.f32 %v1744_v39, %v1708_v37 }
  0xeb   :  { %v3957_v52 = vpop.f32.mrf.mxu0  ;;  %v3959_v53 = vpop.f32.mrf.mxu1  ;;  %6400 = vst [vmem:[#allocation68_spill] sm:$0xff] %v4163_v36  ;;  %v4181_v37 = vadd.f32 %v3955_v51, %v3953_v50 }
  0xec   :  { %6366 = vst [vmem:[#allocation34_spill] sm:$0xff] %v3957_v52  ;;  %6367 = vst [vmem:[#allocation35_spill] sm:$0xff] %v3959_v53  ;;  %v1710_v29 = vmul.f32 %v3957_v52, %v3957_v52  ;;  %v1746_v41 = vmul.f32 %v3959_v53, %v3959_v53  ;;  %v4183_v39 = vadd.f32 %v1743_v31, %v1707_v63 }
  0xed   :  { %v3961_v54 = vpop.f32.mrf.mxu0  ;;  %v3963_v55 = vpop.f32.mrf.mxu1  ;;  %6401 = vst [vmem:[#allocation69_spill] sm:$0xff] %v4165_v45  ;;  %v4187_v49 = vadd.f32 %v3959_v53, %v3957_v52 }
  0xee   :  { %6368 = vst [vmem:[#allocation36_spill] sm:$0xff] %v3961_v54  ;;  %6369 = vst [vmem:[#allocation37_spill] sm:$0xff] %v3963_v55  ;;  %v1709_v43 = vmul.f32 %v3961_v54, %v3961_v54  ;;  %v1745_v40 = vmul.f32 %v3963_v55, %v3963_v55  ;;  %v4189_v47 = vadd.f32 %v1746_v41, %v1710_v29 }
  0xef   :  { %v3965_v56 = vpop.f32.mrf.mxu0  ;;  %v3967_v57 = vpop.f32.mrf.mxu1  ;;  %v4197_v45 = vadd.f32 %v3963_v55, %v3961_v54 }
  0xf0   :  { %6370 = vst [vmem:[#allocation38_spill] sm:$0xff] %v3965_v56  ;;  %6371 = vst [vmem:[#allocation39_spill] sm:$0xff] %v3967_v57  ;;  %v1712_v44 = vmul.f32 %v3965_v56, %v3965_v56  ;;  %v1748_v15 = vmul.f32 %v3967_v57, %v3967_v57  ;;  %v4199_v36 = vadd.f32 %v1745_v40, %v1709_v43 }
  0xf1   :  { %v3973_v60 = vpop.f32.mrf.mxu0  ;;  %v3975_v61 = vpop.f32.mrf.mxu1  ;;  %6404 = vst [vmem:[#allocation72_spill] sm:$0xff] %v4189_v47  ;;  %6407 = vst [vmem:[#allocation75_spill] sm:$0xff] %v4197_v45  ;;  %v4219_v51 = vadd.f32 %v3967_v57, %v3965_v56 }
  0xf2   :  { %6372 = vst [vmem:[#allocation40_spill] sm:$0xff] %v3973_v60  ;;  %6373 = vst [vmem:[#allocation41_spill] sm:$0xff] %v3975_v61  ;;  %v1711_v20 = vmul.f32 %v3973_v60, %v3973_v60  ;;  %v1747_v25 = vmul.f32 %v3975_v61, %v3975_v61  ;;  %v4221_v52 = vadd.f32 %v1748_v15, %v1712_v44 }
  0xf3   :  { %v3981_v0 = vpop.f32.mrf.mxu0  ;;  %v3983_v1 = vpop.f32.mrf.mxu1  ;;  %6408 = vst [vmem:[#allocation76_spill] sm:$0xff] %v4199_v36  ;;  %v4225_v54 = vadd.f32 %v3975_v61, %v3973_v60 }
  0xf4   :  { %6374 = vst [vmem:[#allocation42_spill] sm:$0xff] %v3981_v0  ;;  %6375 = vst [vmem:[#allocation43_spill] sm:$0xff] %v3983_v1  ;;  %v1714_v31 = vmul.f32 %v3981_v0, %v3981_v0  ;;  %v1750_v63 = vmul.f32 %v3983_v1, %v3983_v1  ;;  %v4227_v50 = vadd.f32 %v1747_v25, %v1711_v20 }
  0xf5   :  { %v3999_v8 = vpop.f32.mrf.mxu0  ;;  %v4001_v9 = vpop.f32.mrf.mxu1  ;;  %6411 = vst [vmem:[#allocation79_spill] sm:$0xff] %v4221_v52  ;;  %v4243_v20 = vadd.f32 %v3983_v1, %v3981_v0 }
  0xf6   :  { %6376 = vst [vmem:[#allocation44_spill] sm:$0xff] %v3999_v8  ;;  %6377 = vst [vmem:[#allocation45_spill] sm:$0xff] %v4001_v9  ;;  %v1713_v29 = vmul.f32 %v3999_v8, %v3999_v8  ;;  %v1749_v41 = vmul.f32 %v4001_v9, %v4001_v9  ;;  %v4245_v25 = vadd.f32 %v1750_v63, %v1714_v31 }
  0xf7   :  { %v4021_v18 = vpop.f32.mrf.mxu0  ;;  %v4023_v19 = vpop.f32.mrf.mxu1  ;;  %6412 = vst [vmem:[#allocation80_spill] sm:$0xff] %v4227_v50  ;;  %v4253_v60 = vadd.f32 %v4001_v9, %v3999_v8 }
  0xf8   :  { %6378 = vst [vmem:[#allocation46_spill] sm:$0xff] %v4021_v18  ;;  %6379 = vst [vmem:[#allocation47_spill] sm:$0xff] %v4023_v19  ;;  %v1716_v53 = vmul.f32 %v4021_v18, %v4021_v18  ;;  %v1752_v55 = vmul.f32 %v4023_v19, %v4023_v19  ;;  %v4255_v50 = vadd.f32 %v1749_v41, %v1713_v29 }
  0xf9   :  { %v4045_v2 = vpop.f32.mrf.mxu0  ;;  %v4047_v3 = vpop.f32.mrf.mxu1  ;;  %6415 = vst [vmem:[#allocation83_spill] sm:$0xff] %v4245_v25  ;;  %v4259_v52 = vadd.f32 %v4023_v19, %v4021_v18 }
  0xfa   :  { %6381 = vst [vmem:[#allocation49_spill] sm:$0xff] %v4045_v2  ;;  %6382 = vst [vmem:[#allocation50_spill] sm:$0xff] %v4047_v3  ;;  %v1715_v36 = vmul.f32 %v4045_v2, %v4045_v2  ;;  %v1751_v47 = vmul.f32 %v4047_v3, %v4047_v3  ;;  %v4261_v1 = vadd.f32 %v1752_v55, %v1716_v53 }
  0xfb   :  { %v4071_v12 = vpop.f32.mrf.mxu0  ;;  %v4073_v13 = vpop.f32.mrf.mxu1  ;;  %6416 = vst [vmem:[#allocation84_spill] sm:$0xff] %v4259_v52  ;;  %v4277_v53 = vadd.f32 %v4047_v3, %v4045_v2 }
  0xfc   :  { %6386 = vst [vmem:[#allocation54_spill] sm:$0xff] %v4071_v12  ;;  %6387 = vst [vmem:[#allocation55_spill] sm:$0xff] %v4073_v13  ;;  %v1718_v45 = vmul.f32 %v4071_v12, %v4071_v12  ;;  %v1754_v57 = vmul.f32 %v4073_v13, %v4073_v13  ;;  %v4279_v55 = vadd.f32 %v1751_v47, %v1715_v36 }
  0xfd   :  { %v4095_v32 = vpop.f32.mrf.mxu0  ;;  %v4097_v30 = vpop.f32.mrf.mxu1  ;;  %6417 = vst [vmem:[#allocation85_spill] sm:$0xff] %v4261_v1  ;;  %v4283_v19 = vadd.f32 %v4073_v13, %v4071_v12 }
  0xfe   :  { %6389 = vst [vmem:[#allocation57_spill] sm:$0xff] %v4095_v32  ;;  %6390 = vst [vmem:[#allocation58_spill] sm:$0xff] %v4097_v30  ;;  %v1717_v61 = vmul.f32 %v4095_v32, %v4095_v32  ;;  %v1753_v56 = vmul.f32 %v4097_v30, %v4097_v30  ;;  %v4285_v9 = vadd.f32 %v1754_v57, %v1718_v45 }
  0xff   :  { %v4117_v24 = vpop.f32.mrf.mxu0  ;;  %v4119_v27 = vpop.f32.mrf.mxu1  ;;  %v4293_v1 = vadd.f32 %v4097_v30, %v4095_v32 }
 0x100   :  { %6393 = vst [vmem:[#allocation61_spill] sm:$0xff] %v4117_v24  ;;  %6394 = vst [vmem:[#allocation62_spill] sm:$0xff] %v4119_v27  ;;  %v1720_v0 = vmul.f32 %v4117_v24, %v4117_v24  ;;  %v1756_v25 = vmul.f32 %v4119_v27, %v4119_v27  ;;  %v4295_v52 = vadd.f32 %v1753_v56, %v1717_v61 }
 0x101   :  { %v4141_v28 = vpop.f32.mrf.mxu0  ;;  %v4143_v5 = vpop.f32.mrf.mxu1  ;;  %6420 = vst [vmem:[#allocation88_spill] sm:$0xff] %v4285_v9  ;;  %6423 = vst [vmem:[#allocation91_spill] sm:$0xff] %v4293_v1  ;;  %v4315_v3 = vadd.f32 %v4119_v27, %v4117_v24 }
 0x102   :  { %6397 = vst [vmem:[#allocation65_spill] sm:$0xff] %v4141_v28  ;;  %6398 = vst [vmem:[#allocation66_spill] sm:$0xff] %v4143_v5  ;;  %v1719_v29 = vmul.f32 %v4141_v28, %v4141_v28  ;;  %v1755_v41 = vmul.f32 %v4143_v5, %v4143_v5  ;;  %v4317_v12 = vadd.f32 %v1756_v25, %v1720_v0 }
 0x103   :  { %v4167_v21 = vpop.f32.mrf.mxu0  ;;  %v4169_v23 = vpop.f32.mrf.mxu1  ;;  %6424 = vst [vmem:[#allocation92_spill] sm:$0xff] %v4295_v52  ;;  %v4321_v32 = vadd.f32 %v4143_v5, %v4141_v28 }
 0x104   :  { %6402 = vst [vmem:[#allocation70_spill] sm:$0xff] %v4167_v21  ;;  %6403 = vst [vmem:[#allocation71_spill] sm:$0xff] %v4169_v23  ;;  %v1722_v36 = vmul.f32 %v4167_v21, %v4167_v21  ;;  %v1758_v47 = vmul.f32 %v4169_v23, %v4169_v23  ;;  %v4323_v2 = vadd.f32 %v1755_v41, %v1719_v29 }
 0x105   :  { %v4191_v48 = vpop.f32.mrf.mxu0  ;;  %v4193_v46 = vpop.f32.mrf.mxu1  ;;  %6427 = vst [vmem:[#allocation95_spill] sm:$0xff] %v4317_v12  ;;  %v4339_v29 = vadd.f32 %v4169_v23, %v4167_v21 }
 0x106   :  { %6405 = vst [vmem:[#allocation73_spill] sm:$0xff] %v4191_v48  ;;  %6406 = vst [vmem:[#allocation74_spill] sm:$0xff] %v4193_v46  ;;  %v1721_v45 = vmul.f32 %v4191_v48, %v4191_v48  ;;  %v1757_v57 = vmul.f32 %v4193_v46, %v4193_v46  ;;  %v4341_v41 = vadd.f32 %v1758_v47, %v1722_v36 }
 0x107   :  { %v4213_v40 = vpop.f32.mrf.mxu0  ;;  %v4215_v43 = vpop.f32.mrf.mxu1  ;;  %6428 = vst [vmem:[#allocation96_spill] sm:$0xff] %v4323_v2  ;;  %v4349_v28 = vadd.f32 %v4193_v46, %v4191_v48 }
 0x108   :  { %6409 = vst [vmem:[#allocation77_spill] sm:$0xff] %v4213_v40  ;;  %6410 = vst [vmem:[#allocation78_spill] sm:$0xff] %v4215_v43  ;;  %v1724_v13 = vmul.f32 %v4213_v40, %v4213_v40  ;;  %v1760_v30 = vmul.f32 %v4215_v43, %v4215_v43  ;;  %v4351_v2 = vadd.f32 %v1757_v57, %v1721_v45 }
 0x109   :  { %v4237_v44 = vpop.f32.mrf.mxu0  ;;  %v4239_v15 = vpop.f32.mrf.mxu1  ;;  %v4355_v12 = vadd.f32 %v4215_v43, %v4213_v40 }
 0x10a   :  { %6413 = vst [vmem:[#allocation81_spill] sm:$0xff] %v4237_v44  ;;  %6414 = vst [vmem:[#allocation82_spill] sm:$0xff] %v4239_v15  ;;  %v1723_v52 = vmul.f32 %v4237_v44, %v4237_v44  ;;  %v1759_v9 = vmul.f32 %v4239_v15, %v4239_v15  ;;  %v4357_v23 = vadd.f32 %v1760_v30, %v1724_v13 }
 0x10b   :  { %v4263_v31 = vpop.f32.mrf.mxu0  ;;  %v4265_v63 = vpop.f32.mrf.mxu1  ;;  %v4365_v21 = vadd.f32 %v4239_v15, %v4237_v44 }
 0x10c   :  { %6418 = vst [vmem:[#allocation86_spill] sm:$0xff] %v4263_v31  ;;  %6419 = vst [vmem:[#allocation87_spill] sm:$0xff] %v4265_v63  ;;  %v1726_v1 = vmul.f32 %v4263_v31, %v4263_v31  ;;  %v1762_v0 = vmul.f32 %v4265_v63, %v4265_v63  ;;  %v4373_v43 = vadd.f32 %v1759_v9, %v1723_v52 }
 0x10d   :  { %v4287_v18 = vpop.f32.mrf.mxu0  ;;  %v4289_v8 = vpop.f32.mrf.mxu1  ;;  %v4377_v30 = vadd.f32 %v4265_v63, %v4263_v31 }
 0x10e   :  { %6421 = vst [vmem:[#allocation89_spill] sm:$0xff] %v4287_v18  ;;  %6422 = vst [vmem:[#allocation90_spill] sm:$0xff] %v4289_v8  ;;  %v1725_v5 = vmul.f32 %v4287_v18, %v4287_v18  ;;  %v1761_v24 = vmul.f32 %v4289_v8, %v4289_v8  ;;  %v4379_v13 = vadd.f32 %v1762_v0, %v1726_v1 }
 0x10f   :  { %v4309_v56 = vpop.f32.mrf.mxu0  ;;  %v4311_v61 = vpop.f32.mrf.mxu1  ;;  %v4383_v15 = vadd.f32 %v4289_v8, %v4287_v18 }
 0x110   :  { %6425 = vst [vmem:[#allocation93_spill] sm:$0xff] %v4309_v56  ;;  %6426 = vst [vmem:[#allocation94_spill] sm:$0xff] %v4311_v61  ;;  %v4397_v1 = vmul.f32 %v4309_v56, %v4309_v56  ;;  %v4401_v0 = vadd.f32 %v4311_v61, %v4309_v56 }
 0x111   :  { %v4333_v25 = vpop.f32.mrf.mxu0  ;;  %v4335_v27 = vpop.f32.mrf.mxu1 }
 0x112   :  { %6429 = vst [vmem:[#allocation97_spill] sm:$0xff] %v4333_v25  ;;  %6434 = vst [vmem:[#allocation102_spill] sm:$0xff] %v4397_v1  ;;  %v4432_v18 = vadd.f32 %v4335_v27, %v4333_v25 }
 0x113   :  { %v4359_v36 = vpop.f32.mrf.mxu0  ;;  %v4361_v47 = vpop.f32.mrf.mxu1  ;;  %6435 = vst [vmem:[#allocation103_spill] sm:$0xff] %v4401_v0 }
 0x114   :  { %6430 = vst [vmem:[#allocation98_spill] sm:$0xff] %v4359_v36  ;;  %6431 = vst [vmem:[#allocation99_spill] sm:$0xff] %v4361_v47  ;;  %v1802_v46 = vmul.f32 %v4359_v36, %v4359_v36  ;;  %v1622_v45 = vadd.f32 %v4361_v47, %v4359_v36  ;;  %v1838_v57 = vmul.f32 %v4361_v47, %v4361_v47 }
 0x115   :  { %v4385_v40 = vpop.f32.mrf.mxu0  ;;  %v4387_v44 = vpop.f32.mrf.mxu1  ;;  %v4389_v36 = vadd.f32 %v1761_v24, %v1725_v5  ;;  %6442 = vst [vmem:[#allocation110_spill] sm:$0xff] %v4432_v18 }
 0x116   :  { %6432 = vst [vmem:[#allocation100_spill] sm:$0xff] %v4385_v40  ;;  %6433 = vst [vmem:[#allocation101_spill] sm:$0xff] %v4387_v44  ;;  %v1874_v48 = vadd.f32 %v1838_v57, %v1802_v46  ;;  %v1801_v52 = vmul.f32 %v4385_v40, %v4385_v40  ;;  %v1621_v9 = vadd.f32 %v4387_v44, %v4385_v40 }
 0x117   :  { %v1658_v47 = vadd.f32 %v1622_v45, %v3995_v6  ;;  %v1837_v24 = vmul.f32 %v4387_v44, %v4387_v44  ;;  %v4406_v46 = vpop.f32.mrf.mxu0  ;;  %v4408_v5 = vpop.f32.mrf.mxu1  ;;  %v4412_v57 = vmul.f32 %v4311_v61, %v4311_v61  ;;  %v4416_v40 = vmul.f32 %v4333_v25, %v4333_v25 }
 0x118   :  { %6436 = vst [vmem:[#allocation104_spill] sm:$0xff] %v4406_v46  ;;  %6437 = vst [vmem:[#allocation105_spill] sm:$0xff] %v4408_v5  ;;  %v1657_v63 = vadd.f32 %v1621_v9, %v4005_v10  ;;  %v1804_v6 = vmul.f32 %v4406_v46, %v4406_v46  ;;  %v1910_v45 = vadd.f32 %v1874_v48, %v3997_v7 }
 0x119   :  { %6438 = vst [vmem:[#allocation106_spill] sm:$0xff] %v4412_v57  ;;  %6439 = vst [vmem:[#allocation107_spill] sm:$0xff] %v4416_v40  ;;  %v1873_v44 = vadd.f32 %v1837_v24, %v1801_v52  ;;  %v1624_v8 = vadd.f32 %v4408_v5, %v4406_v46  ;;  %v1840_v56 = vmul.f32 %v4408_v5, %v4408_v5  ;;  %v4426_v61 = vpop.f32.mrf.mxu0  ;;  %v4428_v31 = vpop.f32.mrf.mxu1  ;;  %v1947_v52 = vsel %vm1945_vm2, %v1658_v47, 0.0  ;;  %v6449_v57 = vld [vmem:[#allocation48_spill] sm:$0xff] }
 0x11a   :  { %6440 = vst [vmem:[#allocation108_spill] sm:$0xff] %v4426_v61  ;;  %6441 = vst [vmem:[#allocation109_spill] sm:$0xff] %v4428_v31  ;;  %v1946_v10 = vsel %vm1945_vm2, %v1657_v63, 0.0  ;;  %v1803_v48 = vmul.f32 %v4426_v61, %v4426_v61  ;;  %v1623_v7 = vadd.f32 %v4428_v31, %v4426_v61  ;;  %v1839_v63 = vmul.f32 %v4428_v31, %v4428_v31 }
 0x11b   :  { %v1909_v9 = vadd.f32 %v1873_v44, %v4007_v11  ;;  %v1660_v24 = vadd.f32 %v1624_v8, %v4027_v58  ;;  %v1876_v5 = vadd.f32 %v1840_v56, %v1804_v6  ;;  %v4442_v46 = vpop.f32.mrf.mxu0  ;;  %v4444_v0 = vpop.f32.mrf.mxu1  ;;  %v2026_v11 = vsel %vm1945_vm2, %v1910_v45, 0.0 }
 0x11c   :  { %6443 = vst [vmem:[#allocation111_spill] sm:$0xff] %v4442_v46  ;;  %6444 = vst [vmem:[#allocation112_spill] sm:$0xff] %v4444_v0  ;;  %v1659_v25 = vadd.f32 %v1623_v7, %v4033_v62  ;;  %v1806_v18 = vmul.f32 %v4442_v46, %v4442_v46  ;;  %v1626_v47 = vadd.f32 %v4444_v0, %v4442_v46 }
 0x11d   :  { %v1948_v44 = vadd.f32 %v1947_v52, %v1946_v10  ;;  %v2025_v8 = vsel %vm1945_vm2, %v1909_v9, 0.0  ;;  %v1842_v58 = vmul.f32 %v4444_v0, %v4444_v0  ;;  %v4457_v56 = vpop.f32.mrf.mxu0  ;;  %v4459_v62 = vpop.f32.mrf.mxu1  ;;  %v1912_v6 = vadd.f32 %v1876_v5, %v4029_v59 }
 0x11e   :  { %6445 = vst [vmem:[#allocation113_spill] sm:$0xff] %v4457_v56  ;;  %6446 = vst [vmem:[#allocation114_spill] sm:$0xff] %v4459_v62  ;;  %v1951_v7 = vsel %vm1945_vm2, %v1660_v24, 0.0  ;;  %v1875_v31 = vadd.f32 %v1839_v63, %v1803_v48  ;;  %v1949_v61 = vsel %vm1945_vm2, %v1659_v25, 0.0  ;;  %v1662_v45 = vadd.f32 %v1626_v47, %v4051_v4 }
 0x11f   :  { %v1950_v46 = vadd.f32 %v1949_v61, %v1948_v44  ;;  %v1878_v10 = vadd.f32 %v1842_v58, %v1806_v18  ;;  %v1805_v52 = vmul.f32 %v4457_v56, %v4457_v56  ;;  %v4467_v9 = vpop.f32.mrf.mxu0  ;;  %v4469_v0 = vpop.f32.mrf.mxu1  ;;  %v2027_v40 = vadd.f32 %v2026_v11, %v2025_v8  ;;  %v6450_v61 = vld [vmem:[#allocation51_spill] sm:$0xff] }
 0x120   :  { %6447 = vst [vmem:[#allocation115_spill] sm:$0xff] %v4467_v9  ;;  %6448 = vst [vmem:[#allocation116_spill] sm:$0xff] %v4469_v0  ;;  %v1911_v1 = vadd.f32 %v1875_v31, %v6449_v57  ;;  %v1625_v59 = vadd.f32 %v4459_v62, %v4457_v56  ;;  %v1841_v25 = vmul.f32 %v4459_v62, %v4459_v62  ;;  %v1955_v8 = vsel %vm1945_vm2, %v1662_v45, 0.0 }
 0x121   :  { %v1914_v5 = vadd.f32 %v1878_v10, %v6450_v61  ;;  %v1952_v4 = vadd.f32 %v1951_v7, %v1950_v46  ;;  %v1808_v18 = vmul.f32 %v4467_v9, %v4467_v9  ;;  %v1628_v48 = vadd.f32 %v4469_v0, %v4467_v9  ;;  %v4481_v24 = vpop.f32.mrf.mxu0  ;;  %v4483_v63 = vpop.f32.mrf.mxu1 }
 0x122   :  { %6451 = vst [vmem:[#allocation48_spill] sm:$0xff] %v4481_v24  ;;  %6452 = vst [vmem:[#allocation51_spill] sm:$0xff] %v4483_v63  ;;  %v2028_v31 = vsel %vm1945_vm2, %v1911_v1, 0.0  ;;  %v1661_v57 = vadd.f32 %v1625_v59, %v4061_v26  ;;  %v1877_v47 = vadd.f32 %v1841_v25, %v1805_v52  ;;  %v1844_v11 = vmul.f32 %v4469_v0, %v4469_v0 }
 0x123   :  { %v2030_v46 = vsel %vm1945_vm2, %v1912_v6, 0.0  ;;  %v2029_v44 = vadd.f32 %v2028_v31, %v2027_v40  ;;  %v1807_v58 = vmul.f32 %v4481_v24, %v4481_v24  ;;  %v4493_v7 = vpop.f32.mrf.mxu0  ;;  %v4495_v10 = vpop.f32.mrf.mxu1  ;;  %v1627_v59 = vadd.f32 %v4483_v63, %v4481_v24  ;;  %v6455_v40 = vld [vmem:[#allocation52_spill] sm:$0xff]  ;;  %v6625_v24 = vld [vmem:[#allocation37_spill] sm:$0xff] }
 0x124   :  { %6453 = vst [vmem:[#allocation117_spill] sm:$0xff] %v4493_v7  ;;  %6454 = vst [vmem:[#allocation118_spill] sm:$0xff] %v4495_v10  ;;  %v1913_v1 = vadd.f32 %v1877_v47, %v4063_v22  ;;  %v1953_v26 = vsel %vm1945_vm2, %v1661_v57, 0.0  ;;  %v1880_v52 = vadd.f32 %v1844_v11, %v1808_v18  ;;  %v1664_v61 = vadd.f32 %v1628_v48, %v6455_v40 }
 0x125   :  { %v1954_v25 = vadd.f32 %v1953_v26, %v1952_v4  ;;  %v2031_v6 = vadd.f32 %v2030_v46, %v2029_v44  ;;  %v1843_v45 = vmul.f32 %v4483_v63, %v4483_v63  ;;  %v4504_v31 = vpop.f32.mrf.mxu0  ;;  %v4506_v0 = vpop.f32.mrf.mxu1  ;;  %v2034_v62 = vsel %vm1945_vm2, %v1914_v5, 0.0  ;;  %v6460_v26 = vld [vmem:[#allocation53_spill] sm:$0xff] }
 0x126   :  { %6456 = vst [vmem:[#allocation52_spill] sm:$0xff] %v4504_v31  ;;  %6457 = vst [vmem:[#allocation119_spill] sm:$0xff] %v4506_v0  ;;  %v2032_v22 = vsel %vm1945_vm2, %v1913_v1, 0.0  ;;  %v1663_v18 = vadd.f32 %v1627_v59, %v4085_v16  ;;  %v1810_v57 = vmul.f32 %v4493_v7, %v4493_v7  ;;  %v1630_v48 = vadd.f32 %v4495_v10, %v4493_v7  ;;  %v6469_v7 = vld [vmem:[#allocation60_spill] sm:$0xff] }
 0x127   :  { %v2033_v4 = vadd.f32 %v2032_v22, %v2031_v6  ;;  %v1879_v47 = vadd.f32 %v1843_v45, %v1807_v58  ;;  %v1956_v11 = vadd.f32 %v1955_v8, %v1954_v25  ;;  %v4515_v46 = vpop.f32.mrf.mxu0  ;;  %v4517_v44 = vpop.f32.mrf.mxu1  ;;  %v1916_v40 = vadd.f32 %v1880_v52, %v6460_v26 }
 0x128   :  { %6458 = vst [vmem:[#allocation120_spill] sm:$0xff] %v4515_v46  ;;  %6459 = vst [vmem:[#allocation121_spill] sm:$0xff] %v4517_v44  ;;  %v1957_v5 = vsel %vm1945_vm2, %v1663_v18, 0.0  ;;  %v1846_v16 = vmul.f32 %v4495_v10, %v4495_v10  ;;  %v1809_v1 = vmul.f32 %v4504_v31, %v4504_v31  ;;  %v1959_v58 = vsel %vm1945_vm2, %v1664_v61, 0.0 }
 0x129   :  { %v1915_v8 = vadd.f32 %v1879_v47, %v4087_v17  ;;  %v1958_v59 = vadd.f32 %v1957_v5, %v1956_v11  ;;  %v2035_v25 = vadd.f32 %v2034_v62, %v2033_v4  ;;  %v4527_v6 = vpop.f32.mrf.mxu0  ;;  %v4529_v45 = vpop.f32.mrf.mxu1  ;;  %v1666_v52 = vadd.f32 %v1630_v48, %v4091_v33  ;;  %v6465_v11 = vld [vmem:[#allocation59_spill] sm:$0xff] }
 0x12a   :  { %6461 = vst [vmem:[#allocation53_spill] sm:$0xff] %v4527_v6  ;;  %6462 = vst [vmem:[#allocation122_spill] sm:$0xff] %v4529_v45  ;;  %v1882_v22 = vadd.f32 %v1846_v16, %v1810_v57  ;;  %v1629_v18 = vadd.f32 %v4506_v0, %v4504_v31  ;;  %v1845_v26 = vmul.f32 %v4506_v0, %v4506_v0  ;;  %v2038_v33 = vsel %vm1945_vm2, %v1916_v40, 0.0  ;;  %v6466_v16 = vld [vmem:[#allocation56_spill] sm:$0xff]  ;;  %v6623_v31 = vld [vmem:[#allocation33_spill] sm:$0xff] }
 0x12b   :  { %v2036_v10 = vsel %vm1945_vm2, %v1915_v8, 0.0  ;;  %v1960_v61 = vadd.f32 %v1959_v58, %v1958_v59  ;;  %v1812_v17 = vmul.f32 %v4515_v46, %v4515_v46  ;;  %v1632_v62 = vadd.f32 %v4517_v44, %v4515_v46  ;;  %v4541_v4 = vpop.f32.mrf.mxu0  ;;  %v4543_v47 = vpop.f32.mrf.mxu1 }
 0x12c   :  { %6463 = vst [vmem:[#allocation123_spill] sm:$0xff] %v4541_v4  ;;  %6464 = vst [vmem:[#allocation124_spill] sm:$0xff] %v4543_v47  ;;  %v2037_v57 = vadd.f32 %v2036_v10, %v2035_v25  ;;  %v1665_v48 = vadd.f32 %v1629_v18, %v6465_v11  ;;  %v1881_v5 = vadd.f32 %v1845_v26, %v1809_v1 }
 0x12d   :  { %v1918_v0 = vadd.f32 %v1882_v22, %v6466_v16  ;;  %v1668_v58 = vadd.f32 %v1632_v62, %v4123_v35  ;;  %v1848_v8 = vmul.f32 %v4517_v44, %v4517_v44  ;;  %v1631_v59 = vadd.f32 %v4529_v45, %v4527_v6  ;;  %v4553_v63 = vpop.f32.mrf.mxu0  ;;  %v4555_v46 = vpop.f32.mrf.mxu1  ;;  %v6474_v44 = vld [vmem:[#allocation63_spill] sm:$0xff] }
 0x12e   :  { %6467 = vst [vmem:[#allocation59_spill] sm:$0xff] %v4553_v63  ;;  %6468 = vst [vmem:[#allocation56_spill] sm:$0xff] %v4555_v46  ;;  %v1917_v40 = vadd.f32 %v1881_v5, %v6469_v7  ;;  %v1961_v10 = vsel %vm1945_vm2, %v1665_v48, 0.0  ;;  %v2039_v25 = vadd.f32 %v2038_v33, %v2037_v57  ;;  %v1811_v1 = vmul.f32 %v4527_v6, %v4527_v6 }
 0x12f   :  { %v1963_v35 = vsel %vm1945_vm2, %v1666_v52, 0.0  ;;  %v1962_v22 = vadd.f32 %v1961_v10, %v1960_v61  ;;  %v1884_v18 = vadd.f32 %v1848_v8, %v1812_v17  ;;  %v1667_v26 = vadd.f32 %v1631_v59, %v4129_v38  ;;  %v4563_v62 = vpop.f32.mrf.mxu0  ;;  %v4565_v11 = vpop.f32.mrf.mxu1 }
 0x130   :  { %6470 = vst [vmem:[#allocation60_spill] sm:$0xff] %v4563_v62  ;;  %6471 = vst [vmem:[#allocation125_spill] sm:$0xff] %v4565_v11  ;;  %v2040_v16 = vsel %vm1945_vm2, %v1917_v40, 0.0  ;;  %v1847_v7 = vmul.f32 %v4529_v45, %v4529_v45  ;;  %v1814_v33 = vmul.f32 %v4541_v4, %v4541_v4  ;;  %v1634_v57 = vadd.f32 %v4543_v47, %v4541_v4 }
 0x131   :  { %v2042_v52 = vsel %vm1945_vm2, %v1918_v0, 0.0  ;;  %v2041_v61 = vadd.f32 %v2040_v16, %v2039_v25  ;;  %v1964_v17 = vadd.f32 %v1963_v35, %v1962_v22  ;;  %v1965_v38 = vsel %vm1945_vm2, %v1667_v26, 0.0  ;;  %v4576_v48 = vpop.f32.mrf.mxu0  ;;  %v4578_v5 = vpop.f32.mrf.mxu1  ;;  %v6477_v16 = vld [vmem:[#allocation64_spill] sm:$0xff] }
 0x132   :  { %6472 = vst [vmem:[#allocation126_spill] sm:$0xff] %v4576_v48  ;;  %6473 = vst [vmem:[#allocation127_spill] sm:$0xff] %v4578_v5  ;;  %v1967_v8 = vsel %vm1945_vm2, %v1668_v58, 0.0  ;;  %v1883_v59 = vadd.f32 %v1847_v7, %v1811_v1  ;;  %v1850_v40 = vmul.f32 %v4543_v47, %v4543_v47  ;;  %v1813_v10 = vmul.f32 %v4553_v63, %v4553_v63 }
 0x133   :  { %v1920_v45 = vadd.f32 %v1884_v18, %v6474_v44  ;;  %v1966_v0 = vadd.f32 %v1965_v38, %v1964_v17  ;;  %v2043_v25 = vadd.f32 %v2042_v52, %v2041_v61  ;;  %v1633_v35 = vadd.f32 %v4555_v46, %v4553_v63  ;;  %v4588_v22 = vpop.f32.mrf.mxu0  ;;  %v4590_v26 = vpop.f32.mrf.mxu1 }
 0x134   :  { %6475 = vst [vmem:[#allocation63_spill] sm:$0xff] %v4588_v22  ;;  %6476 = vst [vmem:[#allocation128_spill] sm:$0xff] %v4590_v26  ;;  %v1919_v58 = vadd.f32 %v1883_v59, %v6477_v16  ;;  %v1670_v1 = vadd.f32 %v1634_v57, %v4147_v14  ;;  %v1886_v7 = vadd.f32 %v1850_v40, %v1814_v33  ;;  %v6480_v14 = vld [vmem:[#allocation67_spill] sm:$0xff] }
 0x135   :  { %v1849_v47 = vmul.f32 %v4555_v46, %v4555_v46  ;;  %v1669_v4 = vadd.f32 %v1633_v35, %v4157_v42  ;;  %v1968_v44 = vadd.f32 %v1967_v8, %v1966_v0  ;;  %v1816_v18 = vmul.f32 %v4563_v62, %v4563_v62  ;;  %v4601_v61 = vpop.f32.mrf.mxu0  ;;  %v4603_v17 = vpop.f32.mrf.mxu1 }
 0x136   :  { %v1636_v52 = vadd.f32 %v4565_v11, %v4563_v62  ;;  %6478 = vst [vmem:[#allocation64_spill] sm:$0xff] %v4601_v61  ;;  %6479 = vst [vmem:[#allocation129_spill] sm:$0xff] %v4603_v17  ;;  %v2044_v38 = vsel %vm1945_vm2, %v1919_v58, 0.0  ;;  %v1922_v33 = vadd.f32 %v1886_v7, %v6480_v14  ;;  %v1852_v59 = vmul.f32 %v4565_v11, %v4565_v11  ;;  %v6483_v11 = vld [vmem:[#allocation68_spill] sm:$0xff] }
 0x137   :  { %v1885_v57 = vadd.f32 %v1849_v47, %v1813_v10  ;;  %v2046_v42 = vsel %vm1945_vm2, %v1920_v45, 0.0  ;;  %v2045_v8 = vadd.f32 %v2044_v38, %v2043_v25  ;;  %v1969_v40 = vsel %vm1945_vm2, %v1669_v4, 0.0  ;;  %v4613_v35 = vpop.f32.mrf.mxu0  ;;  %v4615_v16 = vpop.f32.mrf.mxu1 }
 0x138   :  { %v1815_v0 = vmul.f32 %v4576_v48, %v4576_v48  ;;  %6481 = vst [vmem:[#allocation67_spill] sm:$0xff] %v4613_v35  ;;  %6482 = vst [vmem:[#allocation130_spill] sm:$0xff] %v4615_v16  ;;  %v1971_v58 = vsel %vm1945_vm2, %v1670_v1, 0.0  ;;  %v1970_v47 = vadd.f32 %v1969_v40, %v1968_v44  ;;  %v1888_v10 = vadd.f32 %v1852_v59, %v1816_v18 }
 0x139   :  { %v1921_v7 = vadd.f32 %v1885_v57, %v4159_v34  ;;  %v2047_v14 = vadd.f32 %v2046_v42, %v2045_v8  ;;  %v1672_v46 = vadd.f32 %v1636_v52, %v6483_v11  ;;  %v1635_v45 = vadd.f32 %v4578_v5, %v4576_v48  ;;  %v4624_v25 = vpop.f32.mrf.mxu0  ;;  %v4626_v38 = vpop.f32.mrf.mxu1  ;;  %v6488_v8 = vld [vmem:[#allocation69_spill] sm:$0xff] }
 0x13a   :  { %v1851_v4 = vmul.f32 %v4578_v5, %v4578_v5  ;;  %6484 = vst [vmem:[#allocation68_spill] sm:$0xff] %v4624_v25  ;;  %6485 = vst [vmem:[#allocation131_spill] sm:$0xff] %v4626_v38  ;;  %v2050_v62 = vsel %vm1945_vm2, %v1922_v33, 0.0  ;;  %v1972_v34 = vadd.f32 %v1971_v58, %v1970_v47  ;;  %v1818_v44 = vmul.f32 %v4588_v22, %v4588_v22 }
 0x13b   :  { %v2048_v1 = vsel %vm1945_vm2, %v1921_v7, 0.0  ;;  %v1671_v11 = vadd.f32 %v1635_v45, %v4181_v37  ;;  %v1638_v57 = vadd.f32 %v4590_v26, %v4588_v22  ;;  %v4635_v59 = vpop.f32.mrf.mxu0  ;;  %v4637_v42 = vpop.f32.mrf.mxu1  ;;  %v1924_v40 = vadd.f32 %v1888_v10, %v6488_v8  ;;  %v6491_v8 = vld [vmem:[#allocation75_spill] sm:$0xff] }
 0x13c   :  { %v2049_v18 = vadd.f32 %v2048_v1, %v2047_v14  ;;  %v1887_v52 = vadd.f32 %v1851_v4, %v1815_v0  ;;  %6486 = vst [vmem:[#allocation132_spill] sm:$0xff] %v4635_v59  ;;  %6487 = vst [vmem:[#allocation133_spill] sm:$0xff] %v4637_v42  ;;  %v1854_v33 = vmul.f32 %v4590_v26, %v4590_v26  ;;  %v1975_v22 = vsel %vm1945_vm2, %v1672_v46, 0.0 }
 0x13d   :  { %v1817_v58 = vmul.f32 %v4601_v61, %v4601_v61  ;;  %v1637_v7 = vadd.f32 %v4603_v17, %v4601_v61  ;;  %v1973_v0 = vsel %vm1945_vm2, %v1671_v11, 0.0  ;;  %v1674_v14 = vadd.f32 %v1638_v57, %v4187_v49  ;;  %v4649_v45 = vpop.f32.mrf.mxu0  ;;  %v4651_v4 = vpop.f32.mrf.mxu1 }
 0x13e   :  { %v1923_v37 = vadd.f32 %v1887_v52, %v4183_v39  ;;  %v2051_v47 = vadd.f32 %v2050_v62, %v2049_v18  ;;  %6489 = vst [vmem:[#allocation69_spill] sm:$0xff] %v4649_v45  ;;  %6490 = vst [vmem:[#allocation134_spill] sm:$0xff] %v4651_v4  ;;  %v1974_v10 = vadd.f32 %v1973_v0, %v1972_v34  ;;  %v2054_v34 = vsel %vm1945_vm2, %v1924_v40, 0.0  ;;  %v6497_v40 = vld [vmem:[#allocation76_spill] sm:$0xff] }
 0x13f   :  { %v1890_v1 = vadd.f32 %v1854_v33, %v1818_v44  ;;  %v1673_v26 = vadd.f32 %v1637_v7, %v6491_v8  ;;  %v1853_v5 = vmul.f32 %v4603_v17, %v4603_v17  ;;  %v1820_v62 = vmul.f32 %v4613_v35, %v4613_v35  ;;  %v4662_v18 = vpop.f32.mrf.mxu0  ;;  %v4664_v11 = vpop.f32.mrf.mxu1  ;;  %v6494_v33 = vld [vmem:[#allocation72_spill] sm:$0xff] }
 0x140   :  { %v2052_v39 = vsel %vm1945_vm2, %v1923_v37, 0.0  ;;  %v1640_v49 = vadd.f32 %v4615_v16, %v4613_v35  ;;  %6492 = vst [vmem:[#allocation75_spill] sm:$0xff] %v4662_v18  ;;  %6493 = vst [vmem:[#allocation135_spill] sm:$0xff] %v4664_v11  ;;  %v1976_v57 = vadd.f32 %v1975_v22, %v1974_v10  ;;  %v1856_v37 = vmul.f32 %v4615_v16, %v4615_v16 }
 0x141   :  { %v2053_v44 = vadd.f32 %v2052_v39, %v2051_v47  ;;  %v1889_v52 = vadd.f32 %v1853_v5, %v1817_v58  ;;  %v1926_v7 = vadd.f32 %v1890_v1, %v6494_v33  ;;  %v1977_v46 = vsel %vm1945_vm2, %v1673_v26, 0.0  ;;  %v4673_v8 = vpop.f32.mrf.mxu0  ;;  %v4675_v17 = vpop.f32.mrf.mxu1 }
 0x142   :  { %v1819_v0 = vmul.f32 %v4624_v25, %v4624_v25  ;;  %6495 = vst [vmem:[#allocation72_spill] sm:$0xff] %v4673_v8  ;;  %6496 = vst [vmem:[#allocation136_spill] sm:$0xff] %v4675_v17  ;;  %v1979_v35 = vsel %vm1945_vm2, %v1674_v14, 0.0  ;;  %v1978_v5 = vadd.f32 %v1977_v46, %v1976_v57  ;;  %v1676_v58 = vadd.f32 %v1640_v49, %v4219_v51 }
 0x143   :  { %v1925_v47 = vadd.f32 %v1889_v52, %v6497_v40  ;;  %v2055_v22 = vadd.f32 %v2054_v34, %v2053_v44  ;;  %v1892_v10 = vadd.f32 %v1856_v37, %v1820_v62  ;;  %v1639_v26 = vadd.f32 %v4626_v38, %v4624_v25  ;;  %v4684_v39 = vpop.f32.mrf.mxu0  ;;  %v4686_v33 = vpop.f32.mrf.mxu1  ;;  %v6502_v37 = vld [vmem:[#allocation79_spill] sm:$0xff] }
 0x144   :  { %v1855_v1 = vmul.f32 %v4626_v38, %v4626_v38  ;;  %6498 = vst [vmem:[#allocation76_spill] sm:$0xff] %v4684_v39  ;;  %6499 = vst [vmem:[#allocation137_spill] sm:$0xff] %v4686_v33  ;;  %v1980_v14 = vadd.f32 %v1979_v35, %v1978_v5  ;;  %v1822_v52 = vmul.f32 %v4635_v59, %v4635_v59  ;;  %v2058_v62 = vsel %vm1945_vm2, %v1926_v7, 0.0  ;;  %v6503_v38 = vld [vmem:[#allocation80_spill] sm:$0xff] }
 0x145   :  { %v2056_v16 = vsel %vm1945_vm2, %v1925_v47, 0.0  ;;  %v1642_v51 = vadd.f32 %v4637_v42, %v4635_v59  ;;  %v1675_v34 = vadd.f32 %v1639_v26, %v4225_v54  ;;  %v4695_v57 = vpop.f32.mrf.mxu0  ;;  %v4697_v46 = vpop.f32.mrf.mxu1  ;;  %v1928_v40 = vadd.f32 %v1892_v10, %v6502_v37 }
 0x146   :  { %v2057_v49 = vadd.f32 %v2056_v16, %v2055_v22  ;;  %v1891_v44 = vadd.f32 %v1855_v1, %v1819_v0  ;;  %6500 = vst [vmem:[#allocation138_spill] sm:$0xff] %v4695_v57  ;;  %6501 = vst [vmem:[#allocation139_spill] sm:$0xff] %v4697_v46  ;;  %v1858_v47 = vmul.f32 %v4637_v42, %v4637_v42 }
 0x147   :  { %v1678_v35 = vadd.f32 %v1642_v51, %v4243_v20  ;;  %v1641_v5 = vadd.f32 %v4651_v4, %v4649_v45  ;;  %v1981_v16 = vsel %vm1945_vm2, %v1675_v34, 0.0  ;;  %v1821_v0 = vmul.f32 %v4649_v45, %v4649_v45  ;;  %v4709_v22 = vpop.f32.mrf.mxu0  ;;  %v4711_v26 = vpop.f32.mrf.mxu1 }
 0x148   :  { %v1927_v7 = vadd.f32 %v1891_v44, %v6503_v38  ;;  %v2059_v54 = vadd.f32 %v2058_v62, %v2057_v49  ;;  %6504 = vst [vmem:[#allocation79_spill] sm:$0xff] %v4709_v22  ;;  %6505 = vst [vmem:[#allocation80_spill] sm:$0xff] %v4711_v26  ;;  %v1983_v20 = vsel %vm1945_vm2, %v1676_v58, 0.0  ;;  %v1982_v10 = vadd.f32 %v1981_v16, %v1980_v14 }
 0x149   :  { %v1894_v1 = vadd.f32 %v1858_v47, %v1822_v52  ;;  %v1677_v51 = vadd.f32 %v1641_v5, %v4253_v60  ;;  %v1857_v38 = vmul.f32 %v4651_v4, %v4651_v4  ;;  %v1824_v62 = vmul.f32 %v4662_v18, %v4662_v18  ;;  %v4722_v34 = vpop.f32.mrf.mxu0  ;;  %v4724_v44 = vpop.f32.mrf.mxu1  ;;  %v6509_v4 = vld [vmem:[#allocation83_spill] sm:$0xff] }
 0x14a   :  { %v2060_v37 = vsel %vm1945_vm2, %v1927_v7, 0.0  ;;  %v1644_v49 = vadd.f32 %v4664_v11, %v4662_v18  ;;  %6506 = vst [vmem:[#allocation140_spill] sm:$0xff] %v4722_v34  ;;  %6507 = vst [vmem:[#allocation141_spill] sm:$0xff] %v4724_v44  ;;  %v2062_v58 = vsel %vm1945_vm2, %v1928_v40, 0.0  ;;  %v1984_v52 = vadd.f32 %v1983_v20, %v1982_v10 }
 0x14b   :  { %v2061_v14 = vadd.f32 %v2060_v37, %v2059_v54  ;;  %v1985_v60 = vsel %vm1945_vm2, %v1677_v51, 0.0  ;;  %v1987_v47 = vsel %vm1945_vm2, %v1678_v35, 0.0  ;;  %v1893_v5 = vadd.f32 %v1857_v38, %v1821_v0  ;;  %v4733_v42 = vpop.f32.mrf.mxu0  ;;  %v4738_v54 = vpop.f32.mrf.mxu1  ;;  %v6511_v0 = vld [vmem:[#allocation84_spill] sm:$0xff] }
 0x14c   :  { %v1860_v7 = vmul.f32 %v4664_v11, %v4664_v11  ;;  %v1823_v16 = vmul.f32 %v4673_v8, %v4673_v8  ;;  %6508 = vst [vmem:[#allocation142_spill] sm:$0xff] %v4733_v42  ;;  %v1930_v18 = vadd.f32 %v1894_v1, %v6509_v4  ;;  %v1986_v59 = vadd.f32 %v1985_v60, %v1984_v52 }
 0x14d   :  { %v2063_v45 = vadd.f32 %v2062_v58, %v2061_v14  ;;  %v1643_v40 = vadd.f32 %v4675_v17, %v4673_v8  ;;  %6510 = vst [vmem:[#allocation83_spill] sm:$0xff] %v4738_v54  ;;  %v1929_v35 = vadd.f32 %v1893_v5, %v4255_v50  ;;  %v1680_v20 = vadd.f32 %v1644_v49, %v6511_v0  ;;  %v4749_v58 = vpop.f32.mrf.mxu0  ;;  %v6513_v50 = vld [vmem:[#allocation85_spill] sm:$0xff]  ;;  %v4759_v5 = vpop.f32.mrf.mxu1 }
 0x14e   :  { %v1896_v10 = vadd.f32 %v1860_v7, %v1824_v62  ;;  %v1859_v51 = vmul.f32 %v4675_v17, %v4675_v17  ;;  %v1988_v38 = vadd.f32 %v1987_v47, %v1986_v59  ;;  %v1826_v4 = vmul.f32 %v4684_v39, %v4684_v39  ;;  %6512 = vst [vmem:[#allocation84_spill] sm:$0xff] %v4749_v58  ;;  %v6567_v17 = vld [vmem:[#allocation81_spill] sm:$0xff] }
 0x14f   :  { %v1679_v37 = vadd.f32 %v1643_v40, %v4277_v53  ;;  %v1646_v1 = vadd.f32 %v4686_v33, %v4684_v39  ;;  %v2064_v14 = vsel %vm1945_vm2, %v1929_v35, 0.0  ;;  %v1862_v62 = vmul.f32 %v4686_v33, %v4686_v33  ;;  %6514 = vst [vmem:[#allocation85_spill] sm:$0xff] %v4759_v5 }
 0x150   :  { %v1932_v52 = vadd.f32 %v1896_v10, %v6513_v50  ;;  %v1895_v49 = vadd.f32 %v1859_v51, %v1823_v16  ;;  %v2066_v60 = vsel %vm1945_vm2, %v1930_v18, 0.0  ;;  %v2065_v53 = vadd.f32 %v2064_v14, %v2063_v45  ;;  %v4768_v51 = vpop.f32.mrf.mxu0 }
 0x151   :  { %v1989_v59 = vsel %vm1945_vm2, %v1679_v37, 0.0  ;;  %v1825_v47 = vmul.f32 %v4695_v57, %v4695_v57  ;;  %v1991_v7 = vsel %vm1945_vm2, %v1680_v20, 0.0  ;;  %v1898_v0 = vadd.f32 %v1862_v62, %v1826_v4  ;;  %6515 = vst [vmem:[#allocation143_spill] sm:$0xff] %v4768_v51  ;;  %v6516_v4 = vld [vmem:[#allocation91_spill] sm:$0xff]  ;;  %v6518_v62 = vld [vmem:[#allocation88_spill] sm:$0xff] }
 0x152   :  { %v1931_v40 = vadd.f32 %v1895_v49, %v4279_v55  ;;  %v1990_v35 = vadd.f32 %v1989_v59, %v1988_v38  ;;  %v2067_v16 = vadd.f32 %v2066_v60, %v2065_v53  ;;  %v1682_v10 = vadd.f32 %v1646_v1, %v4283_v19  ;;  %v4777_v49 = vpop.f32.mrf.mxu1 }
 0x153   :  { %v1645_v18 = vadd.f32 %v4697_v46, %v4695_v57  ;;  %v1861_v45 = vmul.f32 %v4697_v46, %v4697_v46  ;;  %v2070_v37 = vsel %vm1945_vm2, %v1932_v52, 0.0  ;;  %v1828_v55 = vmul.f32 %v4709_v22, %v4709_v22  ;;  %6517 = vst [vmem:[#allocation91_spill] sm:$0xff] %v4777_v49  ;;  %v6565_v46 = vld [vmem:[#allocation73_spill] sm:$0xff] }
 0x154   :  { %v2068_v14 = vsel %vm1945_vm2, %v1931_v40, 0.0  ;;  %v1992_v20 = vadd.f32 %v1991_v7, %v1990_v35  ;;  %v1648_v1 = vadd.f32 %v4711_v26, %v4709_v22  ;;  %v1934_v60 = vadd.f32 %v1898_v0, %v6518_v62  ;;  %v6519_v40 = vld [vmem:[#allocation92_spill] sm:$0xff]  ;;  %v6577_v22 = vld [vmem:[#allocation13_spill] sm:$0xff] }
 0x155   :  { %v2069_v38 = vadd.f32 %v2068_v14, %v2067_v16  ;;  %v1681_v50 = vadd.f32 %v1645_v18, %v6516_v4  ;;  %v1897_v19 = vadd.f32 %v1861_v45, %v1825_v47  ;;  %v1864_v52 = vmul.f32 %v4711_v26, %v4711_v26  ;;  %v4789_v18 = vpop.f32.mrf.mxu0 }
 0x156   :  { %v1827_v53 = vmul.f32 %v4722_v34, %v4722_v34  ;;  %v1647_v59 = vadd.f32 %v4724_v44, %v4722_v34  ;;  %v1995_v7 = vsel %vm1945_vm2, %v1682_v10, 0.0  ;;  %6520 = vst [vmem:[#allocation88_spill] sm:$0xff] %v4789_v18  ;;  %v1863_v4 = vmul.f32 %v4724_v44, %v4724_v44 }
 0x157   :  { %v1933_v47 = vadd.f32 %v1897_v19, %v6519_v40  ;;  %v1993_v35 = vsel %vm1945_vm2, %v1681_v50, 0.0  ;;  %v2071_v16 = vadd.f32 %v2070_v37, %v2069_v38  ;;  %v1900_v0 = vadd.f32 %v1864_v52, %v1828_v55  ;;  %v4800_v37 = vpop.f32.mrf.mxu1  ;;  %v6522_v19 = vld [vmem:[#allocation95_spill] sm:$0xff]  ;;  %v4809_v40 = vpop.f32.mrf.mxu0 }
 0x158   :  { %v1994_v45 = vadd.f32 %v1993_v35, %v1992_v20  ;;  %v1683_v14 = vadd.f32 %v1647_v59, %v4321_v32  ;;  %v1684_v26 = vadd.f32 %v1648_v1, %v4315_v3  ;;  %v1830_v10 = vmul.f32 %v4733_v42, %v4733_v42  ;;  %6521 = vst [vmem:[#allocation92_spill] sm:$0xff] %v4800_v37 }
 0x159   :  { %v2072_v62 = vsel %vm1945_vm2, %v1933_v47, 0.0  ;;  %v1650_v50 = vadd.f32 %v4738_v54, %v4733_v42  ;;  %v2074_v20 = vsel %vm1945_vm2, %v1934_v60, 0.0  ;;  %v1899_v38 = vadd.f32 %v1863_v4, %v1827_v53  ;;  %6523 = vst [vmem:[#allocation95_spill] sm:$0xff] %v4809_v40  ;;  %v6524_v47 = vld [vmem:[#allocation96_spill] sm:$0xff] }
 0x15a   :  { %v2073_v55 = vadd.f32 %v2072_v62, %v2071_v16  ;;  %v1996_v32 = vadd.f32 %v1995_v7, %v1994_v45  ;;  %v1936_v52 = vadd.f32 %v1900_v0, %v6522_v19  ;;  %v1997_v59 = vsel %vm1945_vm2, %v1683_v14, 0.0  ;;  %v4818_v0 = vpop.f32.mrf.mxu1 }
 0x15b   :  { %v1866_v3 = vmul.f32 %v4738_v54, %v4738_v54  ;;  %v1829_v1 = vmul.f32 %v4749_v58, %v4749_v58  ;;  %v1935_v35 = vadd.f32 %v1899_v38, %v6524_v47  ;;  %v1686_v60 = vadd.f32 %v1650_v50, %v4339_v29  ;;  %6525 = vst [vmem:[#allocation96_spill] sm:$0xff] %v4818_v0  ;;  %v6563_v54 = vld [vmem:[#allocation65_spill] sm:$0xff] }
 0x15c   :  { %v1998_v44 = vadd.f32 %v1997_v59, %v1996_v32  ;;  %v2075_v33 = vadd.f32 %v2074_v20, %v2073_v55  ;;  %v1999_v53 = vsel %vm1945_vm2, %v1684_v26, 0.0  ;;  %v1649_v16 = vadd.f32 %v4759_v5, %v4749_v58  ;;  %v4827_v55 = vpop.f32.mrf.mxu0 }
 0x15d   :  { %v1902_v7 = vadd.f32 %v1866_v3, %v1830_v10  ;;  %v1865_v45 = vmul.f32 %v4759_v5, %v4759_v5  ;;  %v2076_v14 = vsel %vm1945_vm2, %v1935_v35, 0.0  ;;  %v1832_v62 = vmul.f32 %v4768_v51, %v4768_v51  ;;  %6526 = vst [vmem:[#allocation144_spill] sm:$0xff] %v4827_v55  ;;  %v4839_v3 = vpop.f32.mrf.mxu1 }
 0x15e   :  { %v2000_v4 = vadd.f32 %v1999_v53, %v1998_v44  ;;  %v1652_v29 = vadd.f32 %v4777_v49, %v4768_v51  ;;  %v2078_v26 = vsel %vm1945_vm2, %v1936_v52, 0.0  ;;  %v2077_v10 = vadd.f32 %v2076_v14, %v2075_v33  ;;  %6527 = vst [vmem:[#allocation145_spill] sm:$0xff] %v4839_v3 }
 0x15f   :  { %v1685_v50 = vadd.f32 %v1649_v16, %v4349_v28  ;;  %v1901_v20 = vadd.f32 %v1865_v45, %v1829_v1  ;;  %v1938_v38 = vadd.f32 %v1902_v7, %v4341_v41  ;;  %v2003_v32 = vsel %vm1945_vm2, %v1686_v60, 0.0  ;;  %v4850_v16 = vpop.f32.mrf.mxu0 }
 0x160   :  { %v1868_v44 = vmul.f32 %v4777_v49, %v4777_v49  ;;  %v1651_v19 = vadd.f32 %v4800_v37, %v4789_v18  ;;  %v2079_v33 = vadd.f32 %v2078_v26, %v2077_v10  ;;  %v1831_v28 = vmul.f32 %v4789_v18, %v4789_v18  ;;  %6528 = vst [vmem:[#allocation146_spill] sm:$0xff] %v4850_v16  ;;  %v4859_v10 = vpop.f32.mrf.mxu1  ;;  %v6561_v49 = vld [vmem:[#allocation57_spill] sm:$0xff] }
 0x161   :  { %v1937_v59 = vadd.f32 %v1901_v20, %v4351_v2  ;;  %v2001_v52 = vsel %vm1945_vm2, %v1685_v50, 0.0  ;;  %v1688_v41 = vadd.f32 %v1652_v29, %v4355_v12  ;;  %v1867_v53 = vmul.f32 %v4800_v37, %v4800_v37  ;;  %6529 = vst [vmem:[#allocation147_spill] sm:$0xff] %v4859_v10 }
 0x162   :  { %v2002_v1 = vadd.f32 %v2001_v52, %v2000_v4  ;;  %v1904_v47 = vadd.f32 %v1868_v44, %v1832_v62  ;;  %v1687_v35 = vadd.f32 %v1651_v19, %v4365_v21  ;;  %v1834_v2 = vmul.f32 %v4809_v40, %v4809_v40  ;;  %v4868_v52 = vpop.f32.mrf.mxu0 }
 0x163   :  { %v2080_v60 = vsel %vm1945_vm2, %v1937_v59, 0.0  ;;  %v1654_v7 = vadd.f32 %v4818_v0, %v4809_v40  ;;  %v2082_v45 = vsel %vm1945_vm2, %v1938_v38, 0.0  ;;  %v1903_v62 = vadd.f32 %v1867_v53, %v1831_v28  ;;  %6530 = vst [vmem:[#allocation148_spill] sm:$0xff] %v4868_v52 }
 0x164   :  { %v2081_v14 = vadd.f32 %v2080_v60, %v2079_v33  ;;  %v2004_v12 = vadd.f32 %v2003_v32, %v2002_v1  ;;  %v2005_v4 = vsel %vm1945_vm2, %v1687_v35, 0.0  ;;  %v1940_v21 = vadd.f32 %v1904_v47, %v4357_v23  ;;  %v4879_v60 = vpop.f32.mrf.mxu1 }
 0x165   :  { %v1870_v29 = vmul.f32 %v4818_v0, %v4818_v0  ;;  %v1833_v26 = vmul.f32 %v4827_v55, %v4827_v55  ;;  %v2007_v50 = vsel %vm1945_vm2, %v1688_v41, 0.0  ;;  %v1653_v38 = vadd.f32 %v4839_v3, %v4827_v55  ;;  %6531 = vst [vmem:[#allocation149_spill] sm:$0xff] %v4879_v60  ;;  %v6559_v0 = vld [vmem:[#allocation49_spill] sm:$0xff] }
 0x166   :  { %v2006_v20 = vadd.f32 %v2005_v4, %v2004_v12  ;;  %v2083_v44 = vadd.f32 %v2082_v45, %v2081_v14  ;;  %v1939_v32 = vadd.f32 %v1903_v62, %v4373_v43  ;;  %v1690_v23 = vadd.f32 %v1654_v7, %v4377_v30  ;;  %v6571_v55 = vld [vmem:[#allocation97_spill] sm:$0xff] }
 0x167   :  { %v1906_v19 = vadd.f32 %v1870_v29, %v1834_v2  ;;  %v1869_v59 = vmul.f32 %v4839_v3, %v4839_v3  ;;  %v1763_v33 = vmul.f32 %v4335_v27, %v4335_v27  ;;  %v1689_v28 = vadd.f32 %v1653_v38, %v4383_v15  ;;  %v6534_v38 = vld [vmem:[#allocation107_spill] sm:$0xff] }
 0x168   :  { %v2008_v1 = vadd.f32 %v2007_v50, %v2006_v20  ;;  %v1836_v41 = vmul.f32 %v4850_v16, %v4850_v16  ;;  %v2086_v47 = vsel %vm1945_vm2, %v1940_v21, 0.0  ;;  %v2084_v43 = vsel %vm1945_vm2, %v1939_v32, 0.0  ;;  %v6532_v50 = vld [vmem:[#allocation102_spill] sm:$0xff] }
 0x169   :  { %v1905_v30 = vadd.f32 %v1869_v59, %v1833_v26  ;;  %v1872_v35 = vmul.f32 %v4859_v10, %v4859_v10  ;;  %v2085_v53 = vadd.f32 %v2084_v43, %v2083_v44  ;;  %v2009_v2 = vsel %vm1945_vm2, %v1689_v28, 0.0  ;;  %v6533_v20 = vld [vmem:[#allocation106_spill] sm:$0xff]  ;;  %v6535_v59 = vld [vmem:[#allocation103_spill] sm:$0xff] }
 0x16a   :  { %v1656_v15 = vadd.f32 %v4859_v10, %v4850_v16  ;;  %v1835_v7 = vmul.f32 %v4868_v52, %v4868_v52  ;;  %v1942_v45 = vadd.f32 %v1906_v19, %v4379_v13  ;;  %v2011_v14 = vsel %vm1945_vm2, %v1690_v23, 0.0  ;;  %v6536_v28 = vld [vmem:[#allocation110_spill] sm:$0xff]  ;;  %v6557_v10 = vld [vmem:[#allocation44_spill] sm:$0xff] }
 0x16b   :  { %v1941_v12 = vadd.f32 %v1905_v30, %v4389_v36  ;;  %v2010_v4 = vadd.f32 %v2009_v2, %v2008_v1  ;;  %v2087_v21 = vadd.f32 %v2086_v47, %v2085_v53  ;;  %v1908_v62 = vadd.f32 %v1872_v35, %v1836_v41 }
 0x16c   :  { %v1655_v29 = vadd.f32 %v4879_v60, %v4868_v52  ;;  %v1871_v26 = vmul.f32 %v4879_v60, %v4879_v60  ;;  %v1800_v44 = vadd.f32 %v6533_v20, %v6532_v50  ;;  %v1799_v32 = vadd.f32 %v1763_v33, %v6534_v38  ;;  %v6569_v52 = vld [vmem:[#allocation89_spill] sm:$0xff] }
 0x16d   :  { %v2088_v13 = vsel %vm1945_vm2, %v1941_v12, 0.0  ;;  %v2012_v19 = vadd.f32 %v2011_v14, %v2010_v4  ;;  %v1692_v36 = vadd.f32 %v1656_v15, %v6535_v59  ;;  %v2090_v47 = vsel %vm1945_vm2, %v1942_v45, 0.0 }
 0x16e   :  { %v2089_v23 = vadd.f32 %v2088_v13, %v2087_v21  ;;  %v1691_v1 = vadd.f32 %v1655_v29, %v6536_v28  ;;  %v1907_v41 = vadd.f32 %v1871_v26, %v1835_v7  ;;  %v1944_v43 = vadd.f32 %v1908_v62, %v1800_v44 }
 0x16f   :  { %v2015_v50 = vsel %vm1945_vm2, %v1692_v36, 0.0 }
 0x170   :  { %v1943_v30 = vadd.f32 %v1907_v41, %v1799_v32  ;;  %v2013_v35 = vsel %vm1945_vm2, %v1691_v1, 0.0  ;;  %v2091_v53 = vadd.f32 %v2090_v47, %v2089_v23  ;;  %v2094_v4 = vsel %vm1945_vm2, %v1944_v43, 0.0  ;;  %v2105_v43 = vld [vmem:[%s6116_s2] sm:$0x1] }
 0x171   :  { %v2014_v2 = vadd.f32 %v2013_v35, %v2012_v19  ;;  %v2113_v41 = vlaneseq }
 0x172   :  { %v2092_v33 = vsel %vm1945_vm2, %v1943_v30, 0.0 }
 0x173   :  { %v2016_v12 = vadd.f32 %v2015_v50, %v2014_v2  ;;  %v2093_v14 = vadd.f32 %v2092_v33, %v2091_v53  ;;  %v2114_v47 = vshrl.u32 %v2113_v41, 7  ;;  %v2109_v2 = vld [vmem:[%s6117_s3] sm:$0x1]  ;;  %v6547_v41 = vld [vmem:[#allocation24_spill] sm:$0xff] }
 0x175   :  { %v2017_v15 = vrot.slane %v2016_v12, 4  ;;  %v2095_v21 = vadd.f32 %v2094_v4, %v2093_v14  ;;  %v2115_v30 = vsub.s32 0, %v2114_v47  ;;  %v6537_v14 = vld [vmem:[#allocation4_spill] sm:$0xff] }
 0x177   :  { %v2018_v29 = vadd.f32 %v2017_v15, %v2016_v12  ;;  %v2096_v7 = vrot.slane %v2095_v21, 4  ;;  %v6538_v15 = vld [vmem:[#allocation2_spill] sm:$0xff] }
 0x179   :  { %v2019_v26 = vrot.slane %v2018_v29, 2  ;;  %v2097_v45 = vadd.f32 %v2096_v7, %v2095_v21 }
 0x17b   :  { %v2020_v62 = vadd.f32 %v2019_v26, %v2018_v29  ;;  %v2098_v20 = vrot.slane %v2097_v45, 2  ;;  %v6539_v29 = vld [vmem:[#allocation8_spill] sm:$0xff]  ;;  %v6540_v26 = vld [vmem:[#allocation6_spill] sm:$0xff] }
 0x17d   :  { %v2021_v44 = vrot.slane %v2020_v62, 1  ;;  %v2099_v38 = vadd.f32 %v2098_v20, %v2097_v45 }
 0x17f   :  { %v2022_v32 = vadd.f32 %v2021_v44, %v2020_v62  ;;  %v2100_v13 = vrot.slane %v2099_v38, 1  ;;  %v6541_v62 = vld [vmem:[#allocation12_spill] sm:$0xff]  ;;  %v6542_v44 = vld [vmem:[#allocation10_spill] sm:$0xff] }
 0x181   :  { %v2024_v19 = vmul.f32 0.00086805556, %v2022_v32  ;;  %v2101_v23 = vadd.f32 %v2100_v13, %v2099_v38  ;;  %v6543_v32 = vld [vmem:[#allocation16_spill] sm:$0xff] }
 0x183   :  { %v2102_v59 = vmul.f32 0.00086805556, %v2101_v23  ;;  %v2103_v36 = vmul.f32 %v2024_v19, %v2024_v19 }
 0x185   :  { %v2104_v28 = vsub.f32 %v2102_v59, %v2103_v36  ;;  %v6545_v59 = vld [vmem:[#allocation20_spill] sm:$0xff] }
 0x187   :  { %v2106_v1 = vadd.f32 1e-05, %v2104_v28  ;;  %v6546_v28 = vld [vmem:[#allocation18_spill] sm:$0xff] }
 0x189   :  { %3260 = vrsqrt.f32 %v2106_v1 }
 0x196   :  { %v3261_v35 = vpop.eup %3260 }
 0x197   :  { %v2108_v53 = vmul.f32 %v3261_v35, %v2105_v43  ;;  %v6548_v43 = vld [vmem:[#allocation22_spill] sm:$0xff] }
 0x199   :  { %v2110_v50 = vmul.f32 %v2108_v53, %v2024_v19  ;;  %v4910_v33 = vrot.slane %v2108_v53, %v2115_v30  ;;  %v6544_v19 = vld [vmem:[#allocation14_spill] sm:$0xff]  ;;  %v6549_v53 = vld [vmem:[#allocation28_spill] sm:$0xff] }
 0x19b   :  { %v2111_v12 = vsub.f32 %v2109_v2, %v2110_v50  ;;  %v2118_v4 = vmul.f32 %v4910_v33, %v6537_v14  ;;  %v2119_v21 = vmul.f32 %v6538_v15, %v4910_v33  ;;  %v2120_v7 = vmul.f32 %v4910_v33, %v6539_v29  ;;  %v6550_v50 = vld [vmem:[#allocation26_spill] sm:$0xff]  ;;  %v6551_v15 = vld [vmem:[#allocation32_spill] sm:$0xff] }
 0x19c   :  { %v2121_v45 = vmul.f32 %v6540_v26, %v4910_v33  ;;  %v2122_v20 = vmul.f32 %v4910_v33, %v6541_v62  ;;  %v2123_v38 = vmul.f32 %v6542_v44, %v4910_v33  ;;  %v2124_v13 = vmul.f32 %v4910_v33, %v6543_v32  ;;  %v6552_v26 = vld [vmem:[#allocation30_spill] sm:$0xff]  ;;  %v6553_v44 = vld [vmem:[#allocation36_spill] sm:$0xff] }
 0x19d   :  { %v2125_v23 = vmul.f32 %v6544_v19, %v4910_v33  ;;  %v2126_v36 = vmul.f32 %v4910_v33, %v6545_v59  ;;  %v2127_v1 = vmul.f32 %v6546_v28, %v4910_v33  ;;  %v2128_v47 = vmul.f32 %v4910_v33, %v6547_v41  ;;  %v6554_v19 = vld [vmem:[#allocation34_spill] sm:$0xff]  ;;  %v6555_v28 = vld [vmem:[#allocation40_spill] sm:$0xff] }
 0x19e   :  { %v2129_v35 = vmul.f32 %v6548_v43, %v4910_v33  ;;  %v2130_v2 = vmul.f32 %v4910_v33, %v6549_v53  ;;  %v2131_v14 = vmul.f32 %v6550_v50, %v4910_v33  ;;  %v2132_v29 = vmul.f32 %v4910_v33, %v6551_v15  ;;  %v6556_v43 = vld [vmem:[#allocation38_spill] sm:$0xff] }
 0x19f   :  { %v2133_v62 = vmul.f32 %v6552_v26, %v4910_v33  ;;  %v2134_v32 = vmul.f32 %v4910_v33, %v6553_v44  ;;  %v2135_v59 = vmul.f32 %v6554_v19, %v4910_v33  ;;  %v2136_v41 = vmul.f32 %v4910_v33, %v6555_v28  ;;  %v6558_v15 = vld [vmem:[#allocation42_spill] sm:$0xff] }
 0x1a0   :  { %v2137_v53 = vmul.f32 %v6556_v43, %v4910_v33  ;;  %v2138_v50 = vmul.f32 %v4910_v33, %v6557_v10  ;;  %v2139_v60 = vmul.f32 %v6558_v15, %v4910_v33  ;;  %v2140_v26 = vmul.f32 %v4910_v33, %v6559_v0  ;;  %v6560_v44 = vld [vmem:[#allocation46_spill] sm:$0xff]  ;;  %v6564_v10 = vld [vmem:[#allocation61_spill] sm:$0xff] }
 0x1a1   :  { %v2141_v3 = vmul.f32 %v6560_v44, %v4910_v33  ;;  %v2142_v19 = vmul.f32 %v4910_v33, %v6561_v49  ;;  %v6562_v28 = vld [vmem:[#allocation54_spill] sm:$0xff]  ;;  %v2144_v43 = vmul.f32 %v4910_v33, %v6563_v54  ;;  %v2145_v5 = vmul.f32 %v6564_v10, %v4910_v33  ;;  %v6568_v49 = vld [vmem:[#allocation77_spill] sm:$0xff] }
 0x1a2   :  { %v2143_v37 = vmul.f32 %v6562_v28, %v4910_v33  ;;  %v2146_v15 = vmul.f32 %v4910_v33, %v6565_v46  ;;  %v6566_v0 = vld [vmem:[#allocation70_spill] sm:$0xff]  ;;  %v2148_v44 = vmul.f32 %v4910_v33, %v6567_v17  ;;  %v2149_v16 = vmul.f32 %v6568_v49, %v4910_v33  ;;  %v6572_v46 = vld [vmem:[#allocation93_spill] sm:$0xff]  ;;  %v6574_v49 = vld [vmem:[#allocation3_spill] sm:$0xff] }
 0x1a3   :  { %v2147_v11 = vmul.f32 %v6566_v0, %v4910_v33  ;;  %v2150_v28 = vmul.f32 %v4910_v33, %v6569_v52  ;;  %v6570_v54 = vld [vmem:[#allocation86_spill] sm:$0xff]  ;;  %v2152_v10 = vmul.f32 %v4910_v33, %v6571_v55  ;;  %v2153_v51 = vmul.f32 %v6572_v46, %v4910_v33  ;;  %v6573_v0 = vld [vmem:[#allocation5_spill] sm:$0xff] }
 0x1a4   :  { %v2151_v40 = vmul.f32 %v6570_v54, %v4910_v33  ;;  %v4984_v18 = vrot.slane %v2111_v12, %v2115_v30  ;;  %v4988_v17 = vmul.f32 %v4910_v33, %v6573_v0  ;;  %v4992_v42 = vmul.f32 %v6574_v49, %v4910_v33  ;;  %v6575_v52 = vld [vmem:[#allocation9_spill] sm:$0xff]  ;;  %v6576_v54 = vld [vmem:[#allocation7_spill] sm:$0xff] }
 0x1a5   :  { %v4996_v58 = vmul.f32 %v4910_v33, %v6575_v52  ;;  %v5000_v55 = vmul.f32 %v6576_v54, %v4910_v33  ;;  %v5004_v30 = vmul.f32 %v4910_v33, %v6577_v22  ;;  %v6578_v12 = vld [vmem:[#allocation11_spill] sm:$0xff] }
 0x1a6   :  { %v5008_v46 = vmul.f32 %v6578_v12, %v4910_v33  ;;  %v5011_v0 = vadd.f32 %v4984_v18, %v2118_v4  ;;  %v5014_v49 = vadd.f32 %v4984_v18, %v2119_v21  ;;  %v5017_v52 = vadd.f32 %v4984_v18, %v2120_v7 }
 0x1a7   :  { %v5020_v54 = vadd.f32 %v4984_v18, %v2121_v45  ;;  %v5023_v34 = vadd.f32 %v4984_v18, %v2122_v20  ;;  %v5026_v22 = vadd.f32 %v4984_v18, %v2123_v38  ;;  %v5029_v12 = vadd.f32 %v4984_v18, %v2124_v13 }
 0x1a8   :  { %6579 = vst [vmem:[#allocation102_spill] sm:$0xff] %v5011_v0  ;;  %6580 = vst [vmem:[#allocation106_spill] sm:$0xff] %v5014_v49  ;;  %v5032_v4 = vadd.f32 %v4984_v18, %v2125_v23  ;;  %v5035_v21 = vadd.f32 %v4984_v18, %v2126_v36  ;;  %v5038_v7 = vadd.f32 %v4984_v18, %v2127_v1  ;;  %v6766_v49 = vld [vmem:[#allocation129_spill] sm:$0xff]  ;;  %v6768_v0 = vld [vmem:[#allocation131_spill] sm:$0xff] }
 0x1a9   :  { %6581 = vst [vmem:[#allocation107_spill] sm:$0xff] %v5017_v52  ;;  %6582 = vst [vmem:[#allocation103_spill] sm:$0xff] %v5020_v54  ;;  %v5041_v45 = vadd.f32 %v4984_v18, %v2128_v47  ;;  %v5044_v20 = vadd.f32 %v4984_v18, %v2129_v35  ;;  %v5047_v38 = vadd.f32 %v4984_v18, %v2130_v2  ;;  %v6762_v54 = vld [vmem:[#allocation56_spill] sm:$0xff]  ;;  %v6764_v52 = vld [vmem:[#allocation127_spill] sm:$0xff] }
 0x1aa   :  { %6583 = vst [vmem:[#allocation110_spill] sm:$0xff] %v5023_v34  ;;  %6584 = vst [vmem:[#allocation4_spill] sm:$0xff] %v5026_v22  ;;  %v5050_v13 = vadd.f32 %v4984_v18, %v2131_v14  ;;  %v5053_v23 = vadd.f32 %v4984_v18, %v2132_v29  ;;  %v5056_v36 = vadd.f32 %v4984_v18, %v2133_v62  ;;  %v6758_v22 = vld [vmem:[#allocation119_spill] sm:$0xff]  ;;  %v6760_v34 = vld [vmem:[#allocation122_spill] sm:$0xff] }
 0x1ab   :  { %6585 = vst [vmem:[#allocation2_spill] sm:$0xff] %v5029_v12  ;;  %6586 = vst [vmem:[#allocation8_spill] sm:$0xff] %v5032_v4  ;;  %v5059_v1 = vadd.f32 %v4984_v18, %v2134_v32  ;;  %v5062_v47 = vadd.f32 %v4984_v18, %v2135_v59  ;;  %v5065_v35 = vadd.f32 %v4984_v18, %v2136_v41 }
 0x1ac   :  { %6587 = vst [vmem:[#allocation6_spill] sm:$0xff] %v5035_v21  ;;  %6588 = vst [vmem:[#allocation12_spill] sm:$0xff] %v5038_v7  ;;  %v5068_v2 = vadd.f32 %v4984_v18, %v2137_v53  ;;  %v5071_v14 = vadd.f32 %v4984_v18, %v2138_v50  ;;  %v5074_v29 = vadd.f32 %v4984_v18, %v2139_v60 }
 0x1ad   :  { %6589 = vst [vmem:[#allocation10_spill] sm:$0xff] %v5041_v45  ;;  %6590 = vst [vmem:[#allocation16_spill] sm:$0xff] %v5044_v20  ;;  %v5077_v62 = vadd.f32 %v4984_v18, %v2140_v26  ;;  %v5080_v32 = vadd.f32 %v4984_v18, %v2141_v3  ;;  %v5083_v59 = vadd.f32 %v4984_v18, %v2142_v19  ;;  %v6729_v20 = vld [vmem:[#allocation144_spill] sm:$0xff] }
 0x1ae   :  { %6591 = vst [vmem:[#allocation14_spill] sm:$0xff] %v5047_v38  ;;  %6592 = vst [vmem:[#allocation20_spill] sm:$0xff] %v5050_v13  ;;  %v5086_v41 = vadd.f32 %v4984_v18, %v2143_v37  ;;  %v5089_v53 = vadd.f32 %v4984_v18, %v2144_v43  ;;  %v5092_v50 = vadd.f32 %v4984_v18, %v2145_v5  ;;  %v6727_v38 = vld [vmem:[#allocation88_spill] sm:$0xff] }
 0x1af   :  { %6593 = vst [vmem:[#allocation18_spill] sm:$0xff] %v5053_v23  ;;  %6594 = vst [vmem:[#allocation24_spill] sm:$0xff] %v5056_v36  ;;  %v5095_v60 = vadd.f32 %v4984_v18, %v2146_v15  ;;  %v5098_v26 = vadd.f32 %v4984_v18, %v2147_v11  ;;  %v5101_v3 = vadd.f32 %v4984_v18, %v2148_v44  ;;  %v6615_v11 = vld [vmem:[#allocation17_spill] sm:$0xff]  ;;  %v6616_v44 = vld [vmem:[#allocation15_spill] sm:$0xff] }
 0x1b0   :  { %6595 = vst [vmem:[#allocation22_spill] sm:$0xff] %v5059_v1  ;;  %6596 = vst [vmem:[#allocation28_spill] sm:$0xff] %v5062_v47  ;;  %v5104_v19 = vadd.f32 %v4984_v18, %v2149_v16  ;;  %v5107_v37 = vadd.f32 %v4984_v18, %v2150_v28  ;;  %v5110_v43 = vadd.f32 %v4984_v18, %v2151_v40  ;;  %v6617_v16 = vld [vmem:[#allocation21_spill] sm:$0xff]  ;;  %v6618_v28 = vld [vmem:[#allocation19_spill] sm:$0xff] }
 0x1b1   :  { %6597 = vst [vmem:[#allocation26_spill] sm:$0xff] %v5065_v35  ;;  %6598 = vst [vmem:[#allocation32_spill] sm:$0xff] %v5068_v2  ;;  %v5113_v5 = vadd.f32 %v4984_v18, %v2152_v10  ;;  %v5116_v15 = vadd.f32 %v4984_v18, %v2153_v51  ;;  %v2202_v39 = vmul.f32 %v4910_v33, %v6615_v11  ;;  %v6619_v40 = vld [vmem:[#allocation25_spill] sm:$0xff]  ;;  %v6620_v10 = vld [vmem:[#allocation23_spill] sm:$0xff] }
 0x1b2   :  { %6599 = vst [vmem:[#allocation30_spill] sm:$0xff] %v5071_v14  ;;  %6600 = vst [vmem:[#allocation36_spill] sm:$0xff] %v5074_v29  ;;  %v2203_v57 = vmul.f32 %v6616_v44, %v4910_v33  ;;  %v2204_v8 = vmul.f32 %v4910_v33, %v6617_v16  ;;  %v2205_v25 = vmul.f32 %v6618_v28, %v4910_v33  ;;  %v6621_v51 = vld [vmem:[#allocation29_spill] sm:$0xff]  ;;  %v6622_v11 = vld [vmem:[#allocation27_spill] sm:$0xff] }
 0x1b3   :  { %6601 = vst [vmem:[#allocation34_spill] sm:$0xff] %v5077_v62  ;;  %6602 = vst [vmem:[#allocation40_spill] sm:$0xff] %v5080_v32  ;;  %v2206_v61 = vmul.f32 %v4910_v33, %v6619_v40  ;;  %v2207_v48 = vmul.f32 %v6620_v10, %v4910_v33  ;;  %v2208_v63 = vmul.f32 %v4910_v33, %v6621_v51  ;;  %v6624_v16 = vld [vmem:[#allocation31_spill] sm:$0xff]  ;;  %v6639_v32 = vld [vmem:[#allocation82_spill] sm:$0xff] }
 0x1b4   :  { %6603 = vst [vmem:[#allocation38_spill] sm:$0xff] %v5083_v59  ;;  %6604 = vst [vmem:[#allocation44_spill] sm:$0xff] %v5086_v41  ;;  %v2209_v6 = vmul.f32 %v6622_v11, %v4910_v33  ;;  %v2210_v44 = vmul.f32 %v4910_v33, %v6623_v31  ;;  %v2211_v9 = vmul.f32 %v6624_v16, %v4910_v33  ;;  %v6626_v40 = vld [vmem:[#allocation35_spill] sm:$0xff]  ;;  %v6637_v41 = vld [vmem:[#allocation74_spill] sm:$0xff] }
 0x1b5   :  { %6605 = vst [vmem:[#allocation42_spill] sm:$0xff] %v5089_v53  ;;  %6606 = vst [vmem:[#allocation49_spill] sm:$0xff] %v5092_v50  ;;  %v2212_v28 = vmul.f32 %v4910_v33, %v6625_v24  ;;  %v2213_v56 = vmul.f32 %v6626_v40, %v4910_v33  ;;  %v6628_v51 = vld [vmem:[#allocation39_spill] sm:$0xff]  ;;  %v6635_v50 = vld [vmem:[#allocation66_spill] sm:$0xff] }
 0x1b6   :  { %6607 = vst [vmem:[#allocation46_spill] sm:$0xff] %v5095_v60  ;;  %6608 = vst [vmem:[#allocation57_spill] sm:$0xff] %v5098_v26  ;;  %v6630_v31 = vld [vmem:[#allocation43_spill] sm:$0xff]  ;;  %v6633_v26 = vld [vmem:[#allocation58_spill] sm:$0xff] }
 0x1b7   :  { %6609 = vst [vmem:[#allocation54_spill] sm:$0xff] %v5101_v3  ;;  %6610 = vst [vmem:[#allocation65_spill] sm:$0xff] %v5104_v19  ;;  %v6631_v19 = vld [vmem:[#allocation50_spill] sm:$0xff]  ;;  %v6632_v24 = vld [vmem:[#allocation47_spill] sm:$0xff]  ;;  %v2220_v40 = vmul.f32 %v4910_v33, %v6633_v26 }
 0x1b8   :  { %6611 = vst [vmem:[#allocation61_spill] sm:$0xff] %v5107_v37  ;;  %6612 = vst [vmem:[#allocation73_spill] sm:$0xff] %v5110_v43  ;;  %v6629_v43 = vld [vmem:[#allocation45_spill] sm:$0xff]  ;;  %v2217_v37 = vmul.f32 %v6630_v31, %v4910_v33  ;;  %v2218_v16 = vmul.f32 %v4910_v33, %v6631_v19  ;;  %v2219_v3 = vmul.f32 %v6632_v24, %v4910_v33  ;;  %v6638_v19 = vld [vmem:[#allocation71_spill] sm:$0xff] }
 0x1b9   :  { %6613 = vst [vmem:[#allocation70_spill] sm:$0xff] %v5113_v5  ;;  %6614 = vst [vmem:[#allocation81_spill] sm:$0xff] %v5116_v15  ;;  %v6627_v15 = vld [vmem:[#allocation41_spill] sm:$0xff]  ;;  %v2215_v5 = vmul.f32 %v6628_v51, %v4910_v33  ;;  %v2216_v11 = vmul.f32 %v4910_v33, %v6629_v43  ;;  %v2222_v51 = vmul.f32 %v4910_v33, %v6635_v50  ;;  %v6636_v43 = vld [vmem:[#allocation62_spill] sm:$0xff] }
 0x1ba   :  { %v2214_v10 = vmul.f32 %v4910_v33, %v6627_v15  ;;  %v6634_v15 = vld [vmem:[#allocation55_spill] sm:$0xff]  ;;  %v2223_v53 = vmul.f32 %v6636_v43, %v4910_v33  ;;  %v2224_v31 = vmul.f32 %v4910_v33, %v6637_v41  ;;  %v2225_v59 = vmul.f32 %v6638_v19, %v4910_v33  ;;  %v6640_v26 = vld [vmem:[#allocation78_spill] sm:$0xff]  ;;  %v6723_v1 = vld [vmem:[#allocation140_spill] sm:$0xff] }
 0x1bb   :  { %v2221_v60 = vmul.f32 %v6634_v15, %v4910_v33  ;;  %v2226_v24 = vmul.f32 %v4910_v33, %v6639_v32  ;;  %v2227_v62 = vmul.f32 %v6640_v26, %v4910_v33  ;;  %v6641_v29 = vld [vmem:[#allocation90_spill] sm:$0xff]  ;;  %v6642_v50 = vld [vmem:[#allocation87_spill] sm:$0xff]  ;;  %v2230_v43 = vmul.f32 %v4910_v33, %v4335_v27  ;;  %v6725_v23 = vld [vmem:[#allocation84_spill] sm:$0xff] }
 0x1bc   :  { %v2228_v15 = vmul.f32 %v4910_v33, %v6641_v29  ;;  %v2229_v14 = vmul.f32 %v6642_v50, %v4910_v33  ;;  %v6643_v41 = vld [vmem:[#allocation94_spill] sm:$0xff]  ;;  %v5180_v19 = vadd.f32 %v4988_v17, %v4984_v18  ;;  %v5184_v32 = vadd.f32 %v4992_v42, %v4984_v18  ;;  %v6731_v45 = vld [vmem:[#allocation148_spill] sm:$0xff] }
 0x1bd   :  { %v2231_v2 = vmul.f32 %v6643_v41, %v4910_v33  ;;  %v5188_v29 = vadd.f32 %v4996_v58, %v4984_v18  ;;  %v5192_v26 = vadd.f32 %v5000_v55, %v4984_v18  ;;  %v5196_v27 = vadd.f32 %v5004_v30, %v4984_v18  ;;  %v6721_v35 = vld [vmem:[#allocation138_spill] sm:$0xff] }
 0x1be   :  { %6644 = vst [vmem:[#allocation77_spill] sm:$0xff] %v5180_v19  ;;  %6645 = vst [vmem:[#allocation89_spill] sm:$0xff] %v5184_v32  ;;  %v5200_v17 = vadd.f32 %v5008_v46, %v4984_v18  ;;  %v5203_v50 = vadd.f32 %v2202_v39, %v4984_v18  ;;  %v5206_v42 = vadd.f32 %v2203_v57, %v4984_v18 }
 0x1bf   :  { %6646 = vst [vmem:[#allocation86_spill] sm:$0xff] %v5188_v29  ;;  %6647 = vst [vmem:[#allocation97_spill] sm:$0xff] %v5192_v26  ;;  %v5209_v58 = vadd.f32 %v2204_v8, %v4984_v18  ;;  %v5212_v55 = vadd.f32 %v2205_v25, %v4984_v18  ;;  %v5215_v41 = vadd.f32 %v2206_v61, %v4984_v18 }
 0x1c0   :  { %6648 = vst [vmem:[#allocation93_spill] sm:$0xff] %v5196_v27  ;;  %6649 = vst [vmem:[#allocation5_spill] sm:$0xff] %v5200_v17  ;;  %v5218_v30 = vadd.f32 %v2207_v48, %v4984_v18  ;;  %v5221_v46 = vadd.f32 %v2208_v63, %v4984_v18  ;;  %v5224_v39 = vadd.f32 %v2209_v6, %v4984_v18 }
 0x1c1   :  { %6650 = vst [vmem:[#allocation3_spill] sm:$0xff] %v5203_v50  ;;  %6651 = vst [vmem:[#allocation9_spill] sm:$0xff] %v5206_v42  ;;  %v5227_v57 = vadd.f32 %v2210_v44, %v4984_v18  ;;  %v5230_v8 = vadd.f32 %v2211_v9, %v4984_v18  ;;  %v5233_v25 = vadd.f32 %v2212_v28, %v4984_v18 }
 0x1c2   :  { %6652 = vst [vmem:[#allocation7_spill] sm:$0xff] %v5209_v58  ;;  %6653 = vst [vmem:[#allocation13_spill] sm:$0xff] %v5212_v55  ;;  %v5236_v61 = vadd.f32 %v2213_v56, %v4984_v18  ;;  %v5239_v48 = vadd.f32 %v2214_v10, %v4984_v18  ;;  %v5242_v63 = vadd.f32 %v2215_v5, %v4984_v18 }
 0x1c3   :  { %6654 = vst [vmem:[#allocation11_spill] sm:$0xff] %v5215_v41  ;;  %6655 = vst [vmem:[#allocation17_spill] sm:$0xff] %v5218_v30  ;;  %v5245_v6 = vadd.f32 %v2216_v11, %v4984_v18  ;;  %v5248_v44 = vadd.f32 %v2217_v37, %v4984_v18  ;;  %v5251_v9 = vadd.f32 %v2218_v16, %v4984_v18 }
 0x1c4   :  { %6656 = vst [vmem:[#allocation15_spill] sm:$0xff] %v5221_v46  ;;  %6657 = vst [vmem:[#allocation21_spill] sm:$0xff] %v5224_v39  ;;  %v5254_v28 = vadd.f32 %v2219_v3, %v4984_v18  ;;  %v5257_v56 = vadd.f32 %v2220_v40, %v4984_v18  ;;  %v5260_v10 = vadd.f32 %v2221_v60, %v4984_v18  ;;  %v6713_v46 = vld [vmem:[#allocation64_spill] sm:$0xff] }
 0x1c5   :  { %6658 = vst [vmem:[#allocation19_spill] sm:$0xff] %v5227_v57  ;;  %6659 = vst [vmem:[#allocation25_spill] sm:$0xff] %v5230_v8  ;;  %v5263_v5 = vadd.f32 %v2222_v51, %v4984_v18  ;;  %v5266_v11 = vadd.f32 %v2223_v53, %v4984_v18  ;;  %v5269_v37 = vadd.f32 %v2224_v31, %v4984_v18  ;;  %v6697_v57 = vld [vmem:[#allocation100_spill] sm:$0xff]  ;;  %v6711_v8 = vld [vmem:[#allocation126_spill] sm:$0xff] }
 0x1c6   :  { %6660 = vst [vmem:[#allocation23_spill] sm:$0xff] %v5233_v25  ;;  %6661 = vst [vmem:[#allocation29_spill] sm:$0xff] %v5236_v61  ;;  %v5272_v16 = vadd.f32 %v2225_v59, %v4984_v18  ;;  %v5275_v3 = vadd.f32 %v2226_v24, %v4984_v18  ;;  %v5278_v40 = vadd.f32 %v2227_v62, %v4984_v18  ;;  %v6699_v25 = vld [vmem:[#allocation108_spill] sm:$0xff]  ;;  %v6709_v61 = vld [vmem:[#allocation59_spill] sm:$0xff] }
 0x1c7   :  { %6662 = vst [vmem:[#allocation27_spill] sm:$0xff] %v5239_v48  ;;  %6663 = vst [vmem:[#allocation33_spill] sm:$0xff] %v5242_v63  ;;  %v5281_v60 = vadd.f32 %v2228_v15, %v4984_v18  ;;  %v5284_v51 = vadd.f32 %v2229_v14, %v4984_v18  ;;  %v5287_v53 = vadd.f32 %v2230_v43, %v4984_v18  ;;  %v6701_v48 = vld [vmem:[#allocation113_spill] sm:$0xff]  ;;  %v6715_v15 = vld [vmem:[#allocation68_spill] sm:$0xff] }
 0x1c8   :  { %6664 = vst [vmem:[#allocation31_spill] sm:$0xff] %v5245_v6  ;;  %6665 = vst [vmem:[#allocation37_spill] sm:$0xff] %v5248_v44  ;;  %v5290_v31 = vadd.f32 %v2231_v2, %v4984_v18  ;;  %v6703_v6 = vld [vmem:[#allocation48_spill] sm:$0xff]  ;;  %v6707_v63 = vld [vmem:[#allocation53_spill] sm:$0xff] }
 0x1c9   :  { %6666 = vst [vmem:[#allocation35_spill] sm:$0xff] %v5251_v9  ;;  %6667 = vst [vmem:[#allocation41_spill] sm:$0xff] %v5254_v28  ;;  %v2304_v9 = vmul.f32 %v4910_v33, %v6697_v57  ;;  %v6698_v28 = vld [vmem:[#allocation98_spill] sm:$0xff]  ;;  %v6704_v57 = vld [vmem:[#allocation115_spill] sm:$0xff] }
 0x1ca   :  { %6668 = vst [vmem:[#allocation39_spill] sm:$0xff] %v5257_v56  ;;  %6669 = vst [vmem:[#allocation45_spill] sm:$0xff] %v5260_v10  ;;  %v2306_v56 = vmul.f32 %v4910_v33, %v6699_v25  ;;  %v6700_v10 = vld [vmem:[#allocation104_spill] sm:$0xff]  ;;  %v6706_v25 = vld [vmem:[#allocation117_spill] sm:$0xff] }
 0x1cb   :  { %6670 = vst [vmem:[#allocation43_spill] sm:$0xff] %v5263_v5  ;;  %6671 = vst [vmem:[#allocation50_spill] sm:$0xff] %v5266_v11  ;;  %v2308_v5 = vmul.f32 %v4910_v33, %v6701_v48  ;;  %v6702_v11 = vld [vmem:[#allocation111_spill] sm:$0xff]  ;;  %v6705_v44 = vld [vmem:[#allocation52_spill] sm:$0xff] }
 0x1cc   :  { %6672 = vst [vmem:[#allocation47_spill] sm:$0xff] %v5269_v37  ;;  %6673 = vst [vmem:[#allocation58_spill] sm:$0xff] %v5272_v16  ;;  %v2310_v37 = vmul.f32 %v4910_v33, %v6703_v6  ;;  %v6708_v48 = vld [vmem:[#allocation120_spill] sm:$0xff]  ;;  %v6710_v6 = vld [vmem:[#allocation123_spill] sm:$0xff] }
 0x1cd   :  { %6674 = vst [vmem:[#allocation55_spill] sm:$0xff] %v5275_v3  ;;  %6675 = vst [vmem:[#allocation66_spill] sm:$0xff] %v5278_v40  ;;  %v2305_v3 = vmul.f32 %v6698_v28, %v4910_v33  ;;  %v2312_v28 = vmul.f32 %v4910_v33, %v6705_v44  ;;  %v2315_v40 = vmul.f32 %v6708_v48, %v4910_v33  ;;  %v6712_v44 = vld [vmem:[#allocation60_spill] sm:$0xff]  ;;  %v6717_v24 = vld [vmem:[#allocation69_spill] sm:$0xff] }
 0x1ce   :  { %6676 = vst [vmem:[#allocation62_spill] sm:$0xff] %v5281_v60  ;;  %6677 = vst [vmem:[#allocation74_spill] sm:$0xff] %v5284_v51  ;;  %v2307_v60 = vmul.f32 %v6700_v10, %v4910_v33  ;;  %v2313_v51 = vmul.f32 %v6706_v25, %v4910_v33  ;;  %v2314_v10 = vmul.f32 %v4910_v33, %v6707_v63  ;;  %v6714_v63 = vld [vmem:[#allocation63_spill] sm:$0xff]  ;;  %v6719_v2 = vld [vmem:[#allocation72_spill] sm:$0xff] }
 0x1cf   :  { %6678 = vst [vmem:[#allocation71_spill] sm:$0xff] %v5287_v53  ;;  %6679 = vst [vmem:[#allocation82_spill] sm:$0xff] %v5290_v31  ;;  %v2309_v53 = vmul.f32 %v6702_v11, %v4910_v33  ;;  %v2311_v31 = vmul.f32 %v6704_v57, %v4910_v33  ;;  %v2316_v11 = vmul.f32 %v4910_v33, %v6709_v61  ;;  %v6716_v61 = vld [vmem:[#allocation67_spill] sm:$0xff] }
 0x1d0   :  { %v2317_v16 = vmul.f32 %v6710_v6, %v4910_v33  ;;  %v2318_v57 = vmul.f32 %v4910_v33, %v6711_v8  ;;  %v2319_v39 = vmul.f32 %v6712_v44, %v4910_v33  ;;  %v2320_v25 = vmul.f32 %v4910_v33, %v6713_v46  ;;  %v6718_v8 = vld [vmem:[#allocation132_spill] sm:$0xff]  ;;  %v6720_v46 = vld [vmem:[#allocation75_spill] sm:$0xff] }
 0x1d1   :  { %v2321_v14 = vmul.f32 %v6714_v63, %v4910_v33  ;;  %v2322_v48 = vmul.f32 %v4910_v33, %v6715_v15  ;;  %v2323_v62 = vmul.f32 %v6716_v61, %v4910_v33  ;;  %v2324_v6 = vmul.f32 %v4910_v33, %v6717_v24  ;;  %v6722_v15 = vld [vmem:[#allocation76_spill] sm:$0xff]  ;;  %v6724_v24 = vld [vmem:[#allocation79_spill] sm:$0xff] }
 0x1d2   :  { %v2325_v59 = vmul.f32 %v6718_v8, %v4910_v33  ;;  %v2326_v44 = vmul.f32 %v4910_v33, %v6719_v2  ;;  %v2327_v43 = vmul.f32 %v6720_v46, %v4910_v33  ;;  %v2328_v63 = vmul.f32 %v4910_v33, %v6721_v35  ;;  %v6726_v2 = vld [vmem:[#allocation142_spill] sm:$0xff]  ;;  %v6728_v35 = vld [vmem:[#allocation143_spill] sm:$0xff] }
 0x1d3   :  { %v2329_v47 = vmul.f32 %v6722_v15, %v4910_v33  ;;  %v2330_v61 = vmul.f32 %v4910_v33, %v6723_v1  ;;  %v2331_v36 = vmul.f32 %v6724_v24, %v4910_v33  ;;  %v2332_v8 = vmul.f32 %v4910_v33, %v6725_v23  ;;  %v6730_v1 = vld [vmem:[#allocation95_spill] sm:$0xff]  ;;  %v6732_v23 = vld [vmem:[#allocation146_spill] sm:$0xff] }
 0x1d4   :  { %v2333_v13 = vmul.f32 %v6726_v2, %v4910_v33  ;;  %v2334_v46 = vmul.f32 %v4910_v33, %v6727_v38  ;;  %v2335_v30 = vmul.f32 %v6728_v35, %v4910_v33  ;;  %v2336_v15 = vmul.f32 %v4910_v33, %v6729_v20 }
 0x1d5   :  { %v2337_v41 = vmul.f32 %v6730_v1, %v4910_v33  ;;  %v2338_v24 = vmul.f32 %v4910_v33, %v6731_v45  ;;  %v2339_v55 = vmul.f32 %v6732_v23, %v4910_v33  ;;  %v5437_v2 = vadd.f32 %v2304_v9, %v4984_v18 }
 0x1d6   :  { %v5440_v38 = vadd.f32 %v2305_v3, %v4984_v18  ;;  %v5443_v35 = vadd.f32 %v2306_v56, %v4984_v18  ;;  %v5446_v20 = vadd.f32 %v2307_v60, %v4984_v18  ;;  %v5449_v1 = vadd.f32 %v2308_v5, %v4984_v18 }
 0x1d7   :  { %v5452_v45 = vadd.f32 %v2309_v53, %v4984_v18  ;;  %v5455_v23 = vadd.f32 %v2310_v37, %v4984_v18  ;;  %v5458_v9 = vadd.f32 %v2311_v31, %v4984_v18  ;;  %v5461_v3 = vadd.f32 %v2312_v28, %v4984_v18 }
 0x1d8   :  { %v5464_v56 = vadd.f32 %v2313_v51, %v4984_v18  ;;  %v5467_v60 = vadd.f32 %v2314_v10, %v4984_v18  ;;  %v5470_v5 = vadd.f32 %v2315_v40, %v4984_v18  ;;  %v5473_v53 = vadd.f32 %v2316_v11, %v4984_v18 }
 0x1d9   :  { %v5476_v37 = vadd.f32 %v2317_v16, %v4984_v18  ;;  %v5479_v31 = vadd.f32 %v2318_v57, %v4984_v18  ;;  %v5482_v28 = vadd.f32 %v2319_v39, %v4984_v18  ;;  %v5485_v51 = vadd.f32 %v2320_v25, %v4984_v18 }
 0x1da   :  { %v5488_v10 = vadd.f32 %v2321_v14, %v4984_v18  ;;  %v5491_v40 = vadd.f32 %v2322_v48, %v4984_v18  ;;  %v5494_v11 = vadd.f32 %v2323_v62, %v4984_v18  ;;  %v5497_v16 = vadd.f32 %v2324_v6, %v4984_v18 }
 0x1db   :  { %v5500_v57 = vadd.f32 %v2325_v59, %v4984_v18  ;;  %v5503_v39 = vadd.f32 %v2326_v44, %v4984_v18  ;;  %v5506_v25 = vadd.f32 %v2327_v43, %v4984_v18  ;;  %v5509_v14 = vadd.f32 %v2328_v63, %v4984_v18 }
 0x1dc   :  { %6733 = vst [vmem:[#allocation78_spill] sm:$0xff] %v5494_v11  ;;  %6734 = vst [vmem:[#allocation90_spill] sm:$0xff] %v5497_v16  ;;  %v5512_v48 = vadd.f32 %v2329_v47, %v4984_v18  ;;  %v5515_v62 = vadd.f32 %v2330_v61, %v4984_v18  ;;  %v5518_v6 = vadd.f32 %v2331_v36, %v4984_v18  ;;  %v6784_v16 = vld [vmem:[#allocation149_spill] sm:$0xff] }
 0x1dd   :  { %6735 = vst [vmem:[#allocation87_spill] sm:$0xff] %v5500_v57  ;;  %6736 = vst [vmem:[#allocation94_spill] sm:$0xff] %v5503_v39  ;;  %v5521_v59 = vadd.f32 %v2332_v8, %v4984_v18  ;;  %v5524_v44 = vadd.f32 %v2333_v13, %v4984_v18  ;;  %v5527_v43 = vadd.f32 %v2334_v46, %v4984_v18  ;;  %v6750_v13 = vld [vmem:[#allocation101_spill] sm:$0xff]  ;;  %v6751_v46 = vld [vmem:[#allocation99_spill] sm:$0xff] }
 0x1de   :  { %6737 = vst [vmem:[#allocation100_spill] sm:$0xff] %v5506_v25  ;;  %6738 = vst [vmem:[#allocation98_spill] sm:$0xff] %v5509_v14  ;;  %v5530_v63 = vadd.f32 %v2335_v30, %v4984_v18  ;;  %v5533_v47 = vadd.f32 %v2336_v15, %v4984_v18  ;;  %v5536_v61 = vadd.f32 %v2337_v41, %v4984_v18  ;;  %v6752_v30 = vld [vmem:[#allocation109_spill] sm:$0xff]  ;;  %v6754_v41 = vld [vmem:[#allocation114_spill] sm:$0xff] }
 0x1df   :  { %6739 = vst [vmem:[#allocation108_spill] sm:$0xff] %v5512_v48  ;;  %6740 = vst [vmem:[#allocation104_spill] sm:$0xff] %v5515_v62  ;;  %v5539_v36 = vadd.f32 %v2338_v24, %v4984_v18  ;;  %v5542_v8 = vadd.f32 %v2339_v55, %v4984_v18  ;;  %v2376_v7 = vmul.f32 %v4910_v33, %v6750_v13  ;;  %v6753_v15 = vld [vmem:[#allocation105_spill] sm:$0xff]  ;;  %v6755_v24 = vld [vmem:[#allocation112_spill] sm:$0xff] }
 0x1e0   :  { %6741 = vst [vmem:[#allocation113_spill] sm:$0xff] %v5518_v6  ;;  %6742 = vst [vmem:[#allocation111_spill] sm:$0xff] %v5521_v59  ;;  %v2377_v58 = vmul.f32 %v6751_v46, %v4910_v33  ;;  %v2378_v21 = vmul.f32 %v4910_v33, %v6752_v30  ;;  %v2379_v42 = vmul.f32 %v6753_v15, %v4910_v33  ;;  %v6756_v55 = vld [vmem:[#allocation51_spill] sm:$0xff]  ;;  %v6757_v13 = vld [vmem:[#allocation116_spill] sm:$0xff] }
 0x1e1   :  { %6743 = vst [vmem:[#allocation48_spill] sm:$0xff] %v5524_v44  ;;  %6744 = vst [vmem:[#allocation115_spill] sm:$0xff] %v5527_v43  ;;  %v2380_v4 = vmul.f32 %v4910_v33, %v6754_v41  ;;  %v2381_v50 = vmul.f32 %v6755_v24, %v4910_v33  ;;  %v2382_v12 = vmul.f32 %v4910_v33, %v6756_v55  ;;  %v6759_v30 = vld [vmem:[#allocation118_spill] sm:$0xff]  ;;  %v6761_v41 = vld [vmem:[#allocation121_spill] sm:$0xff] }
 0x1e2   :  { %6745 = vst [vmem:[#allocation52_spill] sm:$0xff] %v5530_v63  ;;  %6746 = vst [vmem:[#allocation117_spill] sm:$0xff] %v5533_v47  ;;  %v2383_v17 = vmul.f32 %v6757_v13, %v4910_v33  ;;  %v2384_v46 = vmul.f32 %v4910_v33, %v6758_v22  ;;  %v2385_v27 = vmul.f32 %v6759_v30, %v4910_v33  ;;  %v6763_v55 = vld [vmem:[#allocation124_spill] sm:$0xff]  ;;  %v6765_v22 = vld [vmem:[#allocation125_spill] sm:$0xff] }
 0x1e3   :  { %6747 = vst [vmem:[#allocation53_spill] sm:$0xff] %v5536_v61  ;;  %6748 = vst [vmem:[#allocation120_spill] sm:$0xff] %v5539_v36  ;;  %v2386_v15 = vmul.f32 %v4910_v33, %v6760_v34  ;;  %v2387_v26 = vmul.f32 %v6761_v41, %v4910_v33  ;;  %v2388_v24 = vmul.f32 %v4910_v33, %v6762_v54  ;;  %v6767_v34 = vld [vmem:[#allocation128_spill] sm:$0xff]  ;;  %v6769_v54 = vld [vmem:[#allocation130_spill] sm:$0xff] }
 0x1e4   :  { %6749 = vst [vmem:[#allocation59_spill] sm:$0xff] %v5542_v8  ;;  %v2389_v29 = vmul.f32 %v6763_v55, %v4910_v33  ;;  %v2390_v13 = vmul.f32 %v4910_v33, %v6764_v52  ;;  %v2391_v32 = vmul.f32 %v6765_v22, %v4910_v33  ;;  %v2392_v30 = vmul.f32 %v4910_v33, %v6766_v49  ;;  %v6770_v36 = vld [vmem:[#allocation134_spill] sm:$0xff]  ;;  %v6771_v52 = vld [vmem:[#allocation133_spill] sm:$0xff]  ;;  %v6772_v47 = vld [vmem:[#allocation136_spill] sm:$0xff] }
 0x1e5   :  { %v2393_v19 = vmul.f32 %v6767_v34, %v4910_v33  ;;  %v2394_v41 = vmul.f32 %v4910_v33, %v6768_v0  ;;  %v2395_v8 = vmul.f32 %v6769_v54, %v4910_v33  ;;  %v2396_v55 = vmul.f32 %v4910_v33, %v6770_v36  ;;  %v6773_v49 = vld [vmem:[#allocation135_spill] sm:$0xff]  ;;  %v6775_v0 = vld [vmem:[#allocation137_spill] sm:$0xff]  ;;  %v6777_v36 = vld [vmem:[#allocation80_spill] sm:$0xff] }
 0x1e6   :  { %v2397_v61 = vmul.f32 %v6771_v52, %v4910_v33  ;;  %v2398_v22 = vmul.f32 %v4910_v33, %v6772_v47  ;;  %v2399_v63 = vmul.f32 %v6773_v49, %v4910_v33  ;;  %v6774_v43 = vld [vmem:[#allocation139_spill] sm:$0xff]  ;;  %v2401_v44 = vmul.f32 %v6775_v0, %v4910_v33  ;;  %v6776_v59 = vld [vmem:[#allocation141_spill] sm:$0xff]  ;;  %v6780_v14 = vld [vmem:[#allocation92_spill] sm:$0xff] }
 0x1e7   :  { %v2400_v34 = vmul.f32 %v4910_v33, %v6774_v43  ;;  %v2402_v54 = vmul.f32 %v4910_v33, %v6776_v59  ;;  %v2403_v6 = vmul.f32 %v6777_v36, %v4910_v33  ;;  %v6778_v62 = vld [vmem:[#allocation85_spill] sm:$0xff]  ;;  %v6779_v47 = vld [vmem:[#allocation83_spill] sm:$0xff]  ;;  %v2406_v49 = vmul.f32 %v4910_v33, %v6780_v14  ;;  %v6783_v59 = vld [vmem:[#allocation96_spill] sm:$0xff] }
 0x1e8   :  { %v2404_v52 = vmul.f32 %v4910_v33, %v6778_v62  ;;  %v2405_v48 = vmul.f32 %v6779_v47, %v4910_v33  ;;  %v6781_v43 = vld [vmem:[#allocation91_spill] sm:$0xff]  ;;  %v6782_v39 = vld [vmem:[#allocation145_spill] sm:$0xff]  ;;  %v2409_v57 = vmul.f32 %v6783_v59, %v4910_v33  ;;  %v2410_v36 = vmul.f32 %v4910_v33, %v6784_v16 }
 0x1e9   :  { %v2407_v25 = vmul.f32 %v6781_v43, %v4910_v33  ;;  %v2408_v0 = vmul.f32 %v4910_v33, %v6782_v39  ;;  %v6785_v62 = vld [vmem:[#allocation147_spill] sm:$0xff]  ;;  %v5617_v47 = vadd.f32 %v2376_v7, %v4984_v18  ;;  %v5620_v14 = vadd.f32 %v2377_v58, %v4984_v18 }
 0x1ea   :  { %v2411_v11 = vmul.f32 %v6785_v62, %v4910_v33  ;;  %v5623_v43 = vadd.f32 %v2378_v21, %v4984_v18  ;;  %v5626_v39 = vadd.f32 %v2379_v42, %v4984_v18  ;;  %v5629_v59 = vadd.f32 %v2380_v4, %v4984_v18 }
 0x1eb   :  { %v5632_v16 = vadd.f32 %v2381_v50, %v4984_v18  ;;  %v5635_v33 = vadd.f32 %v2382_v12, %v4984_v18  ;;  %v5638_v7 = vadd.f32 %v2383_v17, %v4984_v18  ;;  %v5641_v58 = vadd.f32 %v2384_v46, %v4984_v18 }
 0x1ec   :  { %v5644_v21 = vadd.f32 %v2385_v27, %v4984_v18  ;;  %v5647_v42 = vadd.f32 %v2386_v15, %v4984_v18  ;;  %v5650_v4 = vadd.f32 %v2387_v26, %v4984_v18  ;;  %v5653_v50 = vadd.f32 %v2388_v24, %v4984_v18 }
 0x1ed   :  { %v5656_v12 = vadd.f32 %v2389_v29, %v4984_v18  ;;  %v5659_v17 = vadd.f32 %v2390_v13, %v4984_v18  ;;  %v5662_v46 = vadd.f32 %v2391_v32, %v4984_v18  ;;  %v5665_v27 = vadd.f32 %v2392_v30, %v4984_v18 }
 0x1ee   :  { %v5668_v15 = vadd.f32 %v2393_v19, %v4984_v18  ;;  %v5671_v26 = vadd.f32 %v2394_v41, %v4984_v18  ;;  %v5674_v24 = vadd.f32 %v2395_v8, %v4984_v18  ;;  %v5677_v29 = vadd.f32 %v2396_v55, %v4984_v18 }
 0x1ef   :  { %v5680_v13 = vadd.f32 %v2397_v61, %v4984_v18  ;;  %v5683_v32 = vadd.f32 %v2398_v22, %v4984_v18  ;;  %v5686_v30 = vadd.f32 %v2399_v63, %v4984_v18  ;;  %v5689_v19 = vadd.f32 %v2400_v34, %v4984_v18 }
 0x1f0   :  { %v5692_v41 = vadd.f32 %v2401_v44, %v4984_v18  ;;  %v5695_v8 = vadd.f32 %v2402_v54, %v4984_v18  ;;  %v5698_v55 = vadd.f32 %v2403_v6, %v4984_v18  ;;  %v5701_v61 = vadd.f32 %v2404_v52, %v4984_v18 }
 0x1f1   :  { %v5704_v22 = vadd.f32 %v2405_v48, %v4984_v18  ;;  %v5707_v63 = vadd.f32 %v2406_v49, %v4984_v18  ;;  %v5710_v34 = vadd.f32 %v2407_v25, %v4984_v18  ;;  %v5713_v44 = vadd.f32 %v2408_v0, %v4984_v18 }
 0x1f2   :  { %v5716_v54 = vadd.f32 %v2409_v57, %v4984_v18  ;;  %v5719_v6 = vadd.f32 %v2410_v36, %v4984_v18  ;;  %v5722_v52 = vadd.f32 %v2411_v11, %v4984_v18  ;;  %v2448_v48 = vmax.f32 %v5437_v2, %v5617_v47 }
 0x1f3   :  { %v2449_v49 = vmax.f32 %v5440_v38, %v5620_v14  ;;  %v2450_v25 = vmax.f32 %v5443_v35, %v5623_v43  ;;  %v2451_v0 = vmax.f32 %v5446_v20, %v5626_v39  ;;  %v2452_v57 = vmax.f32 %v5449_v1, %v5629_v59 }
 0x1f4   :  { %v2453_v36 = vmax.f32 %v5452_v45, %v5632_v16  ;;  %v2454_v18 = vmax.f32 %v5455_v23, %v5635_v33  ;;  %v2455_v2 = vmax.f32 %v5458_v9, %v5638_v7  ;;  %v2456_v38 = vmax.f32 %v5461_v3, %v5641_v58  ;;  %v6793_v16 = vld [vmem:[#allocation104_spill] sm:$0xff]  ;;  %v6794_v7 = vld [vmem:[#allocation113_spill] sm:$0xff] }
 0x1f5   :  { %v2457_v35 = vmax.f32 %v5464_v56, %v5644_v21  ;;  %v2458_v20 = vmax.f32 %v5467_v60, %v5647_v42  ;;  %v2459_v1 = vmax.f32 %v5470_v5, %v5650_v4  ;;  %v2460_v45 = vmax.f32 %v5473_v53, %v5653_v50  ;;  %v6786_v53 = vld [vmem:[#allocation78_spill] sm:$0xff]  ;;  %v6795_v21 = vld [vmem:[#allocation111_spill] sm:$0xff]  ;;  %v6796_v4 = vld [vmem:[#allocation48_spill] sm:$0xff] }
 0x1f6   :  { %v2461_v23 = vmax.f32 %v5476_v37, %v5656_v12  ;;  %v2462_v9 = vmax.f32 %v5479_v31, %v5659_v17  ;;  %v2463_v3 = vmax.f32 %v5482_v28, %v5662_v46  ;;  %v2464_v56 = vmax.f32 %v5485_v51, %v5665_v27  ;;  %v6787_v37 = vld [vmem:[#allocation90_spill] sm:$0xff]  ;;  %v6788_v31 = vld [vmem:[#allocation87_spill] sm:$0xff]  ;;  %v6790_v51 = vld [vmem:[#allocation100_spill] sm:$0xff] }
 0x1f7   :  { %v2465_v60 = vmax.f32 %v5488_v10, %v5668_v15  ;;  %v2466_v5 = vmax.f32 %v5491_v40, %v5671_v26  ;;  %v2467_v11 = vmax.f32 %v6786_v53, %v5674_v24  ;;  %v2468_v62 = vmax.f32 %v6787_v37, %v5677_v29  ;;  %v6789_v28 = vld [vmem:[#allocation94_spill] sm:$0xff]  ;;  %v6792_v40 = vld [vmem:[#allocation108_spill] sm:$0xff]  ;;  %v6797_v12 = vld [vmem:[#allocation115_spill] sm:$0xff] }
 0x1f8   :  { %v2469_v47 = vmax.f32 %v6788_v31, %v5680_v13  ;;  %v2470_v14 = vmax.f32 %v6789_v28, %v5683_v32  ;;  %v2471_v43 = vmax.f32 %v6790_v51, %v5686_v30  ;;  %v6791_v10 = vld [vmem:[#allocation98_spill] sm:$0xff]  ;;  %v2473_v59 = vmax.f32 %v6792_v40, %v5692_v41  ;;  %v6798_v46 = vld [vmem:[#allocation52_spill] sm:$0xff]  ;;  %v6799_v15 = vld [vmem:[#allocation117_spill] sm:$0xff] }
 0x1f9   :  { %v2472_v39 = vmax.f32 %v6791_v10, %v5689_v19  ;;  %v2474_v33 = vmax.f32 %v6793_v16, %v5695_v8  ;;  %v2475_v58 = vmax.f32 %v6794_v7, %v5698_v55  ;;  %v2476_v42 = vmax.f32 %v6795_v21, %v5701_v61  ;;  %v6800_v24 = vld [vmem:[#allocation53_spill] sm:$0xff]  ;;  %v6801_v13 = vld [vmem:[#allocation120_spill] sm:$0xff]  ;;  %v6802_v30 = vld [vmem:[#allocation59_spill] sm:$0xff] }
 0x1fa   :  { %v2477_v50 = vmax.f32 %v6796_v4, %v5704_v22  ;;  %v2478_v17 = vmax.f32 %v6797_v12, %v5707_v63  ;;  %v2479_v27 = vmax.f32 %v6798_v46, %v5710_v34  ;;  %v2480_v26 = vmax.f32 %v6799_v15, %v5713_v44  ;;  %v6803_v41 = vld [vmem:[#allocation102_spill] sm:$0xff]  ;;  %v6804_v8 = vld [vmem:[#allocation77_spill] sm:$0xff]  ;;  %v6809_v37 = vld [vmem:[#allocation107_spill] sm:$0xff] }
 0x1fb   :  { %v2481_v29 = vmax.f32 %v6800_v24, %v5716_v54  ;;  %v2482_v32 = vmax.f32 %v6801_v13, %v5719_v6  ;;  %v2483_v19 = vmax.f32 %v6802_v30, %v5722_v52  ;;  %v6805_v55 = vmax.f32 %v6803_v41, %v6804_v8  ;;  %v6806_v22 = vld [vmem:[#allocation106_spill] sm:$0xff]  ;;  %v6807_v63 = vld [vmem:[#allocation89_spill] sm:$0xff]  ;;  %v6812_v51 = vld [vmem:[#allocation103_spill] sm:$0xff] }
 0x1fc   :  { %v6808_v53 = vmax.f32 %v6806_v22, %v6807_v63  ;;  %v6810_v31 = vld [vmem:[#allocation86_spill] sm:$0xff]  ;;  %v6813_v54 = vld [vmem:[#allocation97_spill] sm:$0xff]  ;;  %v6818_v21 = vld [vmem:[#allocation4_spill] sm:$0xff] }
 0x1fd   :  { %v2484_v61 = vmax.f32 %v6805_v55, %v2448_v48  ;;  %v6811_v44 = vmax.f32 %v6809_v37, %v6810_v31  ;;  %v6814_v10 = vmax.f32 %v6812_v51, %v6813_v54  ;;  %v6815_v6 = vld [vmem:[#allocation110_spill] sm:$0xff]  ;;  %v6816_v16 = vld [vmem:[#allocation93_spill] sm:$0xff]  ;;  %v6822_v15 = vld [vmem:[#allocation3_spill] sm:$0xff] }
 0x1fe   :  { %v2485_v34 = vmax.f32 %v6808_v53, %v2449_v49  ;;  %v6817_v7 = vmax.f32 %v6815_v6, %v6816_v16  ;;  %v6819_v4 = vld [vmem:[#allocation5_spill] sm:$0xff]  ;;  %v6821_v46 = vld [vmem:[#allocation2_spill] sm:$0xff]  ;;  %v6824_v13 = vld [vmem:[#allocation8_spill] sm:$0xff] }
 0x1ff   :  { %v2486_v28 = vmax.f32 %v6811_v44, %v2450_v25  ;;  %v2487_v40 = vmax.f32 %v6814_v10, %v2451_v0  ;;  %v6820_v12 = vmax.f32 %v6818_v21, %v6819_v4  ;;  %v6823_v24 = vmax.f32 %v6821_v46, %v6822_v15  ;;  %v6825_v30 = vld [vmem:[#allocation9_spill] sm:$0xff]  ;;  %v6827_v8 = vld [vmem:[#allocation6_spill] sm:$0xff]  ;;  %v6828_v55 = vld [vmem:[#allocation7_spill] sm:$0xff] }
 0x200   :  { %v2488_v52 = vmax.f32 %v6817_v7, %v2452_v57  ;;  %v6826_v41 = vmax.f32 %v6824_v13, %v6825_v30  ;;  %v6829_v22 = vmax.f32 %v6827_v8, %v6828_v55  ;;  %v6830_v63 = vld [vmem:[#allocation12_spill] sm:$0xff]  ;;  %v6831_v53 = vld [vmem:[#allocation13_spill] sm:$0xff]  ;;  %v6833_v31 = vld [vmem:[#allocation10_spill] sm:$0xff] }
 0x201   :  { %v2489_v48 = vmax.f32 %v6820_v12, %v2453_v36  ;;  %v2490_v49 = vmax.f32 %v6823_v24, %v2454_v18  ;;  %v6832_v37 = vmax.f32 %v6830_v63, %v6831_v53  ;;  %v6834_v44 = vld [vmem:[#allocation11_spill] sm:$0xff]  ;;  %v6836_v54 = vld [vmem:[#allocation16_spill] sm:$0xff]  ;;  %v6837_v10 = vld [vmem:[#allocation17_spill] sm:$0xff] }
 0x202   :  { %v2491_v25 = vmax.f32 %v6826_v41, %v2455_v2  ;;  %v2492_v0 = vmax.f32 %v6829_v22, %v2456_v38  ;;  %v6835_v51 = vmax.f32 %v6833_v31, %v6834_v44  ;;  %v6838_v6 = vmax.f32 %v6836_v54, %v6837_v10  ;;  %v6839_v16 = vld [vmem:[#allocation14_spill] sm:$0xff]  ;;  %v6840_v7 = vld [vmem:[#allocation15_spill] sm:$0xff]  ;;  %v6842_v4 = vld [vmem:[#allocation20_spill] sm:$0xff] }
 0x203   :  { %v2493_v57 = vmax.f32 %v6832_v37, %v2457_v35  ;;  %v6841_v21 = vmax.f32 %v6839_v16, %v6840_v7  ;;  %v6843_v12 = vld [vmem:[#allocation21_spill] sm:$0xff]  ;;  %v6845_v15 = vld [vmem:[#allocation18_spill] sm:$0xff]  ;;  %v6846_v24 = vld [vmem:[#allocation19_spill] sm:$0xff] }
 0x204   :  { %v2494_v36 = vmax.f32 %v6835_v51, %v2458_v20  ;;  %v2495_v18 = vmax.f32 %v6838_v6, %v2459_v1  ;;  %v6844_v46 = vmax.f32 %v6842_v4, %v6843_v12  ;;  %v6847_v13 = vmax.f32 %v6845_v15, %v6846_v24  ;;  %v6848_v30 = vld [vmem:[#allocation24_spill] sm:$0xff]  ;;  %v6849_v41 = vld [vmem:[#allocation25_spill] sm:$0xff]  ;;  %v6851_v55 = vld [vmem:[#allocation22_spill] sm:$0xff] }
 0x205   :  { %v2496_v2 = vmax.f32 %v6841_v21, %v2460_v45  ;;  %v6850_v20 = vmax.f32 %v6848_v30, %v6849_v41  ;;  %v6852_v1 = vld [vmem:[#allocation23_spill] sm:$0xff]  ;;  %v6854_v45 = vld [vmem:[#allocation28_spill] sm:$0xff]  ;;  %v6855_v53 = vld [vmem:[#allocation29_spill] sm:$0xff] }
 0x206   :  { %v2497_v38 = vmax.f32 %v6844_v46, %v2461_v23  ;;  %v5841_v35 = vmax.f32 %v6847_v13, %v2462_v9  ;;  %v6853_v22 = vmax.f32 %v6851_v55, %v6852_v1  ;;  %v6856_v37 = vmax.f32 %v6854_v45, %v6855_v53  ;;  %v6857_v23 = vld [vmem:[#allocation26_spill] sm:$0xff]  ;;  %v6858_v44 = vld [vmem:[#allocation27_spill] sm:$0xff]  ;;  %v6860_v54 = vld [vmem:[#allocation32_spill] sm:$0xff] }
 0x207   :  { %v5846_v8 = vmax.f32 %v6850_v20, %v2463_v3  ;;  %v6859_v51 = vmax.f32 %v6857_v23, %v6858_v44  ;;  %v6861_v10 = vld [vmem:[#allocation33_spill] sm:$0xff]  ;;  %v6863_v16 = vld [vmem:[#allocation30_spill] sm:$0xff]  ;;  %v6864_v7 = vld [vmem:[#allocation31_spill] sm:$0xff] }
 0x208   :  { %v5851_v63 = vmax.f32 %v6853_v22, %v2464_v56  ;;  %v5856_v31 = vmax.f32 %v6856_v37, %v2465_v60  ;;  %v6862_v6 = vmax.f32 %v6860_v54, %v6861_v10  ;;  %v6865_v21 = vmax.f32 %v6863_v16, %v6864_v7  ;;  %v6866_v4 = vld [vmem:[#allocation36_spill] sm:$0xff]  ;;  %v6867_v12 = vld [vmem:[#allocation37_spill] sm:$0xff]  ;;  %v6869_v15 = vld [vmem:[#allocation34_spill] sm:$0xff] }
 0x209   :  { %v5861_v9 = vmax.f32 %v6859_v51, %v2466_v5  ;;  %v6868_v46 = vmax.f32 %v6866_v4, %v6867_v12  ;;  %v6870_v24 = vld [vmem:[#allocation35_spill] sm:$0xff]  ;;  %v6872_v30 = vld [vmem:[#allocation40_spill] sm:$0xff]  ;;  %v6873_v41 = vld [vmem:[#allocation41_spill] sm:$0xff] }
 0x20a   :  { %v5866_v3 = vmax.f32 %v6862_v6, %v2467_v11  ;;  %v5871_v56 = vmax.f32 %v6865_v21, %v2468_v62  ;;  %v6871_v13 = vmax.f32 %v6869_v15, %v6870_v24  ;;  %v6874_v20 = vmax.f32 %v6872_v30, %v6873_v41  ;;  %v6875_v55 = vld [vmem:[#allocation38_spill] sm:$0xff]  ;;  %v6876_v1 = vld [vmem:[#allocation39_spill] sm:$0xff]  ;;  %v6878_v45 = vld [vmem:[#allocation44_spill] sm:$0xff] }
 0x20b   :  { %v5876_v60 = vmax.f32 %v6868_v46, %v2469_v47  ;;  %v6877_v22 = vmax.f32 %v6875_v55, %v6876_v1  ;;  %v6879_v53 = vld [vmem:[#allocation45_spill] sm:$0xff]  ;;  %v6881_v23 = vld [vmem:[#allocation42_spill] sm:$0xff]  ;;  %v6882_v44 = vld [vmem:[#allocation43_spill] sm:$0xff] }
 0x20c   :  { %v5881_v5 = vmax.f32 %v6871_v13, %v2470_v14  ;;  %v5886_v11 = vmax.f32 %v6874_v20, %v2471_v43  ;;  %v6880_v37 = vmax.f32 %v6878_v45, %v6879_v53  ;;  %v6883_v51 = vmax.f32 %v6881_v23, %v6882_v44  ;;  %v6884_v54 = vld [vmem:[#allocation49_spill] sm:$0xff]  ;;  %v6885_v10 = vld [vmem:[#allocation50_spill] sm:$0xff]  ;;  %v6888_v7 = vld [vmem:[#allocation47_spill] sm:$0xff] }
 0x20d   :  { %v5891_v62 = vmax.f32 %v6877_v22, %v2472_v39  ;;  %v6886_v6 = vmax.f32 %v6884_v54, %v6885_v10  ;;  %v6887_v16 = vld [vmem:[#allocation46_spill] sm:$0xff]  ;;  %v6890_v4 = vld [vmem:[#allocation57_spill] sm:$0xff]  ;;  %v6894_v24 = vld [vmem:[#allocation55_spill] sm:$0xff] }
 0x20e   :  { %v5896_v47 = vmax.f32 %v6880_v37, %v2473_v59  ;;  %v5901_v14 = vmax.f32 %v6883_v51, %v2474_v33  ;;  %v6889_v21 = vmax.f32 %v6887_v16, %v6888_v7  ;;  %v6891_v12 = vld [vmem:[#allocation58_spill] sm:$0xff]  ;;  %v6896_v30 = vld [vmem:[#allocation65_spill] sm:$0xff]  ;;  %v6906_v44 = vld [vmem:[#allocation71_spill] sm:$0xff]  ;;  %v2520_v16 = vmax.f32 %v2484_v61, 0.0 }
 0x20f   :  { %v5906_v43 = vmax.f32 %v6886_v6, %v2475_v58  ;;  %v6892_v46 = vmax.f32 %v6890_v4, %v6891_v12  ;;  %v6893_v15 = vld [vmem:[#allocation54_spill] sm:$0xff]  ;;  %v6899_v55 = vld [vmem:[#allocation61_spill] sm:$0xff]  ;;  %v2521_v7 = vmax.f32 %v2485_v34, 0.0  ;;  %v2524_v4 = vmax.f32 %v2488_v52, 0.0 }
 0x210   :  { %v5911_v39 = vmax.f32 %v6889_v21, %v2476_v42  ;;  %v6895_v13 = vmax.f32 %v6893_v15, %v6894_v24  ;;  %v6897_v41 = vld [vmem:[#allocation66_spill] sm:$0xff]  ;;  %v6902_v45 = vld [vmem:[#allocation73_spill] sm:$0xff]  ;;  %v2522_v21 = vmax.f32 %v2486_v28, 0.0  ;;  %v2525_v12 = vmax.f32 %v2489_v48, 0.0  ;;  %2556 = vst.msk [vmem:[%s6118_s4] sm:$0xff] %vm1945_vm2, %v2520_v16 }
 0x211   :  { %v5916_v59 = vmax.f32 %v6892_v46, %v2477_v50  ;;  %v6898_v20 = vmax.f32 %v6896_v30, %v6897_v41  ;;  %v6900_v1 = vld [vmem:[#allocation62_spill] sm:$0xff]  ;;  %v6908_v54 = vld [vmem:[#allocation81_spill] sm:$0xff]  ;;  %v2526_v46 = vmax.f32 %v2490_v49, 0.0  ;;  %v2527_v15 = vmax.f32 %v2491_v25, 0.0  ;;  %2557 = vst.msk [vmem:[%s6118_s4 + $0x8] sm:$0xff] %vm1945_vm2, %v2521_v7  ;;  %2560 = vst.msk [vmem:[%s6118_s4 + $0x20] sm:$0xff] %vm1945_vm2, %v2524_v4 }
 0x212   :  { %v5921_v33 = vmax.f32 %v6895_v13, %v2478_v17  ;;  %v6901_v22 = vmax.f32 %v6899_v55, %v6900_v1  ;;  %v6903_v53 = vld [vmem:[#allocation74_spill] sm:$0xff]  ;;  %v2529_v24 = vmax.f32 %v2493_v57, 0.0  ;;  %v2532_v61 = vmax.f32 %v2496_v2, 0.0  ;;  %2558 = vst.msk [vmem:[%s6118_s4 + $0x10] sm:$0xff] %vm1945_vm2, %v2522_v21  ;;  %2561 = vst.msk [vmem:[%s6118_s4 + $0x28] sm:$0xff] %vm1945_vm2, %v2525_v12 }
 0x213   :  { %v5926_v58 = vmax.f32 %v6898_v20, %v2479_v27  ;;  %v6904_v37 = vmax.f32 %v6902_v45, %v6903_v53  ;;  %v6905_v23 = vld [vmem:[#allocation70_spill] sm:$0xff]  ;;  %v2533_v34 = vmax.f32 %v2497_v38, 0.0  ;;  %v2534_v28 = vmax.f32 %v5841_v35, 0.0  ;;  %2562 = vst.msk [vmem:[%s6118_s4 + $0x30] sm:$0xff] %vm1945_vm2, %v2526_v46  ;;  %2563 = vst.msk [vmem:[%s6118_s4 + $0x38] sm:$0xff] %vm1945_vm2, %v2527_v15 }
 0x214   :  { %v5931_v42 = vmax.f32 %v6901_v22, %v2480_v26  ;;  %v6907_v51 = vmax.f32 %v6905_v23, %v6906_v44  ;;  %v6909_v10 = vld [vmem:[#allocation82_spill] sm:$0xff]  ;;  %v2523_v26 = vmax.f32 %v2487_v40, 0.0  ;;  %v2535_v40 = vmax.f32 %v5846_v8, 0.0  ;;  %2565 = vst.msk [vmem:[%s6118_s4 + $0x48] sm:$0xff] %vm1945_vm2, %v2529_v24  ;;  %2568 = vst.msk [vmem:[%s6118_s4 + $0x60] sm:$0xff] %vm1945_vm2, %v2532_v61 }
 0x215   :  { %v5936_v50 = vmax.f32 %v6904_v37, %v2481_v29  ;;  %v6910_v6 = vmax.f32 %v6908_v54, %v6909_v10  ;;  %v2528_v29 = vmax.f32 %v2492_v0, 0.0  ;;  %v2536_v52 = vmax.f32 %v5851_v63, 0.0  ;;  %2569 = vst.msk [vmem:[%s6118_s4 + $0x68] sm:$0xff] %vm1945_vm2, %v2533_v34  ;;  %2570 = vst.msk [vmem:[%s6118_s4 + $0x70] sm:$0xff] %vm1945_vm2, %v2534_v28 }
 0x216   :  { %v5941_v17 = vmax.f32 %v6907_v51, %v2482_v32  ;;  %v2530_v32 = vmax.f32 %v2494_v36, 0.0  ;;  %2559 = vst.msk [vmem:[%s6118_s4 + $0x18] sm:$0xff] %vm1945_vm2, %v2523_v26  ;;  %v2537_v48 = vmax.f32 %v5856_v31, 0.0  ;;  %v2538_v49 = vmax.f32 %v5861_v9, 0.0  ;;  %2571 = vst.msk [vmem:[%s6118_s4 + $0x78] sm:$0xff] %vm1945_vm2, %v2535_v40 }
 0x217   :  { %v5946_v27 = vmax.f32 %v6910_v6, %v2483_v19  ;;  %v2531_v19 = vmax.f32 %v2495_v18, 0.0  ;;  %2564 = vst.msk [vmem:[%s6118_s4 + $0x40] sm:$0xff] %vm1945_vm2, %v2528_v29  ;;  %v2539_v25 = vmax.f32 %v5866_v3, 0.0  ;;  %v2540_v0 = vmax.f32 %v5871_v56, 0.0  ;;  %2572 = vst.msk [vmem:[%s6118_s4 + $0x80] sm:$0xff] %vm1945_vm2, %v2536_v52 }
 0x218   :  { %v2541_v57 = vmax.f32 %v5876_v60, 0.0  ;;  %2566 = vst.msk [vmem:[%s6118_s4 + $0x50] sm:$0xff] %vm1945_vm2, %v2530_v32  ;;  %v2542_v36 = vmax.f32 %v5881_v5, 0.0  ;;  %v2543_v18 = vmax.f32 %v5886_v11, 0.0  ;;  %v2544_v2 = vmax.f32 %v5891_v62, 0.0  ;;  %2573 = vst.msk [vmem:[%s6118_s4 + $0x88] sm:$0xff] %vm1945_vm2, %v2537_v48 }
 0x219   :  { %2567 = vst.msk [vmem:[%s6118_s4 + $0x58] sm:$0xff] %vm1945_vm2, %v2531_v19  ;;  %v2545_v38 = vmax.f32 %v5896_v47, 0.0  ;;  %v2546_v35 = vmax.f32 %v5901_v14, 0.0  ;;  %v2547_v8 = vmax.f32 %v5906_v43, 0.0  ;;  %v2548_v63 = vmax.f32 %v5911_v39, 0.0  ;;  %2574 = vst.msk [vmem:[%s6118_s4 + $0x90] sm:$0xff] %vm1945_vm2, %v2538_v49 }
 0x21a   :  { %v2549_v31 = vmax.f32 %v5916_v59, 0.0  ;;  %2575 = vst.msk [vmem:[%s6118_s4 + $0x98] sm:$0xff] %vm1945_vm2, %v2539_v25  ;;  %2576 = vst.msk [vmem:[%s6118_s4 + $0xa0] sm:$0xff] %vm1945_vm2, %v2540_v0  ;;  %v2550_v9 = vmax.f32 %v5921_v33, 0.0  ;;  %v2551_v3 = vmax.f32 %v5926_v58, 0.0  ;;  %v2552_v56 = vmax.f32 %v5931_v42, 0.0 }
 0x21b   :  { %2577 = vst.msk [vmem:[%s6118_s4 + $0xa8] sm:$0xff] %vm1945_vm2, %v2541_v57  ;;  %v2553_v60 = vmax.f32 %v5936_v50, 0.0  ;;  %2578 = vst.msk [vmem:[%s6118_s4 + $0xb0] sm:$0xff] %vm1945_vm2, %v2542_v36  ;;  %v2554_v5 = vmax.f32 %v5941_v17, 0.0  ;;  %v2555_v11 = vmax.f32 %v5946_v27, 0.0 }
 0x21c   :  { %2579 = vst.msk [vmem:[%s6118_s4 + $0xb8] sm:$0xff] %vm1945_vm2, %v2543_v18  ;;  %2580 = vst.msk [vmem:[%s6118_s4 + $0xc0] sm:$0xff] %vm1945_vm2, %v2544_v2 }
 0x21d   :  { %2581 = vst.msk [vmem:[%s6118_s4 + $0xc8] sm:$0xff] %vm1945_vm2, %v2545_v38  ;;  %2582 = vst.msk [vmem:[%s6118_s4 + $0xd0] sm:$0xff] %vm1945_vm2, %v2546_v35 }
 0x21e   :  { %2583 = vst.msk [vmem:[%s6118_s4 + $0xd8] sm:$0xff] %vm1945_vm2, %v2547_v8  ;;  %2584 = vst.msk [vmem:[%s6118_s4 + $0xe0] sm:$0xff] %vm1945_vm2, %v2548_v63 }
 0x21f   :  { %2585 = vst.msk [vmem:[%s6118_s4 + $0xe8] sm:$0xff] %vm1945_vm2, %v2549_v31  ;;  %2586 = vst.msk [vmem:[%s6118_s4 + $0xf0] sm:$0xff] %vm1945_vm2, %v2550_v9 }
 0x220   :  { %2587 = vst.msk [vmem:[%s6118_s4 + $0xf8] sm:$0xff] %vm1945_vm2, %v2551_v3  ;;  %2588 = vst.msk [vmem:[%s6118_s4 + $0x100] sm:$0xff] %vm1945_vm2, %v2552_v56 }
 0x221   :  { %2589 = vst.msk [vmem:[%s6118_s4 + $0x108] sm:$0xff] %vm1945_vm2, %v2553_v60  ;;  %2590 = vst.msk [vmem:[%s6118_s4 + $0x110] sm:$0xff] %vm1945_vm2, %v2554_v5 }
 0x222   :  { %2591 = vst.msk [vmem:[%s6118_s4 + $0x118] sm:$0xff] %vm1945_vm2, %v2555_v11 }

// kernel: lenet5_bn_forward.4
= control target key start
LH: loop header
LB: loop body
LE: loop exit
PB: predicated region body
PF: predicated region fallthrough
CT: control target
= control target key end

     0   :  { %v658_v0 = vmov 0.0   ;;  %vm57_vm0 = vcmask 1045504   ;;  %vm44_vm1 = vcmask 179200   ;;  %vm504_vm2 = vcmask 130048   ;;  %s1173_s1 = inlined_call_operand.vmem [shape: f32[150,16], index: 1, kind: input, shape index: {}]   ;;  %s1174_s0 = inlined_call_operand.vmem [shape: f32[4,32,150], index: 0, kind: input, shape index: {}]   ;;  %s1175_s2 = inlined_call_operand.vmem [shape: f32[1,16], index: 2, kind: input, shape index: {}]   ;;  %s1176_s3 = inlined_call_operand.vmem [shape: f32[1,16], index: 3, kind: input, shape index: {}]   ;;  %s1177_s4 = inlined_call_operand.vmem [shape: f32[32,16], index: 4, kind: output, shape index: {}]  }
   0x1   :  { %61 = vmatprep.subr.mxu0 %v658_v0  ;;  %167 = vmatprep.subr.mxu1 %v658_v0  ;;  %v689_v1 = vld [vmem:[%s1173_s1 + $0x78] sm:$0xff]  ;;  %v694_v2 = vld [vmem:[%s1173_s1 + $0x70] sm:$0xff]  ;;  %v703_v3 = vld [vmem:[%s1173_s1 + $0x68] sm:$0xff] }
   0x2   :  { %62 = vmatpush1.msra.mxu0 %v689_v1  ;;  %168 = vmatpush1.msra.mxu1 %v689_v1  ;;  %v712_v4 = vld [vmem:[%s1173_s1 + $0x60] sm:$0xff]  ;;  %v721_v5 = vld [vmem:[%s1173_s1 + $0x58] sm:$0xff]  ;;  %v730_v6 = vld [vmem:[%s1173_s1 + $0x50] sm:$0xff] }
   0x3   :  { %63 = vmatprep.subr.mxu0 %v658_v0  ;;  %169 = vmatprep.subr.mxu1 %v658_v0  ;;  %v739_v7 = vld [vmem:[%s1173_s1 + $0x48] sm:$0xff]  ;;  %v748_v8 = vld [vmem:[%s1173_s1 + $0x40] sm:$0xff]  ;;  %v757_v9 = vld [vmem:[%s1173_s1 + $0x38] sm:$0xff] }
   0x4   :  { %64 = vmatpush1.msra.mxu0 %v694_v2  ;;  %170 = vmatpush1.msra.mxu1 %v694_v2  ;;  %v766_v10 = vld [vmem:[%s1173_s1 + $0x30] sm:$0xff]  ;;  %v775_v11 = vld [vmem:[%s1173_s1 + $0x28] sm:$0xff]  ;;  %v784_v12 = vld [vmem:[%s1173_s1 + $0x20] sm:$0xff] }
   0x5   :  { %65 = vmatprep.subr.mxu0 %v658_v0  ;;  %171 = vmatprep.subr.mxu1 %v658_v0  ;;  %v793_v13 = vld [vmem:[%s1173_s1 + $0x18] sm:$0xff]  ;;  %v802_v14 = vld [vmem:[%s1173_s1 + $0x10] sm:$0xff]  ;;  %v811_v15 = vld [vmem:[%s1173_s1 + $0x8] sm:$0xff] }
   0x6   :  { %66 = vmatpush1.msra.mxu0 %v703_v3  ;;  %172 = vmatpush1.msra.mxu1 %v703_v3  ;;  %v820_v16 = vld [vmem:[%s1173_s1] sm:$0xff]  ;;  %v829_v17 = vld [vmem:[%s1173_s1 + $0x90] sm:$0x3f]  ;;  %v838_v18 = vld [vmem:[%s1173_s1 + $0x88] sm:$0xff] }
   0x7   :  { %67 = vmatprep.subr.mxu0 %v658_v0  ;;  %173 = vmatprep.subr.mxu1 %v658_v0  ;;  %v849_v19 = vld [vmem:[%s1173_s1 + $0x80] sm:$0xff]  ;;  %v37_v20 = vld [vmem:[%s1174_s0 + $0x8] sm:$0xff]  ;;  %v39_v24 = vld [vmem:[%s1174_s0 + $0x18] sm:$0xff] }
   0x8   :  { %68 = vmatpush1.msra.mxu0 %v712_v4  ;;  %174 = vmatpush1.msra.mxu1 %v712_v4  ;;  %v617_v21 = vld [vmem:[%s1174_s0 + $0x48] sm:$0xff]  ;;  %v36_v22 = vld [vmem:[%s1174_s0] sm:$0xff]  ;;  %v619_v25 = vld [vmem:[%s1174_s0 + $0x58] sm:$0xff] }
   0x9   :  { %69 = vmatprep.subr.mxu0 %v658_v0  ;;  %175 = vmatprep.subr.mxu1 %v658_v0  ;;  %v616_v23 = vld [vmem:[%s1174_s0 + $0x40] sm:$0xff]  ;;  %v38_v26 = vld [vmem:[%s1174_s0 + $0x10] sm:$0xff]  ;;  %v41_v28 = vld [vmem:[%s1174_s0 + $0x28] sm:$0xff] }
   0xa   :  { %70 = vmatpush1.msra.mxu0 %v721_v5  ;;  %176 = vmatpush1.msra.mxu1 %v721_v5  ;;  %v618_v27 = vld [vmem:[%s1174_s0 + $0x50] sm:$0xff]  ;;  %v621_v29 = vld [vmem:[%s1174_s0 + $0x68] sm:$0xff]  ;;  %v40_v30 = vld [vmem:[%s1174_s0 + $0x20] sm:$0xff] }
   0xb   :  { %71 = vmatprep.subr.mxu0 %v658_v0  ;;  %177 = vmatprep.subr.mxu1 %v658_v0  ;;  %v620_v31 = vld [vmem:[%s1174_s0 + $0x60] sm:$0xff]  ;;  %v43_v32 = vld [vmem:[%s1174_s0 + $0x38] sm:$0xff]  ;;  %v42_v34 = vld [vmem:[%s1174_s0 + $0x30] sm:$0xff] }
   0xc   :  { %72 = vmatpush1.msra.mxu0 %v730_v6  ;;  %178 = vmatpush1.msra.mxu1 %v730_v6  ;;  %v623_v33 = vld [vmem:[%s1174_s0 + $0x78] sm:$0xff]  ;;  %v622_v35 = vld [vmem:[%s1174_s0 + $0x70] sm:$0xff]  ;;  %v630_v36 = vld [vmem:[%s1174_s0 + $0x88] sm:$0xff] }
   0xd   :  { %73 = vmatprep.subr.mxu0 %v658_v0  ;;  %179 = vmatprep.subr.mxu1 %v658_v0  ;;  %v643_v37 = vld [vmem:[%s1174_s0 + $0xc8] sm:$0xff]  ;;  %v629_v38 = vld [vmem:[%s1174_s0 + $0x80] sm:$0xff]  ;;  %v632_v40 = vld [vmem:[%s1174_s0 + $0x98] sm:$0xff] }
   0xe   :  { %74 = vmatpush1.msra.mxu0 %v739_v7  ;;  %180 = vmatpush1.msra.mxu1 %v739_v7  ;;  %v642_v39 = vld [vmem:[%s1174_s0 + $0xc0] sm:$0xff]  ;;  %v645_v41 = vld [vmem:[%s1174_s0 + $0xd8] sm:$0xff]  ;;  %v631_v42 = vld [vmem:[%s1174_s0 + $0x90] sm:$0xff] }
   0xf   :  { %75 = vmatprep.subr.mxu0 %v658_v0  ;;  %181 = vmatprep.subr.mxu1 %v658_v0  ;;  %v644_v43 = vld [vmem:[%s1174_s0 + $0xd0] sm:$0xff]  ;;  %v634_v44 = vld [vmem:[%s1174_s0 + $0xa8] sm:$0xff]  ;;  %v633_v46 = vld [vmem:[%s1174_s0 + $0xa0] sm:$0xff] }
  0x10   :  { %76 = vmatpush1.msra.mxu0 %v748_v8  ;;  %182 = vmatpush1.msra.mxu1 %v748_v8  ;;  %v647_v45 = vld [vmem:[%s1174_s0 + $0xe8] sm:$0xff]  ;;  %v646_v47 = vld [vmem:[%s1174_s0 + $0xe0] sm:$0xff]  ;;  %v636_v48 = vld [vmem:[%s1174_s0 + $0xb8] sm:$0xff] }
  0x11   :  { %77 = vmatprep.subr.mxu0 %v658_v0  ;;  %183 = vmatprep.subr.mxu1 %v658_v0  ;;  %v649_v49 = vld [vmem:[%s1174_s0 + $0xf8] sm:$0xff]  ;;  %v635_v50 = vld [vmem:[%s1174_s0 + $0xb0] sm:$0xff] }
  0x12   :  { %78 = vmatpush1.msra.mxu0 %v757_v9  ;;  %184 = vmatpush1.msra.mxu1 %v757_v9  ;;  %v648_v51 = vld [vmem:[%s1174_s0 + $0xf0] sm:$0xff] }
  0x13   :  { %79 = vmatprep.subr.mxu0 %v658_v0  ;;  %185 = vmatprep.subr.mxu1 %v658_v0 }
  0x14   :  { %80 = vmatpush1.msra.mxu0 %v766_v10  ;;  %186 = vmatpush1.msra.mxu1 %v766_v10 }
  0x15   :  { %81 = vmatprep.subr.mxu0 %v658_v0  ;;  %187 = vmatprep.subr.mxu1 %v658_v0 }
  0x16   :  { %82 = vmatpush1.msra.mxu0 %v775_v11  ;;  %188 = vmatpush1.msra.mxu1 %v775_v11 }
  0x17   :  { %83 = vmatprep.subr.mxu0 %v658_v0  ;;  %189 = vmatprep.subr.mxu1 %v658_v0 }
  0x18   :  { %84 = vmatpush1.msra.mxu0 %v784_v12  ;;  %190 = vmatpush1.msra.mxu1 %v784_v12 }
  0x19   :  { %85 = vmatprep.subr.mxu0 %v658_v0  ;;  %191 = vmatprep.subr.mxu1 %v658_v0 }
  0x1a   :  { %86 = vmatpush1.msra.mxu0 %v793_v13  ;;  %192 = vmatpush1.msra.mxu1 %v793_v13 }
  0x1b   :  { %87 = vmatprep.subr.mxu0 %v658_v0  ;;  %193 = vmatprep.subr.mxu1 %v658_v0 }
  0x1c   :  { %88 = vmatpush1.msra.mxu0 %v802_v14  ;;  %194 = vmatpush1.msra.mxu1 %v802_v14 }
  0x1d   :  { %89 = vmatprep.subr.mxu0 %v658_v0  ;;  %195 = vmatprep.subr.mxu1 %v658_v0 }
  0x1e   :  { %90 = vmatpush1.msra.mxu0 %v811_v15  ;;  %196 = vmatpush1.msra.mxu1 %v811_v15 }
  0x1f   :  { %91 = vmatprep.subr.mxu0 %v658_v0  ;;  %197 = vmatprep.subr.mxu1 %v658_v0 }
  0x20   :  { %92 = vmatpush1.msra.mxu0 %v820_v16  ;;  %198 = vmatpush1.msra.mxu1 %v820_v16 }
  0x21   :  { %119 = vmatprep.subr.mxu0 %v658_v0  ;;  %225 = vmatprep.subr.mxu1 %v658_v0 }
  0x22   :  { %611 = vmatpush2.msk.msra.mxu0 %vm57_vm0, %v829_v17  ;;  %624 = vmatpush2.msk.msra.mxu1 %vm57_vm0, %v829_v17 }
  0x23   :  { %121 = vmatprep.subr.mxu0 %v658_v0  ;;  %227 = vmatprep.subr.mxu1 %v658_v0 }
  0x24   :  { %122 = vmatpush2.msra.mxu0 %v838_v18  ;;  %228 = vmatpush2.msra.mxu1 %v838_v18 }
  0x25   :  { %123 = vmatprep.subr.mxu0 %v658_v0  ;;  %229 = vmatprep.subr.mxu1 %v658_v0 }
  0x26   :  { %124 = vmatpush2.msra.mxu0 %v849_v19  ;;  %612 = vmatprep.mubr.msk.f32.mxu0 %vm44_vm1, %v37_v20 }
  0x27   :  { %230 = vmatpush2.msra.mxu1 %v849_v19  ;;  %625 = vmatprep.mubr.msk.f32.mxu1 %vm44_vm1, %v617_v21 }
  0x28   :  { %126 = vmatmul.mubr.f32.vlgmr.msra.gmra.mxu0 %v36_v22  ;;  %232 = vmatmul.mubr.f32.vlgmr.msra.gmra.mxu1 %v616_v23 }
  0x29   :  { %273 = vmatprep.subr.mxu0 %v658_v0  ;;  %379 = vmatprep.subr.mxu1 %v658_v0 }
  0x2a   :  { %274 = vmatpush1.msra.mxu0 %v689_v1  ;;  %380 = vmatpush1.msra.mxu1 %v689_v1 }
  0x2b   :  { %275 = vmatprep.subr.mxu0 %v658_v0  ;;  %381 = vmatprep.subr.mxu1 %v658_v0 }
  0x2c   :  { %276 = vmatpush1.msra.mxu0 %v694_v2  ;;  %382 = vmatpush1.msra.mxu1 %v694_v2 }
  0x2d   :  { %277 = vmatprep.subr.mxu0 %v658_v0  ;;  %383 = vmatprep.subr.mxu1 %v658_v0 }
  0x2e   :  { %278 = vmatpush1.msra.mxu0 %v703_v3  ;;  %384 = vmatpush1.msra.mxu1 %v703_v3 }
  0x2f   :  { %279 = vmatprep.subr.mxu0 %v658_v0  ;;  %385 = vmatprep.subr.mxu1 %v658_v0 }
  0x30   :  { %280 = vmatpush1.msra.mxu0 %v712_v4  ;;  %386 = vmatpush1.msra.mxu1 %v712_v4 }
  0x31   :  { %281 = vmatprep.subr.mxu0 %v658_v0  ;;  %387 = vmatprep.subr.mxu1 %v658_v0 }
  0x32   :  { %282 = vmatpush1.msra.mxu0 %v721_v5  ;;  %388 = vmatpush1.msra.mxu1 %v721_v5 }
  0x33   :  { %283 = vmatprep.subr.mxu0 %v658_v0  ;;  %389 = vmatprep.subr.mxu1 %v658_v0 }
  0x34   :  { %284 = vmatpush1.msra.mxu0 %v730_v6  ;;  %390 = vmatpush1.msra.mxu1 %v730_v6 }
  0x35   :  { %285 = vmatprep.subr.mxu0 %v658_v0  ;;  %391 = vmatprep.subr.mxu1 %v658_v0 }
  0x36   :  { %286 = vmatpush1.msra.mxu0 %v739_v7  ;;  %392 = vmatpush1.msra.mxu1 %v739_v7 }
  0x37   :  { %287 = vmatprep.subr.mxu0 %v658_v0  ;;  %393 = vmatprep.subr.mxu1 %v658_v0 }
  0x38   :  { %288 = vmatpush1.msra.mxu0 %v748_v8  ;;  %394 = vmatpush1.msra.mxu1 %v748_v8 }
  0x39   :  { %289 = vmatprep.subr.mxu0 %v658_v0  ;;  %395 = vmatprep.subr.mxu1 %v658_v0 }
  0x3a   :  { %290 = vmatpush1.msra.mxu0 %v757_v9  ;;  %396 = vmatpush1.msra.mxu1 %v757_v9 }
  0x3b   :  { %291 = vmatprep.subr.mxu0 %v658_v0  ;;  %397 = vmatprep.subr.mxu1 %v658_v0 }
  0x3c   :  { %292 = vmatpush1.msra.mxu0 %v766_v10  ;;  %398 = vmatpush1.msra.mxu1 %v766_v10 }
  0x3d   :  { %293 = vmatprep.subr.mxu0 %v658_v0  ;;  %399 = vmatprep.subr.mxu1 %v658_v0 }
  0x3e   :  { %294 = vmatpush1.msra.mxu0 %v775_v11  ;;  %400 = vmatpush1.msra.mxu1 %v775_v11 }
  0x3f   :  { %295 = vmatprep.subr.mxu0 %v658_v0  ;;  %401 = vmatprep.subr.mxu1 %v658_v0 }
  0x40   :  { %613 = vmatprep.mubr.msk.f32.mxu0 %vm44_vm1, %v39_v24  ;;  %626 = vmatprep.mubr.msk.f32.mxu1 %vm44_vm1, %v619_v25 }
  0x41   :  { %296 = vmatpush1.msra.mxu0 %v784_v12  ;;  %402 = vmatpush1.msra.mxu1 %v784_v12 }
  0x42   :  { %131 = vmatmul.mubr.f32.gmra.mxu0 %v38_v26  ;;  %237 = vmatmul.mubr.f32.gmra.mxu1 %v618_v27 }
  0x43   :  { %297 = vmatprep.subr.mxu0 %v658_v0  ;;  %403 = vmatprep.subr.mxu1 %v658_v0 }
  0x44   :  { %298 = vmatpush1.msra.mxu0 %v793_v13  ;;  %404 = vmatpush1.msra.mxu1 %v793_v13 }
  0x45   :  { %299 = vmatprep.subr.mxu0 %v658_v0  ;;  %405 = vmatprep.subr.mxu1 %v658_v0 }
  0x46   :  { %614 = vmatprep.mubr.msk.f32.mxu0 %vm44_vm1, %v41_v28  ;;  %627 = vmatprep.mubr.msk.f32.mxu1 %vm44_vm1, %v621_v29 }
  0x47   :  { %300 = vmatpush1.msra.mxu0 %v802_v14  ;;  %406 = vmatpush1.msra.mxu1 %v802_v14 }
  0x48   :  { %136 = vmatmul.mubr.f32.gmra.mxu0 %v40_v30  ;;  %242 = vmatmul.mubr.f32.gmra.mxu1 %v620_v31 }
  0x49   :  { %301 = vmatprep.subr.mxu0 %v658_v0  ;;  %407 = vmatprep.subr.mxu1 %v658_v0 }
  0x4a   :  { %302 = vmatpush1.msra.mxu0 %v811_v15  ;;  %408 = vmatpush1.msra.mxu1 %v811_v15 }
  0x4b   :  { %303 = vmatprep.subr.mxu0 %v658_v0  ;;  %409 = vmatprep.subr.mxu1 %v658_v0 }
  0x4c   :  { %615 = vmatprep.mubr.msk.f32.mxu0 %vm44_vm1, %v43_v32  ;;  %628 = vmatprep.mubr.msk.f32.mxu1 %vm44_vm1, %v623_v33 }
  0x4d   :  { %304 = vmatpush1.msra.mxu0 %v820_v16  ;;  %410 = vmatpush1.msra.mxu1 %v820_v16 }
  0x4e   :  { %141 = vmatmul.mubr.f32.gmra.mxu0 %v42_v34  ;;  %247 = vmatmul.mubr.f32.gmra.mxu1 %v622_v35 }
  0x4f   :  { %331 = vmatprep.subr.mxu0 %v658_v0  ;;  %437 = vmatprep.subr.mxu1 %v658_v0 }
  0x50   :  { %637 = vmatpush2.msk.msra.mxu0 %vm57_vm0, %v829_v17  ;;  %650 = vmatpush2.msk.msra.mxu1 %vm57_vm0, %v829_v17 }
  0x51   :  { %333 = vmatprep.subr.mxu0 %v658_v0  ;;  %439 = vmatprep.subr.mxu1 %v658_v0 }
  0x52   :  { %334 = vmatpush2.msra.mxu0 %v838_v18  ;;  %440 = vmatpush2.msra.mxu1 %v838_v18 }
  0x53   :  { %335 = vmatprep.subr.mxu0 %v658_v0  ;;  %441 = vmatprep.subr.mxu1 %v658_v0 }
  0x54   :  { %336 = vmatpush2.msra.mxu0 %v849_v19  ;;  %638 = vmatprep.mubr.msk.f32.mxu0 %vm44_vm1, %v630_v36 }
  0x55   :  { %442 = vmatpush2.msra.mxu1 %v849_v19  ;;  %651 = vmatprep.mubr.msk.f32.mxu1 %vm44_vm1, %v643_v37 }
  0x56   :  { %338 = vmatmul.mubr.f32.vlgmr.msra.gmra.mxu0 %v629_v38  ;;  %444 = vmatmul.mubr.f32.vlgmr.msra.gmra.mxu1 %v642_v39 }
  0x57   :  { %639 = vmatprep.mubr.msk.f32.mxu0 %vm44_vm1, %v632_v40  ;;  %652 = vmatprep.mubr.msk.f32.mxu1 %vm44_vm1, %v645_v41 }
  0x5a   :  { %343 = vmatmul.mubr.f32.gmra.mxu0 %v631_v42  ;;  %449 = vmatmul.mubr.f32.gmra.mxu1 %v644_v43 }
  0x5b   :  { %640 = vmatprep.mubr.msk.f32.mxu0 %vm44_vm1, %v634_v44  ;;  %653 = vmatprep.mubr.msk.f32.mxu1 %vm44_vm1, %v647_v45 }
  0x5e   :  { %348 = vmatmul.mubr.f32.gmra.mxu0 %v633_v46  ;;  %454 = vmatmul.mubr.f32.gmra.mxu1 %v646_v47 }
  0x5f   :  { %641 = vmatprep.mubr.msk.f32.mxu0 %vm44_vm1, %v636_v48  ;;  %654 = vmatprep.mubr.msk.f32.mxu1 %vm44_vm1, %v649_v49 }
  0x62   :  { %353 = vmatmul.mubr.f32.gmra.mxu0 %v635_v50  ;;  %459 = vmatmul.mubr.f32.gmra.mxu1 %v648_v51 }
  0xe8   :  { %v1047_v52 = vpop.f32.mrf.mxu0  ;;  %v1049_v53 = vpop.f32.mrf.mxu1 }
  0xe9   :  { %v476_v10 = vmul.f32 %v1047_v52, %v1047_v52  ;;  %v480_v15 = vmul.f32 %v1049_v53, %v1049_v53  ;;  %v464_v25 = vadd.f32 %v1049_v53, %v1047_v52 }
  0xea   :  { %v129_v54 = vpop.f32.mrf.mxu0  ;;  %v235_v55 = vpop.f32.mrf.mxu1 }
  0xeb   :  { %v484_v37 = vadd.f32 %v480_v15, %v476_v10 }
 0x102   :  { %v1051_v56 = vpop.f32.mrf.mxu0  ;;  %v1053_v57 = vpop.f32.mrf.mxu1 }
 0x103   :  { %v477_v8 = vmul.f32 %v1051_v56, %v1051_v56  ;;  %v481_v9 = vmul.f32 %v1053_v57, %v1053_v57  ;;  %v465_v19 = vadd.f32 %v1053_v57, %v1051_v56 }
 0x104   :  { %v134_v58 = vpop.f32.mrf.mxu0  ;;  %v240_v59 = vpop.f32.mrf.mxu1 }
 0x105   :  { %v485_v26 = vadd.f32 %v481_v9, %v477_v8 }
 0x108   :  { %v1055_v60 = vpop.f32.mrf.mxu0  ;;  %v1057_v61 = vpop.f32.mrf.mxu1 }
 0x109   :  { %v478_v20 = vmul.f32 %v1055_v60, %v1055_v60  ;;  %v482_v21 = vmul.f32 %v1057_v61, %v1057_v61  ;;  %v466_v27 = vadd.f32 %v1057_v61, %v1055_v60 }
 0x10a   :  { %v139_v62 = vpop.f32.mrf.mxu0  ;;  %v245_v63 = vpop.f32.mrf.mxu1 }
 0x10b   :  { %v486_v38 = vadd.f32 %v482_v21, %v478_v20 }
 0x10e   :  { %v1059_v0 = vpop.f32.mrf.mxu0  ;;  %v1061_v1 = vpop.f32.mrf.mxu1 }
 0x10f   :  { %v479_v42 = vmul.f32 %v1059_v0, %v1059_v0  ;;  %v483_v43 = vmul.f32 %v1061_v1, %v1061_v1  ;;  %v467_v50 = vadd.f32 %v1061_v1, %v1059_v0 }
 0x110   :  { %v144_v2 = vpop.f32.mrf.mxu0  ;;  %v250_v3 = vpop.f32.mrf.mxu1 }
 0x116   :  { %v1063_v4 = vpop.f32.mrf.mxu0  ;;  %v1065_v5 = vpop.f32.mrf.mxu1 }
 0x117   :  { %v488_v11 = vmul.f32 %v1063_v4, %v1063_v4  ;;  %v492_v12 = vmul.f32 %v1065_v5, %v1065_v5  ;;  %v468_v16 = vadd.f32 %v1065_v5, %v1063_v4 }
 0x118   :  { %v341_v6 = vpop.f32.mrf.mxu0  ;;  %v447_v7 = vpop.f32.mrf.mxu1 }
 0x119   :  { %v496_v28 = vadd.f32 %v492_v12, %v488_v11  ;;  %v472_v33 = vadd.f32 %v468_v16, %v464_v25  ;;  %v487_v6 = vadd.f32 %v483_v43, %v479_v42  ;;  %v536_v43 = vld [vmem:[%s1175_s2] sm:$0x1] }
 0x11a   :  { %v1077_v13 = vpop.f32.mrf.mxu0  ;;  %v1079_v14 = vpop.f32.mrf.mxu1 }
 0x11b   :  { %v489_v17 = vmul.f32 %v1077_v13, %v1077_v13  ;;  %v469_v18 = vadd.f32 %v1079_v14, %v1077_v13  ;;  %v493_v22 = vmul.f32 %v1079_v14, %v1079_v14  ;;  %v500_v46 = vadd.f32 %v496_v28, %v484_v37 }
 0x11c   :  { %v346_v23 = vpop.f32.mrf.mxu0  ;;  %v452_v24 = vpop.f32.mrf.mxu1  ;;  %v505_v51 = vsel %vm504_vm2, %v472_v33, 0.0 }
 0x11d   :  { %v473_v29 = vadd.f32 %v469_v18, %v465_v19  ;;  %v497_v30 = vadd.f32 %v493_v22, %v489_v17  ;;  %v520_v8 = vsel %vm504_vm2, %v500_v46, 0.0 }
 0x11e   :  { %v1101_v31 = vpop.f32.mrf.mxu0  ;;  %v1103_v32 = vpop.f32.mrf.mxu1 }
 0x11f   :  { %v490_v34 = vmul.f32 %v1101_v31, %v1101_v31  ;;  %v470_v35 = vadd.f32 %v1103_v32, %v1101_v31  ;;  %v494_v36 = vmul.f32 %v1103_v32, %v1103_v32  ;;  %v501_v39 = vadd.f32 %v497_v30, %v485_v26 }
 0x120   :  { %v351_v40 = vpop.f32.mrf.mxu0  ;;  %v457_v41 = vpop.f32.mrf.mxu1  ;;  %v506_v47 = vsel %vm504_vm2, %v473_v29, 0.0 }
 0x121   :  { %v474_v44 = vadd.f32 %v470_v35, %v466_v27  ;;  %v498_v45 = vadd.f32 %v494_v36, %v490_v34  ;;  %v521_v58 = vsel %vm504_vm2, %v501_v39, 0.0  ;;  %v507_v7 = vadd.f32 %v506_v47, %v505_v51  ;;  %v540_v47 = vld [vmem:[%s1176_s3] sm:$0x1] }
 0x122   :  { %v1116_v48 = vpop.f32.mrf.mxu0  ;;  %v1118_v49 = vpop.f32.mrf.mxu1  ;;  %v522_v12 = vadd.f32 %v521_v58, %v520_v8  ;;  %v544_v41 = vlaneseq }
 0x123   :  { %v502_v54 = vadd.f32 %v498_v45, %v486_v38  ;;  %v491_v55 = vmul.f32 %v1116_v48, %v1116_v48  ;;  %v508_v59 = vsel %vm504_vm2, %v474_v44, 0.0  ;;  %v471_v62 = vadd.f32 %v1118_v49, %v1116_v48 }
 0x124   :  { %v495_v63 = vmul.f32 %v1118_v49, %v1118_v49  ;;  %v356_v2 = vpop.f32.mrf.mxu0  ;;  %v462_v3 = vpop.f32.mrf.mxu1  ;;  %v509_v15 = vadd.f32 %v508_v59, %v507_v7  ;;  %v545_v42 = vshrl.u32 %v544_v41, 7 }
 0x125   :  { %v523_v9 = vsel %vm504_vm2, %v502_v54, 0.0  ;;  %v475_v10 = vadd.f32 %v471_v62, %v467_v50 }
 0x126   :  { %v499_v11 = vadd.f32 %v495_v63, %v491_v55  ;;  %v524_v18 = vadd.f32 %v523_v9, %v522_v12  ;;  %v546_v44 = vsub.s32 0, %v545_v42 }
 0x127   :  { %v510_v17 = vsel %vm504_vm2, %v475_v10, 0.0 }
 0x128   :  { %v503_v16 = vadd.f32 %v499_v11, %v487_v6  ;;  %v511_v19 = vadd.f32 %v510_v17, %v509_v15 }
 0x12a   :  { %v525_v20 = vsel %vm504_vm2, %v503_v16, 0.0  ;;  %v512_v21 = vrot.slane %v511_v19, 4 }
 0x12b   :  { %v526_v22 = vadd.f32 %v525_v20, %v524_v18 }
 0x12c   :  { %v513_v23 = vadd.f32 %v512_v21, %v511_v19 }
 0x12d   :  { %v527_v24 = vrot.slane %v526_v22, 4 }
 0x12e   :  { %v514_v25 = vrot.slane %v513_v23, 2 }
 0x12f   :  { %v528_v26 = vadd.f32 %v527_v24, %v526_v22 }
 0x130   :  { %v515_v27 = vadd.f32 %v514_v25, %v513_v23 }
 0x131   :  { %v529_v28 = vrot.slane %v528_v26, 2 }
 0x132   :  { %v516_v29 = vrot.slane %v515_v27, 1 }
 0x133   :  { %v530_v30 = vadd.f32 %v529_v28, %v528_v26 }
 0x134   :  { %v517_v33 = vadd.f32 %v516_v29, %v515_v27 }
 0x135   :  { %v531_v34 = vrot.slane %v530_v30, 1 }
 0x136   :  { %v519_v35 = vmul.f32 0.0078125, %v517_v33 }
 0x137   :  { %v532_v36 = vadd.f32 %v531_v34, %v530_v30 }
 0x138   :  { %v534_v38 = vmul.f32 %v519_v35, %v519_v35 }
 0x139   :  { %v533_v37 = vmul.f32 0.0078125, %v532_v36 }
 0x13b   :  { %v535_v39 = vsub.f32 %v533_v37, %v534_v38 }
 0x13d   :  { %v537_v40 = vadd.f32 1e-05, %v535_v39 }
 0x13f   :  { %656 = vrsqrt.f32 %v537_v40 }
 0x14c   :  { %v657_v45 = vpop.eup %656 }
 0x14d   :  { %v539_v46 = vmul.f32 %v657_v45, %v536_v43 }
 0x14f   :  { %v541_v50 = vmul.f32 %v539_v46, %v519_v35  ;;  %v547_v51 = vrot.slane %v539_v46, %v546_v44 }
 0x151   :  { %v542_v54 = vsub.f32 %v540_v47, %v541_v50  ;;  %v549_v55 = vmul.f32 %v547_v51, %v1047_v52  ;;  %v550_v58 = vmul.f32 %v547_v51, %v1051_v56  ;;  %v551_v59 = vmul.f32 %v547_v51, %v1055_v60 }
 0x152   :  { %v552_v62 = vmul.f32 %v547_v51, %v1059_v0  ;;  %v563_v63 = vmul.f32 %v547_v51, %v1049_v53  ;;  %v564_v3 = vmul.f32 %v547_v51, %v1053_v57  ;;  %v565_v6 = vmul.f32 %v547_v51, %v1057_v61 }
 0x153   :  { %v557_v2 = vrot.slane %v542_v54, %v546_v44  ;;  %v566_v7 = vmul.f32 %v547_v51, %v1061_v1  ;;  %v575_v8 = vmul.f32 %v547_v51, %v1063_v4  ;;  %v576_v9 = vmul.f32 %v547_v51, %v1077_v13 }
 0x154   :  { %v577_v52 = vmul.f32 %v547_v51, %v1101_v31  ;;  %v578_v56 = vmul.f32 %v547_v51, %v1116_v48  ;;  %v583_v1 = vmul.f32 %v547_v51, %v1065_v5  ;;  %v584_v4 = vmul.f32 %v547_v51, %v1079_v14 }
 0x155   :  { %v559_v60 = vadd.f32 %v557_v2, %v549_v55  ;;  %v560_v10 = vadd.f32 %v557_v2, %v550_v58  ;;  %v561_v0 = vadd.f32 %v557_v2, %v551_v59  ;;  %v562_v11 = vadd.f32 %v557_v2, %v552_v62 }
 0x156   :  { %v567_v53 = vadd.f32 %v563_v63, %v557_v2  ;;  %v568_v12 = vadd.f32 %v564_v3, %v557_v2  ;;  %v569_v15 = vadd.f32 %v565_v6, %v557_v2  ;;  %v570_v57 = vadd.f32 %v566_v7, %v557_v2 }
 0x157   :  { %v579_v16 = vadd.f32 %v575_v8, %v557_v2  ;;  %v580_v61 = vadd.f32 %v576_v9, %v557_v2  ;;  %v581_v18 = vadd.f32 %v577_v52, %v557_v2  ;;  %v582_v31 = vadd.f32 %v578_v56, %v557_v2 }
 0x158   :  { %v571_v17 = vmax.f32 %v559_v60, %v567_v53  ;;  %v572_v13 = vmax.f32 %v560_v10, %v568_v12  ;;  %v585_v48 = vmul.f32 %v547_v51, %v1103_v32  ;;  %v586_v19 = vmul.f32 %v547_v51, %v1118_v49 }
 0x159   :  { %v587_v20 = vadd.f32 %v583_v1, %v557_v2  ;;  %v588_v21 = vadd.f32 %v584_v4, %v557_v2  ;;  %v573_v22 = vmax.f32 %v561_v0, %v569_v15  ;;  %v574_v23 = vmax.f32 %v562_v11, %v570_v57 }
 0x15a   :  { %v589_v24 = vadd.f32 %v585_v48, %v557_v2  ;;  %v590_v25 = vadd.f32 %v586_v19, %v557_v2 }
 0x15b   :  { %v591_v26 = vmax.f32 %v579_v16, %v587_v20  ;;  %v592_v27 = vmax.f32 %v580_v61, %v588_v21 }
 0x15c   :  { %v593_v28 = vmax.f32 %v581_v18, %v589_v24  ;;  %v594_v5 = vmax.f32 %v582_v31, %v590_v25 }
 0x15d   :  { %v595_v29 = vmax.f32 %v571_v17, %v591_v26  ;;  %v596_v14 = vmax.f32 %v572_v13, %v592_v27 }
 0x15e   :  { %v597_v30 = vmax.f32 %v573_v22, %v593_v28  ;;  %v598_v33 = vmax.f32 %v574_v23, %v594_v5 }
 0x15f   :  { %v599_v34 = vmax.f32 %v595_v29, 0.0  ;;  %v600_v35 = vmax.f32 %v596_v14, 0.0 }
 0x160   :  { %v601_v36 = vmax.f32 %v597_v30, 0.0  ;;  %v602_v32 = vmax.f32 %v598_v33, 0.0 }
 0x161   :  { %603 = vst.msk [vmem:[%s1177_s4] sm:$0xff] %vm504_vm2, %v599_v34  ;;  %604 = vst.msk [vmem:[%s1177_s4 + $0x8] sm:$0xff] %vm504_vm2, %v600_v35 }
 0x162   :  { %605 = vst.msk [vmem:[%s1177_s4 + $0x10] sm:$0xff] %vm504_vm2, %v601_v36  ;;  %606 = vst.msk [vmem:[%s1177_s4 + $0x18] sm:$0xff] %vm504_vm2, %v602_v32 }

// kernel: lenet5_bn_forward.5
= control target key start
LH: loop header
LB: loop body
LE: loop exit
PB: predicated region body
PF: predicated region fallthrough
CT: control target
= control target key end

     0   :  { %s820_s0 = inlined_call_operand.vmem [shape: f32[2,256], index: 0, kind: input, shape index: {}]   ;;  %s821_s1 = inlined_call_operand.vmem [shape: f32[256,120], index: 1, kind: input, shape index: {}]   ;;  %s822_s2 = inlined_call_operand.vmem [shape: f32[1,120], index: 2, kind: input, shape index: {}]   ;;  %s823_s3 = inlined_call_operand.vmem [shape: f32[1,120], index: 3, kind: input, shape index: {}]   ;;  %s824_s4 = inlined_call_operand.vmem [shape: f32[120,84], index: 4, kind: input, shape index: {}]   ;;  %s825_s5 = inlined_call_operand.vmem [shape: f32[1,84], index: 5, kind: input, shape index: {}]   ;;  %s826_s6 = inlined_call_operand.vmem [shape: f32[84,10], index: 6, kind: input, shape index: {}]   ;;  %s827_s7 = inlined_call_operand.vmem [shape: f32[1,10], index: 7, kind: input, shape index: {}]   ;;  %s828_s8 = inlined_call_operand.hbm [shape: f32[2,10], index: 8, kind: output, shape index: {}]  }
   0x1   :  { %v62_v0 = vld [vmem:[%s821_s1 + $0xf8] sm:$0xff]  ;;  %v61_v2 = vld [vmem:[%s821_s1 + $0xf0] sm:$0xff]  ;;  %v60_v4 = vld [vmem:[%s821_s1 + $0xe8] sm:$0xff] }
   0x2   :  { %v46_v1 = vld [vmem:[%s821_s1 + $0x78] sm:$0xff]  ;;  %402 = vmatprep.subr.mxu0 %v62_v0  ;;  %v45_v3 = vld [vmem:[%s821_s1 + $0x70] sm:$0xff]  ;;  %v44_v5 = vld [vmem:[%s821_s1 + $0x68] sm:$0xff] }
   0x3   :  { %403 = vmatpush3.msra.mxu0 %v46_v1  ;;  %v59_v6 = vld [vmem:[%s821_s1 + $0xe0] sm:$0xff]  ;;  %v58_v8 = vld [vmem:[%s821_s1 + $0xd8] sm:$0xff]  ;;  %v57_v10 = vld [vmem:[%s821_s1 + $0xd0] sm:$0xff] }
   0x4   :  { %404 = vmatprep.subr.mxu0 %v61_v2  ;;  %v43_v7 = vld [vmem:[%s821_s1 + $0x60] sm:$0xff]  ;;  %v42_v9 = vld [vmem:[%s821_s1 + $0x58] sm:$0xff]  ;;  %v41_v11 = vld [vmem:[%s821_s1 + $0x50] sm:$0xff] }
   0x5   :  { %405 = vmatpush3.msra.mxu0 %v45_v3  ;;  %v56_v12 = vld [vmem:[%s821_s1 + $0xc8] sm:$0xff]  ;;  %v396_v13 = vld.sshfl [vmem:[%s820_s0] sm:$0x33 pattern:$0x76325410] }
   0x6   :  { %406 = vmatprep.subr.mxu0 %v60_v4  ;;  %v40_v14 = vld [vmem:[%s821_s1 + $0x48] sm:$0xff]  ;;  %v71_v15 = vcombine.high %v396_v13, %v396_v13 }
   0x7   :  { %407 = vmatpush3.msra.mxu0 %v44_v5 }
   0x8   :  { %408 = vmatprep.subr.mxu0 %v59_v6 }
   0x9   :  { %409 = vmatpush3.msra.mxu0 %v43_v7 }
   0xa   :  { %410 = vmatprep.subr.mxu0 %v58_v8 }
   0xb   :  { %411 = vmatpush3.msra.mxu0 %v42_v9 }
   0xc   :  { %412 = vmatprep.subr.mxu0 %v57_v10 }
   0xd   :  { %13 = vsyncpa [#allocation3], 0  ;;  %413 = vmatpush3.msra.mxu0 %v41_v11  ;;  %v55_v16 = vld [vmem:[%s821_s1 + $0xc0] sm:$0xff]  ;;  %138 = vmatprep.mubr.f32.mxu0 %v71_v15  ;;  %v54_v18 = vld [vmem:[%s821_s1 + $0xb8] sm:$0xff]  ;;  %v550_v34 = vmov 0.0   ;;  %vm551_vm0 = vmmov 0   ;;  %v173_v9 = vlaneseq }
   0xe   :  { %414 = vmatprep.subr.mxu0 %v56_v12  ;;  %v39_v17 = vld [vmem:[%s821_s1 + $0x40] sm:$0xff]  ;;  %v38_v19 = vld [vmem:[%s821_s1 + $0x38] sm:$0xff]  ;;  %v53_v20 = vld [vmem:[%s821_s1 + $0xb0] sm:$0xff]  ;;  %465 = vmatprep.subr.mxu1 %v550_v34  ;;  %vm144_vm1 = vcmask 975872   ;;  %vm209_vm2 = vcmask 982016   ;;  %vm306_vm3 = vcmask 1043456  }
   0xf   :  { %415 = vmatpush3.msra.mxu0 %v40_v14  ;;  %v37_v21 = vld [vmem:[%s821_s1 + $0x30] sm:$0xff]  ;;  %v52_v22 = vld [vmem:[%s821_s1 + $0xa8] sm:$0xff]  ;;  %v51_v24 = vld [vmem:[%s821_s1 + $0xa0] sm:$0xff]  ;;  %495 = vmatprep.mubr.msk.f32.mxu1 %vm551_vm0, %v550_v34  ;;  %v174_v10 = vshrl.u32 %v173_v9, 7  ;;  %vm302_vm4 = vcmask 687104   ;;  %s552_s10 = smov [#allocation2]  }
  0x10   :  { %416 = vmatprep.subr.mxu0 %v55_v16  ;;  %v36_v23 = vld [vmem:[%s821_s1 + $0x28] sm:$0xff]  ;;  %v35_v25 = vld [vmem:[%s821_s1 + $0x20] sm:$0xff]  ;;  %v50_v26 = vld [vmem:[%s821_s1 + $0x98] sm:$0xff]  ;;  %s388_s11 = sshll.u32 %s552_s10, 4  ;;  %vm380_vm5 = vcmask 74752   ;;  %s389_s11 = int_to_ptr.vmem [resolvable:$true] %s388_s11 }
  0x11   :  { %417 = vmatpush3.msra.mxu0 %v39_v17  ;;  %v34_v27 = vld [vmem:[%s821_s1 + $0x18] sm:$0xff]  ;;  %v49_v28 = vld [vmem:[%s821_s1 + $0x90] sm:$0xff]  ;;  %v48_v30 = vld [vmem:[%s821_s1 + $0x88] sm:$0xff]  ;;  %v175_v12 = vsub.s32 0, %v174_v10  ;;  %p533_p1 = scmp.lt.s32.totalorder %s389_s11, %s389_s11 }
  0x12   :  { %418 = vmatprep.subr.mxu0 %v54_v18  ;;  %v33_v29 = vld [vmem:[%s821_s1 + $0x10] sm:$0xff]  ;;  %v32_v31 = vld [vmem:[%s821_s1 + $0x8] sm:$0xff]  ;;  %v47_v32 = vld [vmem:[%s821_s1 + $0x80] sm:$0xff] }
  0x13   :  { %419 = vmatpush3.msra.mxu0 %v38_v19  ;;  %v31_v33 = vld [vmem:[%s821_s1] sm:$0xff]  ;;  %v201_v35 = vld [vmem:[%s824_s4 + $0x70] sm:$0xff]  ;;  %v200_v36 = vld [vmem:[%s824_s4 + $0x68] sm:$0xff] }
  0x14   :  { %420 = vmatprep.subr.mxu0 %v53_v20  ;;  %466 = vmatpush3.msra.mxu1 %v201_v35  ;;  %v199_v37 = vld [vmem:[%s824_s4 + $0x60] sm:$0xff]  ;;  %v198_v38 = vld [vmem:[%s824_s4 + $0x58] sm:$0xff]  ;;  %v197_v39 = vld [vmem:[%s824_s4 + $0x50] sm:$0xff] }
  0x15   :  { %421 = vmatpush3.msra.mxu0 %v37_v21  ;;  %467 = vmatprep.subr.mxu1 %v550_v34  ;;  %v196_v40 = vld [vmem:[%s824_s4 + $0x48] sm:$0xff]  ;;  %v195_v41 = vld [vmem:[%s824_s4 + $0x40] sm:$0xff]  ;;  %v194_v42 = vld [vmem:[%s824_s4 + $0x38] sm:$0xff] }
  0x16   :  { %422 = vmatprep.subr.mxu0 %v52_v22  ;;  %468 = vmatpush3.msra.mxu1 %v200_v36  ;;  %v193_v43 = vld [vmem:[%s824_s4 + $0x30] sm:$0xff]  ;;  %v192_v44 = vld [vmem:[%s824_s4 + $0x28] sm:$0xff]  ;;  %v191_v45 = vld [vmem:[%s824_s4 + $0x20] sm:$0xff] }
  0x17   :  { %423 = vmatpush3.msra.mxu0 %v36_v23  ;;  %469 = vmatprep.subr.mxu1 %v550_v34  ;;  %v190_v46 = vld [vmem:[%s824_s4 + $0x18] sm:$0xff]  ;;  %v189_v47 = vld [vmem:[%s824_s4 + $0x10] sm:$0xff]  ;;  %v188_v48 = vld [vmem:[%s824_s4 + $0x8] sm:$0xff] }
  0x18   :  { %424 = vmatprep.subr.mxu0 %v51_v24  ;;  %470 = vmatpush3.msra.mxu1 %v199_v37  ;;  %v187_v49 = vld [vmem:[%s824_s4] sm:$0xff]  ;;  %v294_v23 = vld [vmem:[%s826_s6 + $0x50] sm:$0xf]  ;;  %v293_v24 = vld [vmem:[%s826_s6 + $0x48] sm:$0xff] }
  0x19   :  { %425 = vmatpush3.msra.mxu0 %v35_v25  ;;  %471 = vmatprep.subr.mxu1 %v550_v34  ;;  %v165_v11 = vld [vmem:[%s822_s2] sm:$0x1] }
  0x1a   :  { %426 = vmatprep.subr.mxu0 %v50_v26  ;;  %472 = vmatpush3.msra.mxu1 %v198_v38  ;;  %v169_v15 = vld [vmem:[%s823_s3] sm:$0x1]  ;;  %v291_v26 = vld [vmem:[%s826_s6 + $0x38] sm:$0xff] }
  0x1b   :  { %427 = vmatpush3.msra.mxu0 %v34_v27  ;;  %473 = vmatprep.subr.mxu1 %v550_v34  ;;  %v292_v25 = vld [vmem:[%s826_s6 + $0x40] sm:$0xff]  ;;  %v290_v27 = vld [vmem:[%s826_s6 + $0x30] sm:$0xff] }
  0x1c   :  { %428 = vmatprep.subr.mxu0 %v49_v28  ;;  %474 = vmatpush3.msra.mxu1 %v197_v39  ;;  %v289_v28 = vld [vmem:[%s826_s6 + $0x28] sm:$0xff]  ;;  %v397_v35 = vld [vmem:[%s825_s5] ss:$0 sm:$0xff] }
  0x1d   :  { %429 = vmatpush3.msra.mxu0 %v33_v29  ;;  %475 = vmatprep.subr.mxu1 %v550_v34  ;;  %v288_v29 = vld [vmem:[%s826_s6 + $0x20] sm:$0xff] }
  0x1e   :  { %430 = vmatprep.subr.mxu0 %v48_v30  ;;  %476 = vmatpush3.msra.mxu1 %v196_v40  ;;  %v287_v30 = vld [vmem:[%s826_s6 + $0x18] sm:$0xff]  ;;  %v399_v40 = vld [vmem:[%s827_s7] ss:$0 sm:$0xff] }
  0x1f   :  { %431 = vmatpush3.msra.mxu0 %v32_v31  ;;  %477 = vmatprep.subr.mxu1 %v550_v34  ;;  %v286_v31 = vld [vmem:[%s826_s6 + $0x10] sm:$0xff] }
  0x20   :  { %432 = vmatprep.subr.mxu0 %v47_v32  ;;  %478 = vmatpush3.msra.mxu1 %v195_v41  ;;  %v285_v32 = vld [vmem:[%s826_s6 + $0x8] sm:$0xff] }
  0x21   :  { %433 = vmatpush3.msra.mxu0 %v31_v33  ;;  %479 = vmatprep.subr.mxu1 %v550_v34  ;;  %v284_v33 = vld [vmem:[%s826_s6] sm:$0xff]  ;;  %s528_s6 = scalar_lea.vmem %s389_s11, 32 }
  0x22   :  { %139 = vmatmul.mubr.f32.vlgmr.msra.gmra.mxu0 %v396_v13  ;;  %480 = vmatpush3.msra.mxu1 %v194_v42  ;;  %p529_p0 = scmp.ne.s32.totalorder %s389_s11, %s528_s6  ;;  %p534_p2 = scmp.lt.s32.totalorder %s528_s6, %s528_s6 }
  0x23   :  { %481 = vmatprep.subr.mxu1 %v550_v34 }
  0x24   :  { %482 = vmatpush3.msra.mxu1 %v193_v43  ;;  %p535_p3 = por %p534_p2, %p533_p1 }
  0x25   :  { %483 = vmatprep.subr.mxu1 %v550_v34 }
  0x26   :  { %484 = vmatpush3.msra.mxu1 %v192_v44  ;;  %p536_p4 = pnand %p535_p3, %p529_p0 }
  0x27   :  { %485 = vmatprep.subr.mxu1 %v550_v34 }
  0x28   :  { %486 = vmatpush3.msra.mxu1 %v191_v45 }
  0x29   :  { %487 = vmatprep.subr.mxu1 %v550_v34 }
  0x2a   :  { %488 = vmatpush3.msra.mxu1 %v190_v46 }
  0x2b   :  { %489 = vmatprep.subr.mxu1 %v550_v34 }
  0x2c   :  { %490 = vmatpush3.msra.mxu1 %v189_v47 }
  0x2d   :  { %491 = vmatprep.subr.mxu1 %v550_v34 }
  0x2e   :  { %492 = vmatpush3.msra.mxu1 %v188_v48 }
  0x2f   :  { %493 = vmatprep.subr.mxu1 %v550_v34 }
  0x30   :  { %494 = vmatpush3.msra.mxu1 %v187_v49 }
  0x31   :  { %498 = vmatprep.subr.mxu1 %v550_v34 }
  0xe2   :  { %v434_v50 = vpop.f32.mrf.mxu0 }
  0xe4   :  { %v435_v51 = vpop.f32.mrf.mxu0 }
  0xe5   :  { %v436_v52 = vadd.f32 %v435_v51, %v434_v50 }
  0xe7   :  { %v145_v53 = vsel %vm144_vm1, %v436_v52, 0.0  ;;  %v154_v54 = vmul.f32 %v436_v52, %v436_v52 }
  0xe8   :  { %v146_v55 = vrot.slane %v145_v53, 4 }
  0xe9   :  { %v155_v56 = vsel %vm144_vm1, %v154_v54, 0.0 }
  0xea   :  { %v147_v57 = vadd.f32 %v146_v55, %v145_v53  ;;  %v156_v58 = vrot.slane %v155_v56, 4 }
  0xec   :  { %v148_v59 = vrot.slane %v147_v57, 2  ;;  %v157_v60 = vadd.f32 %v156_v58, %v155_v56 }
  0xee   :  { %v149_v61 = vadd.f32 %v148_v59, %v147_v57  ;;  %v158_v62 = vrot.slane %v157_v60, 2 }
  0xf0   :  { %v150_v63 = vrot.slane %v149_v61, 1  ;;  %v159_v0 = vadd.f32 %v158_v62, %v157_v60 }
  0xf2   :  { %v151_v1 = vadd.f32 %v150_v63, %v149_v61  ;;  %v160_v2 = vrot.slane %v159_v0, 1 }
  0xf4   :  { %v153_v3 = vmul.f32 0.5, %v151_v1  ;;  %v161_v4 = vadd.f32 %v160_v2, %v159_v0 }
  0xf6   :  { %v162_v5 = vmul.f32 0.5, %v161_v4  ;;  %v163_v6 = vmul.f32 %v153_v3, %v153_v3 }
  0xf8   :  { %v164_v7 = vsub.f32 %v162_v5, %v163_v6 }
  0xfa   :  { %v166_v8 = vadd.f32 1e-05, %v164_v7 }
  0xfc   :  { %526 = vrsqrt.f32 %v166_v8 }
 0x109   :  { %v527_v13 = vpop.eup %526 }
 0x10a   :  { %v168_v14 = vmul.f32 %v527_v13, %v165_v11 }
 0x10c   :  { %v170_v16 = vmul.f32 %v168_v14, %v153_v3  ;;  %v176_v17 = vrot.slane %v168_v14, %v175_v12 }
 0x10e   :  { %v171_v18 = vsub.f32 %v169_v15, %v170_v16  ;;  %v178_v19 = vmul.f32 %v436_v52, %v176_v17 }
 0x110   :  { %v183_v20 = vrot.slane %v171_v18, %v175_v12 }
 0x112   :  { %v185_v21 = vadd.f32 %v183_v20, %v178_v19 }
 0x114   :  { %v186_v22 = vmax.f32 %v185_v21, 0.0 }
 0x116   :  { %496 = vmatmul.mubr.msk.f32.vlgmr.msra.gmra.mxu1 %vm209_vm2, %v186_v22 }
 0x117   :  { %499 = vmatpush3.msk.msra.mxu1 %vm306_vm3, %v294_v23  ;;  %520 = vmatprep.mubr.msk.f32.mxu1 %vm551_vm0, %v550_v34 }
 0x118   :  { %500 = vmatprep.subr.mxu1 %v550_v34 }
 0x119   :  { %501 = vmatpush3.msra.mxu1 %v293_v24 }
 0x11a   :  { %502 = vmatprep.subr.mxu1 %v550_v34 }
 0x11b   :  { %503 = vmatpush3.msra.mxu1 %v292_v25 }
 0x11c   :  { %504 = vmatprep.subr.mxu1 %v550_v34 }
 0x11d   :  { %505 = vmatpush3.msra.mxu1 %v291_v26 }
 0x11e   :  { %506 = vmatprep.subr.mxu1 %v550_v34 }
 0x11f   :  { %507 = vmatpush3.msra.mxu1 %v290_v27 }
 0x120   :  { %508 = vmatprep.subr.mxu1 %v550_v34 }
 0x121   :  { %509 = vmatpush3.msra.mxu1 %v289_v28 }
 0x122   :  { %510 = vmatprep.subr.mxu1 %v550_v34 }
 0x123   :  { %511 = vmatpush3.msra.mxu1 %v288_v29 }
 0x124   :  { %512 = vmatprep.subr.mxu1 %v550_v34 }
 0x125   :  { %513 = vmatpush3.msra.mxu1 %v287_v30 }
 0x126   :  { %514 = vmatprep.subr.mxu1 %v550_v34 }
 0x127   :  { %515 = vmatpush3.msra.mxu1 %v286_v31 }
 0x128   :  { %516 = vmatprep.subr.mxu1 %v550_v34 }
 0x129   :  { %517 = vmatpush3.msra.mxu1 %v285_v32 }
 0x12a   :  { %518 = vmatprep.subr.mxu1 %v550_v34 }
 0x12b   :  { %519 = vmatpush3.msra.mxu1 %v284_v33 }
 0x1d6   :  { %v279_v36 = vpop.f32.mrf.mxu1 }
 0x1d7   :  { %v280_v37 = vadd.f32 %v397_v35, %v279_v36 }
 0x1d8   :  { %v497_v38 = vpop.f32.mrf.mxu1 }
 0x1d9   :  { %v283_v39 = vmax.f32 %v280_v37, 0.0 }
 0x1db   :  { %521 = vmatmul.mubr.msk.f32.vlgmr.msra.gmra.mxu1 %vm302_vm4, %v283_v39 }
 0x29b   :  { %v376_v34 = vpop.f32.mrf.mxu1 }
 0x29c   :  { %v377_v41 = vadd.f32 %v399_v40, %v376_v34 }
 0x29d   :  { %v522_v42 = vpop.f32.mrf.mxu1 }
 0x29e   :  { %381 = vst.msk [vmem:[#allocation2] sm:$0x3] %vm380_vm5, %v377_v41 }
 0x29f   :  { %539 = shalt.err (!%p536_p4)
}
 0x2a0   :  { %391 = dma.vmem_to_hbm [thread:$0]  %s389_s11, 32, %s828_s8, [#allocation3]  }
 0x2a1   :  { %548 = dma.done.wait [#allocation3], 32  }
 0x2a2   :  { %549 = vsyncadd [#allocation3], 4294967264 }
 0x2a3   :  { %395 = vsyncpa [#allocation3], 1 }

</bundles_post_ra>
